<compile_context>
chip_gen: v7x
topology: tpu7x:2x2x1
jax: 0.10.0
libtpu: 0.0.40
codegen_flags: <defaults>
</compile_context>

<pallas_src>
import functools

import jax
import jax.numpy as jnp
from jax.experimental import pallas as pl
from jax.experimental.pallas import tpu as pltpu


_PER_LAYER = 15  # number of parameter refs per transformer layer


# ---------------------------------------------------------------------------
# In-kernel helpers
# ---------------------------------------------------------------------------
def _layer_norm(x, gamma, beta, eps=1e-5):
    mu = jnp.mean(x, axis=-1, keepdims=True)
    xc = x - mu
    var = jnp.mean(xc * xc, axis=-1, keepdims=True)
    return xc * jax.lax.rsqrt(var + eps) * gamma + beta


def _tree_sum(xs):
    # balanced pairwise sum: removes the serial accumulate dependency chain
    while len(xs) > 1:
        nxt = [xs[i] + xs[i + 1] for i in range(0, len(xs) - 1, 2)]
        if len(xs) % 2:
            nxt.append(xs[-1])
        xs = nxt
    return xs[0]


# ---------------------------------------------------------------------------
# Fused kernel: TB batch elements per grid step, full transformer stack in-body.
# ---------------------------------------------------------------------------
def _attention_extractor_kernel(*refs, num_layers: int, num_heads: int):
    out_ref = refs[-1]
    x_ref, pe_ref, w_in_ref, b_in_ref = refs[:4]
    layer_refs = refs[4:4 + _PER_LAYER * num_layers]
    w_out_ref = refs[-3]
    b_out_ref = refs[-2]

    TB, S, D_in = x_ref.shape
    R = TB * S

    # ---- input projection + positional encoding (dropout == identity in eval) ----
    # Leading-dim-only reshape: (TB, S, D_in) -> (TB*S, D_in); lane dim untouched.
    x2d = x_ref[...].reshape(R, D_in)
    h = jnp.dot(x2d, w_in_ref[...], preferred_element_type=jnp.float32) + b_in_ref[...]
    h = h + pe_ref[...]                                   # pe pre-tiled to [TB*S, H]

    H = h.shape[-1]
    dh = H // num_heads
    scale = 1.0 / float(dh) ** 0.5

    # ---- transformer encoder layers (post-norm, ReLU FFN) — unrolled at trace time ----
    for l in range(num_layers):
        (wq, bq, wk, bk, wov, bov, b_attn,
         g1, be1, w_ff1, b_ff1, w_ff2, b_ff2, g2, be2) = \
            layer_refs[_PER_LAYER * l:_PER_LAYER * (l + 1)]

        # Per-head projections over ALL rows at once.  Weight stacks are indexed on
        # the leading (head) dim of the ref -> plain loads, no lane slicing anywhere.
        q_heads = [jnp.dot(h, wq[n], preferred_element_type=jnp.float32) + bq[n]
                   for n in range(num_heads)]             # each [R, dh]
        k_heads = [jnp.dot(h, wk[n], preferred_element_type=jnp.float32) + bk[n]
                   for n in range(num_heads)]             # each [R, dh]
        # OV projection: Wv_h @ Wo_h folded host-side -> per-head context already in
        # the full [*, H] lane layout (no ctx concat, no extra Wo matmul).
        ov_heads = [jnp.dot(h, wov[n], preferred_element_type=jnp.float32) + bov[n]
                    for n in range(num_heads)]            # each [R, H]

        attn_rows = []
        for t in range(TB):                               # per batch element in block
            r0 = t * S
            parts = []
            for n in range(num_heads):
                qh = q_heads[n][r0:r0 + S, :]             # static sublane slices
                kh = k_heads[n][r0:r0 + S, :]
                ovh = ov_heads[n][r0:r0 + S, :]
                # scores[q, k] = <qh[q], kh[k]> / sqrt(dh)
                s_mat = jax.lax.dot_general(
                    qh, kh, (((1,), (1,)), ((), ())),
                    preferred_element_type=jnp.float32) * scale       # [S, S]
                s_mat = s_mat - jnp.max(s_mat, axis=-1, keepdims=True)
                p = jnp.exp(s_mat)
                # divide -> EUP reciprocal (approx) instead of VALU divide
                p = p * pl.reciprocal(jnp.sum(p, axis=-1, keepdims=True), approx=True)
                parts.append(jnp.dot(p, ovh, preferred_element_type=jnp.float32))
            attn_rows.append(_tree_sum(parts))            # [S, H]
        attn_out = (jnp.concatenate(attn_rows, axis=0)    # sublane-aligned concat
                    if TB > 1 else attn_rows[0])          # [R, H]
        attn_out = attn_out + b_attn[...]

        # residual + layernorm 1
        h = _layer_norm(h + attn_out, g1[...], be1[...])

        # feed-forward: Linear -> ReLU -> Linear
        ff = jnp.dot(h, w_ff1[...], preferred_element_type=jnp.float32) + b_ff1[...]
        ff = jnp.maximum(ff, 0.0)
        ff = jnp.dot(ff, w_ff2[...], preferred_element_type=jnp.float32) + b_ff2[...]

        # residual + layernorm 2
        h = _layer_norm(h + ff, g2[...], be2[...])

    # ---- output projection ----
    out = jnp.dot(h, w_out_ref[...], preferred_element_type=jnp.float32) + b_out_ref[...]
    out_ref[...] = out.reshape(TB, S, out_ref.shape[-1]).astype(out_ref.dtype)


# ---------------------------------------------------------------------------
# Host-side parameter preparation (pre-split heads, fold Wv·Wo) — exact algebra.
# ---------------------------------------------------------------------------
def _prep_layer(layer, num_heads):
    w_qkv, b_qkv = layer["w_qkv"], layer["b_qkv"]            # [H, 3H], [1, 3H]
    w_attn, b_attn = layer["w_attn"], layer["b_attn"]        # [H, H],  [1, H]
    H = w_qkv.shape[0]
    dh = H // num_heads

    def w_stack(w):   # [H, H] -> [num_heads, H, dh]
        return w.reshape(H, num_heads, dh).transpose(1, 0, 2)

    def b_stack(b):   # [1, H] -> [num_heads, 1, dh]
        return b.reshape(1, num_heads, dh).transpose(1, 0, 2)

    wq, wk, wv = w_qkv[:, :H], w_qkv[:, H:2 * H], w_qkv[:, 2 * H:]
    bq, bk, bv = b_qkv[:, :H], b_qkv[:, H:2 * H], b_qkv[:, 2 * H:]

    wo_h = w_attn.reshape(num_heads, dh, H)                  # [nh, dh, H]
    wov = jnp.einsum("nkd,ndh->nkh", w_stack(wv), wo_h)      # [nh, H, H]
    bov = jnp.einsum("nod,ndh->noh", b_stack(bv), wo_h)      # [nh, 1, H]

    return [w_stack(wq), b_stack(bq), w_stack(wk), b_stack(bk),
            wov, bov, b_attn,
            layer["g1"], layer["be1"],
            layer["w_ff1"], layer["b_ff1"], layer["w_ff2"], layer["b_ff2"],
            layer["g2"], layer["be2"]]


def _choose_block_batch(B):
    """Largest divisor of B that keeps >= 2 grid steps (v7x has 2 TensorCores)."""
    if B <= 1:
        return max(B, 1)
    for tb in range(B // 2, 0, -1):
        if B % tb == 0:
            return tb
    return 1


# ---------------------------------------------------------------------------
# Wrapper: one pallas_call for the whole forward, grid over batch blocks.
# ---------------------------------------------------------------------------
def attention_feature_extractor_forward(x, pe, params, *, num_heads, num_layers,
                                        block_batch=None):
    B, S, D_in = x.shape
    D_out = params["w_out"].shape[1]

    TB = block_batch if block_batch is not None else _choose_block_batch(B)
    assert B % TB == 0, (B, TB)
    grid_b = B // TB

    # Positional encoding pre-tiled to one [TB*S, H] slab (host-side, free in-kernel).
    pe_block = jnp.tile(pe[:S], (TB, 1))

    flat = [params["w_in"], params["b_in"]]
    for layer in params["layers"]:
        flat += _prep_layer(layer, num_heads)
    flat += [params["w_out"], params["b_out"]]

    # x is tiled over batch blocks; pe and every parameter are full-extent,
    # constant-index blocks -> DMA'd once, VMEM-resident across the parallel grid.
    in_specs = [pl.BlockSpec((TB, S, D_in), lambda b: (b, 0, 0)),
                pl.BlockSpec(pe_block.shape, lambda b: (0, 0))]
    for arr in flat:
        in_specs.append(pl.BlockSpec(arr.shape, lambda b, _nd=arr.ndim: (0,) * _nd))

    kernel = functools.partial(_attention_extractor_kernel,
                               num_layers=num_layers, num_heads=num_heads)

    out = pl.pallas_call(
        kernel,
        out_shape=jax.ShapeDtypeStruct((B, S, D_out), x.dtype),
        grid=(grid_b,),
        in_specs=in_specs,
        out_specs=pl.BlockSpec((TB, S, D_out), lambda b: (b, 0, 0)),
        compiler_params=pltpu.CompilerParams(
            dimension_semantics=("parallel",)),
    )(x, pe_block, *flat)

    # PyTorch module returns torch.zeros(B, S, S) as "attention_weights".
    attention_weights = jnp.zeros((B, S, S), dtype=x.dtype)
    return out, attention_weights


# ---------------------------------------------------------------------------
# Parameter / buffer construction
# ---------------------------------------------------------------------------
def make_positional_encoding(seq_len, d_model, dtype=jnp.float32):
    position = jnp.arange(seq_len, dtype=jnp.float32)[:, None]
    div_term = jnp.exp(jnp.arange(0, d_model, 2, dtype=jnp.float32)
                       * (-jnp.log(10000.0) / d_model))
    ang = position * div_term                     # [S, d_model // 2]
    pe = jnp.zeros((seq_len, d_model), dtype=jnp.float32)
    pe = pe.at[:, 0::2].set(jnp.sin(ang))
    pe = pe.at[:, 1::2].set(jnp.cos(ang))
    return pe.astype(dtype)


def _init_linear(key, d_in, d_out, dtype=jnp.float32):
    kw, kb = jax.random.split(key)
    bound = float(d_in) ** -0.5
    # stored pre-transposed to [in, out] so the kernel computes y = x @ W + b,
    # biases stored pre-shaped as (1, out).
    w = jax.random.uniform(kw, (d_in, d_out), dtype=dtype, minval=-bound, maxval=bound)
    b = jax.random.uniform(kb, (1, d_out), dtype=dtype, minval=-bound, maxval=bound)
    return w, b


def init_params(key, input_dim, hidden_dim, output_dim, num_heads, num_layers,
                dtype=jnp.float32):
    assert hidden_dim % num_heads == 0
    params = {}
    key, k = jax.random.split(key)
    params["w_in"], params["b_in"] = _init_linear(k, input_dim, hidden_dim, dtype)
    layers = []
    for _ in range(num_layers):
        layer = {}
        key, k = jax.random.split(key)
        layer["w_qkv"], layer["b_qkv"] = _init_linear(k, hidden_dim, 3 * hidden_dim, dtype)
        key, k = jax.random.split(key)
        layer["w_attn"], layer["b_attn"] = _init_linear(k, hidden_dim, hidden_dim, dtype)
        layer["g1"] = jnp.ones((1, hidden_dim), dtype)
        layer["be1"] = jnp.zeros((1, hidden_dim), dtype)
        key, k = jax.random.split(key)
        layer["w_ff1"], layer["b_ff1"] = _init_linear(k, hidden_dim, 4 * hidden_dim, dtype)
        key, k = jax.random.split(key)
        layer["w_ff2"], layer["b_ff2"] = _init_linear(k, 4 * hidden_dim, hidden_dim, dtype)
        layer["g2"] = jnp.ones((1, hidden_dim), dtype)
        layer["be2"] = jnp.zeros((1, hidden_dim), dtype)
        layers.append(layer)
    params["layers"] = layers
    key, k = jax.random.split(key)
    params["w_out"], params["b_out"] = _init_linear(k, hidden_dim, output_dim, dtype)
    return params


# ---------------------------------------------------------------------------
# Pure-JAX reference (same PyTorch eval-mode semantics) for correctness check
# ---------------------------------------------------------------------------
def _ref_layer_norm(x, g, b, eps=1e-5):
    mu = jnp.mean(x, axis=-1, keepdims=True)
    var = jnp.mean((x - mu) ** 2, axis=-1, keepdims=True)
    return (x - mu) / jnp.sqrt(var + eps) * g + b


def ref_forward(x, pe, params, *, num_heads):
    h = x @ params["w_in"] + params["b_in"]
    h = h + pe[None]
    B, S, H = h.shape
    dh = H // num_heads
    for layer in params["layers"]:
        qkv = h @ layer["w_qkv"] + layer["b_qkv"]
        q, k, v = jnp.split(qkv, 3, axis=-1)

        def split_heads(t):
            return t.reshape(B, S, num_heads, dh).transpose(0, 2, 1, 3)

        qh, kh, vh = split_heads(q), split_heads(k), split_heads(v)
        scores = jnp.einsum("bhqd,bhkd->bhqk", qh, kh) / jnp.sqrt(float(dh))
        p = jax.nn.softmax(scores, axis=-1)
        ctx = jnp.einsum("bhqk,bhkd->bhqd", p, vh)
        ctx = ctx.transpose(0, 2, 1, 3).reshape(B, S, H)
        attn = ctx @ layer["w_attn"] + layer["b_attn"]
        h = _ref_layer_norm(h + attn, layer["g1"], layer["be1"])
        ff = jnp.maximum(h @ layer["w_ff1"] + layer["b_ff1"], 0.0)
        ff = ff @ layer["w_ff2"] + layer["b_ff2"]
        h = _ref_layer_norm(h + ff, layer["g2"], layer["be2"])
    return h @ params["w_out"] + params["b_out"]


if __name__ == "__main__":
    batch, seq_len = 4, 8
    input_dim, hidden_dim, output_dim = 8, 32, 16
    num_heads, num_layers = 4, 2

    key = jax.random.PRNGKey(0)
    kp, kx = jax.random.split(key)
    params = init_params(kp, input_dim, hidden_dim, output_dim, num_heads, num_layers)
    x = jax.random.normal(kx, (batch, seq_len, input_dim), dtype=jnp.float32)
    pe = make_positional_encoding(seq_len, hidden_dim)

    out, attn_w = attention_feature_extractor_forward(
        x, pe, params, num_heads=num_heads, num_layers=num_layers)
    jax.block_until_ready((out, attn_w))

    out_ref = ref_forward(x, pe, params, num_heads=num_heads)
    assert out.shape == (batch, seq_len, output_dim)
    assert attn_w.shape == (batch, seq_len, seq_len)
    max_err = float(jnp.max(jnp.abs(out - out_ref)))
    # slightly relaxed vs exact-softmax tolerance: approx EUP reciprocal in softmax
    assert bool(jnp.allclose(out, out_ref, atol=5e-3, rtol=5e-3)), max_err

    print("KERNEL_OK")
</pallas_src>

<mosaic_0001>
module attributes {stable_mosaic.version = 11 : i64} {
  func.func @_attention_extractor_kernel(%arg0: i32, %arg1: memref<2x8x8xf32, #tpu.memory_space<vmem>>, %arg2: memref<16x32xf32, #tpu.memory_space<vmem>>, %arg3: memref<8x32xf32, #tpu.memory_space<vmem>>, %arg4: memref<1x32xf32, #tpu.memory_space<vmem>>, %arg5: memref<4x32x8xf32, #tpu.memory_space<vmem>>, %arg6: memref<4x1x8xf32, #tpu.memory_space<vmem>>, %arg7: memref<4x32x8xf32, #tpu.memory_space<vmem>>, %arg8: memref<4x1x8xf32, #tpu.memory_space<vmem>>, %arg9: memref<4x32x32xf32, #tpu.memory_space<vmem>>, %arg10: memref<4x1x32xf32, #tpu.memory_space<vmem>>, %arg11: memref<1x32xf32, #tpu.memory_space<vmem>>, %arg12: memref<1x32xf32, #tpu.memory_space<vmem>>, %arg13: memref<1x32xf32, #tpu.memory_space<vmem>>, %arg14: memref<32x128xf32, #tpu.memory_space<vmem>>, %arg15: memref<1x128xf32, #tpu.memory_space<vmem>>, %arg16: memref<128x32xf32, #tpu.memory_space<vmem>>, %arg17: memref<1x32xf32, #tpu.memory_space<vmem>>, %arg18: memref<1x32xf32, #tpu.memory_space<vmem>>, %arg19: memref<1x32xf32, #tpu.memory_space<vmem>>, %arg20: memref<4x32x8xf32, #tpu.memory_space<vmem>>, %arg21: memref<4x1x8xf32, #tpu.memory_space<vmem>>, %arg22: memref<4x32x8xf32, #tpu.memory_space<vmem>>, %arg23: memref<4x1x8xf32, #tpu.memory_space<vmem>>, %arg24: memref<4x32x32xf32, #tpu.memory_space<vmem>>, %arg25: memref<4x1x32xf32, #tpu.memory_space<vmem>>, %arg26: memref<1x32xf32, #tpu.memory_space<vmem>>, %arg27: memref<1x32xf32, #tpu.memory_space<vmem>>, %arg28: memref<1x32xf32, #tpu.memory_space<vmem>>, %arg29: memref<32x128xf32, #tpu.memory_space<vmem>>, %arg30: memref<1x128xf32, #tpu.memory_space<vmem>>, %arg31: memref<128x32xf32, #tpu.memory_space<vmem>>, %arg32: memref<1x32xf32, #tpu.memory_space<vmem>>, %arg33: memref<1x32xf32, #tpu.memory_space<vmem>>, %arg34: memref<1x32xf32, #tpu.memory_space<vmem>>, %arg35: memref<32x16xf32, #tpu.memory_space<vmem>>, %arg36: memref<1x16xf32, #tpu.memory_space<vmem>>, %arg37: memref<2x8x16xf32, #tpu.memory_space<vmem>>) attributes {dimension_semantics = [#tpu.dimension_semantics<parallel>], iteration_bounds = array<i64: 2>, scalar_prefetch = 0 : i64, scratch_operands = 0 : i64, tpu.core_type = #tpu.core_type<tc>, window_params = [{transform_indices = @transform_0, window_bounds = array<i64: 2, 8, 8>}, {pipeline_mode = #tpu.pipeline_mode<synchronous>, transform_indices = @transform_1, window_bounds = array<i64: 16, 32>}, {pipeline_mode = #tpu.pipeline_mode<synchronous>, transform_indices = @transform_2, window_bounds = array<i64: 8, 32>}, {pipeline_mode = #tpu.pipeline_mode<synchronous>, transform_indices = @transform_3, window_bounds = array<i64: 1, 32>}, {pipeline_mode = #tpu.pipeline_mode<synchronous>, transform_indices = @transform_4, window_bounds = array<i64: 4, 32, 8>}, {pipeline_mode = #tpu.pipeline_mode<synchronous>, transform_indices = @transform_5, window_bounds = array<i64: 4, 1, 8>}, {pipeline_mode = #tpu.pipeline_mode<synchronous>, transform_indices = @transform_6, window_bounds = array<i64: 4, 32, 8>}, {pipeline_mode = #tpu.pipeline_mode<synchronous>, transform_indices = @transform_7, window_bounds = array<i64: 4, 1, 8>}, {pipeline_mode = #tpu.pipeline_mode<synchronous>, transform_indices = @transform_8, window_bounds = array<i64: 4, 32, 32>}, {pipeline_mode = #tpu.pipeline_mode<synchronous>, transform_indices = @transform_9, window_bounds = array<i64: 4, 1, 32>}, {pipeline_mode = #tpu.pipeline_mode<synchronous>, transform_indices = @transform_10, window_bounds = array<i64: 1, 32>}, {pipeline_mode = #tpu.pipeline_mode<synchronous>, transform_indices = @transform_11, window_bounds = array<i64: 1, 32>}, {pipeline_mode = #tpu.pipeline_mode<synchronous>, transform_indices = @transform_12, window_bounds = array<i64: 1, 32>}, {pipeline_mode = #tpu.pipeline_mode<synchronous>, transform_indices = @transform_13, window_bounds = array<i64: 32, 128>}, {pipeline_mode = #tpu.pipeline_mode<synchronous>, transform_indices = @transform_14, window_bounds = array<i64: 1, 128>}, {pipeline_mode = #tpu.pipeline_mode<synchronous>, transform_indices = @transform_15, window_bounds = array<i64: 128, 32>}, {pipeline_mode = #tpu.pipeline_mode<synchronous>, transform_indices = @transform_16, window_bounds = array<i64: 1, 32>}, {pipeline_mode = #tpu.pipeline_mode<synchronous>, transform_indices = @transform_17, window_bounds = array<i64: 1, 32>}, {pipeline_mode = #tpu.pipeline_mode<synchronous>, transform_indices = @transform_18, window_bounds = array<i64: 1, 32>}, {pipeline_mode = #tpu.pipeline_mode<synchronous>, transform_indices = @transform_19, window_bounds = array<i64: 4, 32, 8>}, {pipeline_mode = #tpu.pipeline_mode<synchronous>, transform_indices = @transform_20, window_bounds = array<i64: 4, 1, 8>}, {pipeline_mode = #tpu.pipeline_mode<synchronous>, transform_indices = @transform_21, window_bounds = array<i64: 4, 32, 8>}, {pipeline_mode = #tpu.pipeline_mode<synchronous>, transform_indices = @transform_22, window_bounds = array<i64: 4, 1, 8>}, {pipeline_mode = #tpu.pipeline_mode<synchronous>, transform_indices = @transform_23, window_bounds = array<i64: 4, 32, 32>}, {pipeline_mode = #tpu.pipeline_mode<synchronous>, transform_indices = @transform_24, window_bounds = array<i64: 4, 1, 32>}, {pipeline_mode = #tpu.pipeline_mode<synchronous>, transform_indices = @transform_25, window_bounds = array<i64: 1, 32>}, {pipeline_mode = #tpu.pipeline_mode<synchronous>, transform_indices = @transform_26, window_bounds = array<i64: 1, 32>}, {pipeline_mode = #tpu.pipeline_mode<synchronous>, transform_indices = @transform_27, window_bounds = array<i64: 1, 32>}, {pipeline_mode = #tpu.pipeline_mode<synchronous>, transform_indices = @transform_28, window_bounds = array<i64: 32, 128>}, {pipeline_mode = #tpu.pipeline_mode<synchronous>, transform_indices = @transform_29, window_bounds = array<i64: 1, 128>}, {pipeline_mode = #tpu.pipeline_mode<synchronous>, transform_indices = @transform_30, window_bounds = array<i64: 128, 32>}, {pipeline_mode = #tpu.pipeline_mode<synchronous>, transform_indices = @transform_31, window_bounds = array<i64: 1, 32>}, {pipeline_mode = #tpu.pipeline_mode<synchronous>, transform_indices = @transform_32, window_bounds = array<i64: 1, 32>}, {pipeline_mode = #tpu.pipeline_mode<synchronous>, transform_indices = @transform_33, window_bounds = array<i64: 1, 32>}, {pipeline_mode = #tpu.pipeline_mode<synchronous>, transform_indices = @transform_34, window_bounds = array<i64: 32, 16>}, {pipeline_mode = #tpu.pipeline_mode<synchronous>, transform_indices = @transform_35, window_bounds = array<i64: 1, 16>}, {transform_indices = @transform_36, window_bounds = array<i64: 2, 8, 16>}]} {
    %c0 = arith.constant 0 : index
    %c0_0 = arith.constant 0 : index
    %c0_1 = arith.constant 0 : index
    %0 = vector.load %arg1[%c0, %c0_0, %c0_1] : memref<2x8x8xf32, #tpu.memory_space<vmem>>, vector<2x8x8xf32>
    %1 = vector.shape_cast %0 : vector<2x8x8xf32> to vector<16x8xf32>
    %c0_2 = arith.constant 0 : index
    %c0_3 = arith.constant 0 : index
    %2 = vector.load %arg3[%c0_2, %c0_3] : memref<8x32xf32, #tpu.memory_space<vmem>>, vector<8x32xf32>
    %cst = arith.constant dense<0.000000e+00> : vector<16x32xf32>
    %3 = tpu.matmul %1, %2, %cst {dimension_numbers = #tpu.dot_dimension_numbers<[1], [0], [0], [1], [0, 0, 1, 1], [], []>} : vector<16x8xf32>, vector<8x32xf32>, vector<16x32xf32> -> vector<16x32xf32>
    %c0_4 = arith.constant 0 : index
    %c0_5 = arith.constant 0 : index
    %4 = vector.load %arg4[%c0_4, %c0_5] : memref<1x32xf32, #tpu.memory_space<vmem>>, vector<1x32xf32>
    %5 = vector.broadcast %4 : vector<1x32xf32> to vector<16x32xf32>
    %6 = arith.addf %3, %5 : vector<16x32xf32>
    %c0_6 = arith.constant 0 : index
    %c0_7 = arith.constant 0 : index
    %7 = vector.load %arg2[%c0_6, %c0_7] : memref<16x32xf32, #tpu.memory_space<vmem>>, vector<16x32xf32>
    %8 = arith.addf %6, %7 : vector<16x32xf32>
    %c0_8 = arith.constant 0 : index
    %c0_9 = arith.constant 0 : index
    %c0_10 = arith.constant 0 : index
    %9 = vector.load %arg5[%c0_8, %c0_9, %c0_10] : memref<4x32x8xf32, #tpu.memory_space<vmem>>, vector<1x32x8xf32>
    %10 = vector.shape_cast %9 : vector<1x32x8xf32> to vector<32x8xf32>
    %cst_11 = arith.constant dense<0.000000e+00> : vector<16x8xf32>
    %11 = tpu.matmul %8, %10, %cst_11 {dimension_numbers = #tpu.dot_dimension_numbers<[1], [0], [0], [1], [0, 0, 1, 1], [], []>} : vector<16x32xf32>, vector<32x8xf32>, vector<16x8xf32> -> vector<16x8xf32>
    %c0_12 = arith.constant 0 : index
    %c0_13 = arith.constant 0 : index
    %c0_14 = arith.constant 0 : index
    %12 = vector.load %arg6[%c0_12, %c0_13, %c0_14] : memref<4x1x8xf32, #tpu.memory_space<vmem>>, vector<1x1x8xf32>
    %13 = vector.shape_cast %12 : vector<1x1x8xf32> to vector<1x8xf32>
    %14 = vector.broadcast %13 : vector<1x8xf32> to vector<16x8xf32>
    %15 = arith.addf %11, %14 : vector<16x8xf32>
    %c1 = arith.constant 1 : index
    %c0_15 = arith.constant 0 : index
    %c0_16 = arith.constant 0 : index
    %16 = vector.load %arg5[%c1, %c0_15, %c0_16] : memref<4x32x8xf32, #tpu.memory_space<vmem>>, vector<1x32x8xf32>
    %17 = vector.shape_cast %16 : vector<1x32x8xf32> to vector<32x8xf32>
    %cst_17 = arith.constant dense<0.000000e+00> : vector<16x8xf32>
    %18 = tpu.matmul %8, %17, %cst_17 {dimension_numbers = #tpu.dot_dimension_numbers<[1], [0], [0], [1], [0, 0, 1, 1], [], []>} : vector<16x32xf32>, vector<32x8xf32>, vector<16x8xf32> -> vector<16x8xf32>
    %c1_18 = arith.constant 1 : index
    %c0_19 = arith.constant 0 : index
    %c0_20 = arith.constant 0 : index
    %19 = vector.load %arg6[%c1_18, %c0_19, %c0_20] : memref<4x1x8xf32, #tpu.memory_space<vmem>>, vector<1x1x8xf32>
    %20 = vector.shape_cast %19 : vector<1x1x8xf32> to vector<1x8xf32>
    %21 = vector.broadcast %20 : vector<1x8xf32> to vector<16x8xf32>
    %22 = arith.addf %18, %21 : vector<16x8xf32>
    %c2 = arith.constant 2 : index
    %c0_21 = arith.constant 0 : index
    %c0_22 = arith.constant 0 : index
    %23 = vector.load %arg5[%c2, %c0_21, %c0_22] : memref<4x32x8xf32, #tpu.memory_space<vmem>>, vector<1x32x8xf32>
    %24 = vector.shape_cast %23 : vector<1x32x8xf32> to vector<32x8xf32>
    %cst_23 = arith.constant dense<0.000000e+00> : vector<16x8xf32>
    %25 = tpu.matmul %8, %24, %cst_23 {dimension_numbers = #tpu.dot_dimension_numbers<[1], [0], [0], [1], [0, 0, 1, 1], [], []>} : vector<16x32xf32>, vector<32x8xf32>, vector<16x8xf32> -> vector<16x8xf32>
    %c2_24 = arith.constant 2 : index
    %c0_25 = arith.constant 0 : index
    %c0_26 = arith.constant 0 : index
    %26 = vector.load %arg6[%c2_24, %c0_25, %c0_26] : memref<4x1x8xf32, #tpu.memory_space<vmem>>, vector<1x1x8xf32>
    %27 = vector.shape_cast %26 : vector<1x1x8xf32> to vector<1x8xf32>
    %28 = vector.broadcast %27 : vector<1x8xf32> to vector<16x8xf32>
    %29 = arith.addf %25, %28 : vector<16x8xf32>
    %c3 = arith.constant 3 : index
    %c0_27 = arith.constant 0 : index
    %c0_28 = arith.constant 0 : index
    %30 = vector.load %arg5[%c3, %c0_27, %c0_28] : memref<4x32x8xf32, #tpu.memory_space<vmem>>, vector<1x32x8xf32>
    %31 = vector.shape_cast %30 : vector<1x32x8xf32> to vector<32x8xf32>
    %cst_29 = arith.constant dense<0.000000e+00> : vector<16x8xf32>
    %32 = tpu.matmul %8, %31, %cst_29 {dimension_numbers = #tpu.dot_dimension_numbers<[1], [0], [0], [1], [0, 0, 1, 1], [], []>} : vector<16x32xf32>, vector<32x8xf32>, vector<16x8xf32> -> vector<16x8xf32>
    %c3_30 = arith.constant 3 : index
    %c0_31 = arith.constant 0 : index
    %c0_32 = arith.constant 0 : index
    %33 = vector.load %arg6[%c3_30, %c0_31, %c0_32] : memref<4x1x8xf32, #tpu.memory_space<vmem>>, vector<1x1x8xf32>
    %34 = vector.shape_cast %33 : vector<1x1x8xf32> to vector<1x8xf32>
    %35 = vector.broadcast %34 : vector<1x8xf32> to vector<16x8xf32>
    %36 = arith.addf %32, %35 : vector<16x8xf32>
    %c0_33 = arith.constant 0 : index
    %c0_34 = arith.constant 0 : index
    %c0_35 = arith.constant 0 : index
    %37 = vector.load %arg7[%c0_33, %c0_34, %c0_35] : memref<4x32x8xf32, #tpu.memory_space<vmem>>, vector<1x32x8xf32>
    %38 = vector.shape_cast %37 : vector<1x32x8xf32> to vector<32x8xf32>
    %cst_36 = arith.constant dense<0.000000e+00> : vector<16x8xf32>
    %39 = tpu.matmul %8, %38, %cst_36 {dimension_numbers = #tpu.dot_dimension_numbers<[1], [0], [0], [1], [0, 0, 1, 1], [], []>} : vector<16x32xf32>, vector<32x8xf32>, vector<16x8xf32> -> vector<16x8xf32>
    %c0_37 = arith.constant 0 : index
    %c0_38 = arith.constant 0 : index
    %c0_39 = arith.constant 0 : index
    %40 = vector.load %arg8[%c0_37, %c0_38, %c0_39] : memref<4x1x8xf32, #tpu.memory_space<vmem>>, vector<1x1x8xf32>
    %41 = vector.shape_cast %40 : vector<1x1x8xf32> to vector<1x8xf32>
    %42 = vector.broadcast %41 : vector<1x8xf32> to vector<16x8xf32>
    %43 = arith.addf %39, %42 : vector<16x8xf32>
    %c1_40 = arith.constant 1 : index
    %c0_41 = arith.constant 0 : index
    %c0_42 = arith.constant 0 : index
    %44 = vector.load %arg7[%c1_40, %c0_41, %c0_42] : memref<4x32x8xf32, #tpu.memory_space<vmem>>, vector<1x32x8xf32>
    %45 = vector.shape_cast %44 : vector<1x32x8xf32> to vector<32x8xf32>
    %cst_43 = arith.constant dense<0.000000e+00> : vector<16x8xf32>
    %46 = tpu.matmul %8, %45, %cst_43 {dimension_numbers = #tpu.dot_dimension_numbers<[1], [0], [0], [1], [0, 0, 1, 1], [], []>} : vector<16x32xf32>, vector<32x8xf32>, vector<16x8xf32> -> vector<16x8xf32>
    %c1_44 = arith.constant 1 : index
    %c0_45 = arith.constant 0 : index
    %c0_46 = arith.constant 0 : index
    %47 = vector.load %arg8[%c1_44, %c0_45, %c0_46] : memref<4x1x8xf32, #tpu.memory_space<vmem>>, vector<1x1x8xf32>
    %48 = vector.shape_cast %47 : vector<1x1x8xf32> to vector<1x8xf32>
    %49 = vector.broadcast %48 : vector<1x8xf32> to vector<16x8xf32>
    %50 = arith.addf %46, %49 : vector<16x8xf32>
    %c2_47 = arith.constant 2 : index
    %c0_48 = arith.constant 0 : index
    %c0_49 = arith.constant 0 : index
    %51 = vector.load %arg7[%c2_47, %c0_48, %c0_49] : memref<4x32x8xf32, #tpu.memory_space<vmem>>, vector<1x32x8xf32>
    %52 = vector.shape_cast %51 : vector<1x32x8xf32> to vector<32x8xf32>
    %cst_50 = arith.constant dense<0.000000e+00> : vector<16x8xf32>
    %53 = tpu.matmul %8, %52, %cst_50 {dimension_numbers = #tpu.dot_dimension_numbers<[1], [0], [0], [1], [0, 0, 1, 1], [], []>} : vector<16x32xf32>, vector<32x8xf32>, vector<16x8xf32> -> vector<16x8xf32>
    %c2_51 = arith.constant 2 : index
    %c0_52 = arith.constant 0 : index
    %c0_53 = arith.constant 0 : index
    %54 = vector.load %arg8[%c2_51, %c0_52, %c0_53] : memref<4x1x8xf32, #tpu.memory_space<vmem>>, vector<1x1x8xf32>
    %55 = vector.shape_cast %54 : vector<1x1x8xf32> to vector<1x8xf32>
    %56 = vector.broadcast %55 : vector<1x8xf32> to vector<16x8xf32>
    %57 = arith.addf %53, %56 : vector<16x8xf32>
    %c3_54 = arith.constant 3 : index
    %c0_55 = arith.constant 0 : index
    %c0_56 = arith.constant 0 : index
    %58 = vector.load %arg7[%c3_54, %c0_55, %c0_56] : memref<4x32x8xf32, #tpu.memory_space<vmem>>, vector<1x32x8xf32>
    %59 = vector.shape_cast %58 : vector<1x32x8xf32> to vector<32x8xf32>
    %cst_57 = arith.constant dense<0.000000e+00> : vector<16x8xf32>
    %60 = tpu.matmul %8, %59, %cst_57 {dimension_numbers = #tpu.dot_dimension_numbers<[1], [0], [0], [1], [0, 0, 1, 1], [], []>} : vector<16x32xf32>, vector<32x8xf32>, vector<16x8xf32> -> vector<16x8xf32>
    %c3_58 = arith.constant 3 : index
    %c0_59 = arith.constant 0 : index
    %c0_60 = arith.constant 0 : index
    %61 = vector.load %arg8[%c3_58, %c0_59, %c0_60] : memref<4x1x8xf32, #tpu.memory_space<vmem>>, vector<1x1x8xf32>
    %62 = vector.shape_cast %61 : vector<1x1x8xf32> to vector<1x8xf32>
    %63 = vector.broadcast %62 : vector<1x8xf32> to vector<16x8xf32>
    %64 = arith.addf %60, %63 : vector<16x8xf32>
    %c0_61 = arith.constant 0 : index
    %c0_62 = arith.constant 0 : index
    %c0_63 = arith.constant 0 : index
    %65 = vector.load %arg9[%c0_61, %c0_62, %c0_63] : memref<4x32x32xf32, #tpu.memory_space<vmem>>, vector<1x32x32xf32>
    %66 = vector.shape_cast %65 : vector<1x32x32xf32> to vector<32x32xf32>
    %cst_64 = arith.constant dense<0.000000e+00> : vector<16x32xf32>
    %67 = tpu.matmul %8, %66, %cst_64 {dimension_numbers = #tpu.dot_dimension_numbers<[1], [0], [0], [1], [0, 0, 1, 1], [], []>} : vector<16x32xf32>, vector<32x32xf32>, vector<16x32xf32> -> vector<16x32xf32>
    %c0_65 = arith.constant 0 : index
    %c0_66 = arith.constant 0 : index
    %c0_67 = arith.constant 0 : index
    %68 = vector.load %arg10[%c0_65, %c0_66, %c0_67] : memref<4x1x32xf32, #tpu.memory_space<vmem>>, vector<1x1x32xf32>
    %69 = vector.shape_cast %68 : vector<1x1x32xf32> to vector<1x32xf32>
    %70 = vector.broadcast %69 : vector<1x32xf32> to vector<16x32xf32>
    %71 = arith.addf %67, %70 : vector<16x32xf32>
    %c1_68 = arith.constant 1 : index
    %c0_69 = arith.constant 0 : index
    %c0_70 = arith.constant 0 : index
    %72 = vector.load %arg9[%c1_68, %c0_69, %c0_70] : memref<4x32x32xf32, #tpu.memory_space<vmem>>, vector<1x32x32xf32>
    %73 = vector.shape_cast %72 : vector<1x32x32xf32> to vector<32x32xf32>
    %cst_71 = arith.constant dense<0.000000e+00> : vector<16x32xf32>
    %74 = tpu.matmul %8, %73, %cst_71 {dimension_numbers = #tpu.dot_dimension_numbers<[1], [0], [0], [1], [0, 0, 1, 1], [], []>} : vector<16x32xf32>, vector<32x32xf32>, vector<16x32xf32> -> vector<16x32xf32>
    %c1_72 = arith.constant 1 : index
    %c0_73 = arith.constant 0 : index
    %c0_74 = arith.constant 0 : index
    %75 = vector.load %arg10[%c1_72, %c0_73, %c0_74] : memref<4x1x32xf32, #tpu.memory_space<vmem>>, vector<1x1x32xf32>
    %76 = vector.shape_cast %75 : vector<1x1x32xf32> to vector<1x32xf32>
    %77 = vector.broadcast %76 : vector<1x32xf32> to vector<16x32xf32>
    %78 = arith.addf %74, %77 : vector<16x32xf32>
    %c2_75 = arith.constant 2 : index
    %c0_76 = arith.constant 0 : index
    %c0_77 = arith.constant 0 : index
    %79 = vector.load %arg9[%c2_75, %c0_76, %c0_77] : memref<4x32x32xf32, #tpu.memory_space<vmem>>, vector<1x32x32xf32>
    %80 = vector.shape_cast %79 : vector<1x32x32xf32> to vector<32x32xf32>
    %cst_78 = arith.constant dense<0.000000e+00> : vector<16x32xf32>
    %81 = tpu.matmul %8, %80, %cst_78 {dimension_numbers = #tpu.dot_dimension_numbers<[1], [0], [0], [1], [0, 0, 1, 1], [], []>} : vector<16x32xf32>, vector<32x32xf32>, vector<16x32xf32> -> vector<16x32xf32>
    %c2_79 = arith.constant 2 : index
    %c0_80 = arith.constant 0 : index
    %c0_81 = arith.constant 0 : index
    %82 = vector.load %arg10[%c2_79, %c0_80, %c0_81] : memref<4x1x32xf32, #tpu.memory_space<vmem>>, vector<1x1x32xf32>
    %83 = vector.shape_cast %82 : vector<1x1x32xf32> to vector<1x32xf32>
    %84 = vector.broadcast %83 : vector<1x32xf32> to vector<16x32xf32>
    %85 = arith.addf %81, %84 : vector<16x32xf32>
    %c3_82 = arith.constant 3 : index
    %c0_83 = arith.constant 0 : index
    %c0_84 = arith.constant 0 : index
    %86 = vector.load %arg9[%c3_82, %c0_83, %c0_84] : memref<4x32x32xf32, #tpu.memory_space<vmem>>, vector<1x32x32xf32>
    %87 = vector.shape_cast %86 : vector<1x32x32xf32> to vector<32x32xf32>
    %cst_85 = arith.constant dense<0.000000e+00> : vector<16x32xf32>
    %88 = tpu.matmul %8, %87, %cst_85 {dimension_numbers = #tpu.dot_dimension_numbers<[1], [0], [0], [1], [0, 0, 1, 1], [], []>} : vector<16x32xf32>, vector<32x32xf32>, vector<16x32xf32> -> vector<16x32xf32>
    %c3_86 = arith.constant 3 : index
    %c0_87 = arith.constant 0 : index
    %c0_88 = arith.constant 0 : index
    %89 = vector.load %arg10[%c3_86, %c0_87, %c0_88] : memref<4x1x32xf32, #tpu.memory_space<vmem>>, vector<1x1x32xf32>
    %90 = vector.shape_cast %89 : vector<1x1x32xf32> to vector<1x32xf32>
    %91 = vector.broadcast %90 : vector<1x32xf32> to vector<16x32xf32>
    %92 = arith.addf %88, %91 : vector<16x32xf32>
    %93 = vector.extract_strided_slice %15 {offsets = [0, 0], sizes = [8, 8], strides = [1, 1]} : vector<16x8xf32> to vector<8x8xf32>
    %94 = vector.extract_strided_slice %43 {offsets = [0, 0], sizes = [8, 8], strides = [1, 1]} : vector<16x8xf32> to vector<8x8xf32>
    %95 = vector.extract_strided_slice %71 {offsets = [0, 0], sizes = [8, 32], strides = [1, 1]} : vector<16x32xf32> to vector<8x32xf32>
    %cst_89 = arith.constant dense<0.000000e+00> : vector<8x8xf32>
    %96 = tpu.matmul %93, %94, %cst_89 {dimension_numbers = #tpu.dot_dimension_numbers<[1], [1], [0], [0], [0, 0, 1, 0], [], []>} : vector<8x8xf32>, vector<8x8xf32>, vector<8x8xf32> -> vector<8x8xf32>
    %cst_90 = arith.constant 0.353553385 : f32
    %97 = vector.broadcast %cst_90 : f32 to vector<8x8xf32>
    %98 = arith.mulf %96, %97 : vector<8x8xf32>
    %cst_91 = arith.constant dense<0xFF800000> : vector<8xf32>
    %99 = vector.multi_reduction <maximumf>, %98, %cst_91 [1] : vector<8x8xf32> to vector<8xf32>
    %100 = vector.shape_cast %99 : vector<8xf32> to vector<8x1xf32>
    %101 = vector.broadcast %100 : vector<8x1xf32> to vector<8x8xf32>
    %102 = arith.subf %98, %101 : vector<8x8xf32>
    %103 = math.exp %102 : vector<8x8xf32>
    %cst_92 = arith.constant dense<0.000000e+00> : vector<8xf32>
    %104 = vector.multi_reduction <add>, %103, %cst_92 [1] : vector<8x8xf32> to vector<8xf32>
    %105 = vector.shape_cast %104 : vector<8xf32> to vector<8x1xf32>
    %106 = tpu.reciprocal %105 {approx = true} : vector<8x1xf32> -> vector<8x1xf32>
    %107 = vector.broadcast %106 : vector<8x1xf32> to vector<8x8xf32>
    %108 = arith.mulf %103, %107 : vector<8x8xf32>
    %cst_93 = arith.constant dense<0.000000e+00> : vector<8x32xf32>
    %109 = tpu.matmul %108, %95, %cst_93 {dimension_numbers = #tpu.dot_dimension_numbers<[1], [0], [0], [1], [0, 0, 1, 1], [], []>} : vector<8x8xf32>, vector<8x32xf32>, vector<8x32xf32> -> vector<8x32xf32>
    %110 = vector.extract_strided_slice %22 {offsets = [0, 0], sizes = [8, 8], strides = [1, 1]} : vector<16x8xf32> to vector<8x8xf32>
    %111 = vector.extract_strided_slice %50 {offsets = [0, 0], sizes = [8, 8], strides = [1, 1]} : vector<16x8xf32> to vector<8x8xf32>
    %112 = vector.extract_strided_slice %78 {offsets = [0, 0], sizes = [8, 32], strides = [1, 1]} : vector<16x32xf32> to vector<8x32xf32>
    %cst_94 = arith.constant dense<0.000000e+00> : vector<8x8xf32>
    %113 = tpu.matmul %110, %111, %cst_94 {dimension_numbers = #tpu.dot_dimension_numbers<[1], [1], [0], [0], [0, 0, 1, 0], [], []>} : vector<8x8xf32>, vector<8x8xf32>, vector<8x8xf32> -> vector<8x8xf32>
    %cst_95 = arith.constant 0.353553385 : f32
    %114 = vector.broadcast %cst_95 : f32 to vector<8x8xf32>
    %115 = arith.mulf %113, %114 : vector<8x8xf32>
    %cst_96 = arith.constant dense<0xFF800000> : vector<8xf32>
    %116 = vector.multi_reduction <maximumf>, %115, %cst_96 [1] : vector<8x8xf32> to vector<8xf32>
    %117 = vector.shape_cast %116 : vector<8xf32> to vector<8x1xf32>
    %118 = vector.broadcast %117 : vector<8x1xf32> to vector<8x8xf32>
    %119 = arith.subf %115, %118 : vector<8x8xf32>
    %120 = math.exp %119 : vector<8x8xf32>
    %cst_97 = arith.constant dense<0.000000e+00> : vector<8xf32>
    %121 = vector.multi_reduction <add>, %120, %cst_97 [1] : vector<8x8xf32> to vector<8xf32>
    %122 = vector.shape_cast %121 : vector<8xf32> to vector<8x1xf32>
    %123 = tpu.reciprocal %122 {approx = true} : vector<8x1xf32> -> vector<8x1xf32>
    %124 = vector.broadcast %123 : vector<8x1xf32> to vector<8x8xf32>
    %125 = arith.mulf %120, %124 : vector<8x8xf32>
    %cst_98 = arith.constant dense<0.000000e+00> : vector<8x32xf32>
    %126 = tpu.matmul %125, %112, %cst_98 {dimension_numbers = #tpu.dot_dimension_numbers<[1], [0], [0], [1], [0, 0, 1, 1], [], []>} : vector<8x8xf32>, vector<8x32xf32>, vector<8x32xf32> -> vector<8x32xf32>
    %127 = vector.extract_strided_slice %29 {offsets = [0, 0], sizes = [8, 8], strides = [1, 1]} : vector<16x8xf32> to vector<8x8xf32>
    %128 = vector.extract_strided_slice %57 {offsets = [0, 0], sizes = [8, 8], strides = [1, 1]} : vector<16x8xf32> to vector<8x8xf32>
    %129 = vector.extract_strided_slice %85 {offsets = [0, 0], sizes = [8, 32], strides = [1, 1]} : vector<16x32xf32> to vector<8x32xf32>
    %cst_99 = arith.constant dense<0.000000e+00> : vector<8x8xf32>
    %130 = tpu.matmul %127, %128, %cst_99 {dimension_numbers = #tpu.dot_dimension_numbers<[1], [1], [0], [0], [0, 0, 1, 0], [], []>} : vector<8x8xf32>, vector<8x8xf32>, vector<8x8xf32> -> vector<8x8xf32>
    %cst_100 = arith.constant 0.353553385 : f32
    %131 = vector.broadcast %cst_100 : f32 to vector<8x8xf32>
    %132 = arith.mulf %130, %131 : vector<8x8xf32>
    %cst_101 = arith.constant dense<0xFF800000> : vector<8xf32>
    %133 = vector.multi_reduction <maximumf>, %132, %cst_101 [1] : vector<8x8xf32> to vector<8xf32>
    %134 = vector.shape_cast %133 : vector<8xf32> to vector<8x1xf32>
    %135 = vector.broadcast %134 : vector<8x1xf32> to vector<8x8xf32>
    %136 = arith.subf %132, %135 : vector<8x8xf32>
    %137 = math.exp %136 : vector<8x8xf32>
    %cst_102 = arith.constant dense<0.000000e+00> : vector<8xf32>
    %138 = vector.multi_reduction <add>, %137, %cst_102 [1] : vector<8x8xf32> to vector<8xf32>
    %139 = vector.shape_cast %138 : vector<8xf32> to vector<8x1xf32>
    %140 = tpu.reciprocal %139 {approx = true} : vector<8x1xf32> -> vector<8x1xf32>
    %141 = vector.broadcast %140 : vector<8x1xf32> to vector<8x8xf32>
    %142 = arith.mulf %137, %141 : vector<8x8xf32>
    %cst_103 = arith.constant dense<0.000000e+00> : vector<8x32xf32>
    %143 = tpu.matmul %142, %129, %cst_103 {dimension_numbers = #tpu.dot_dimension_numbers<[1], [0], [0], [1], [0, 0, 1, 1], [], []>} : vector<8x8xf32>, vector<8x32xf32>, vector<8x32xf32> -> vector<8x32xf32>
    %144 = vector.extract_strided_slice %36 {offsets = [0, 0], sizes = [8, 8], strides = [1, 1]} : vector<16x8xf32> to vector<8x8xf32>
    %145 = vector.extract_strided_slice %64 {offsets = [0, 0], sizes = [8, 8], strides = [1, 1]} : vector<16x8xf32> to vector<8x8xf32>
    %146 = vector.extract_strided_slice %92 {offsets = [0, 0], sizes = [8, 32], strides = [1, 1]} : vector<16x32xf32> to vector<8x32xf32>
    %cst_104 = arith.constant dense<0.000000e+00> : vector<8x8xf32>
    %147 = tpu.matmul %144, %145, %cst_104 {dimension_numbers = #tpu.dot_dimension_numbers<[1], [1], [0], [0], [0, 0, 1, 0], [], []>} : vector<8x8xf32>, vector<8x8xf32>, vector<8x8xf32> -> vector<8x8xf32>
    %cst_105 = arith.constant 0.353553385 : f32
    %148 = vector.broadcast %cst_105 : f32 to vector<8x8xf32>
    %149 = arith.mulf %147, %148 : vector<8x8xf32>
    %cst_106 = arith.constant dense<0xFF800000> : vector<8xf32>
    %150 = vector.multi_reduction <maximumf>, %149, %cst_106 [1] : vector<8x8xf32> to vector<8xf32>
    %151 = vector.shape_cast %150 : vector<8xf32> to vector<8x1xf32>
    %152 = vector.broadcast %151 : vector<8x1xf32> to vector<8x8xf32>
    %153 = arith.subf %149, %152 : vector<8x8xf32>
    %154 = math.exp %153 : vector<8x8xf32>
    %cst_107 = arith.constant dense<0.000000e+00> : vector<8xf32>
    %155 = vector.multi_reduction <add>, %154, %cst_107 [1] : vector<8x8xf32> to vector<8xf32>
    %156 = vector.shape_cast %155 : vector<8xf32> to vector<8x1xf32>
    %157 = tpu.reciprocal %156 {approx = true} : vector<8x1xf32> -> vector<8x1xf32>
    %158 = vector.broadcast %157 : vector<8x1xf32> to vector<8x8xf32>
    %159 = arith.mulf %154, %158 : vector<8x8xf32>
    %cst_108 = arith.constant dense<0.000000e+00> : vector<8x32xf32>
    %160 = tpu.matmul %159, %146, %cst_108 {dimension_numbers = #tpu.dot_dimension_numbers<[1], [0], [0], [1], [0, 0, 1, 1], [], []>} : vector<8x8xf32>, vector<8x32xf32>, vector<8x32xf32> -> vector<8x32xf32>
    %161 = arith.addf %109, %126 : vector<8x32xf32>
    %162 = arith.addf %143, %160 : vector<8x32xf32>
    %163 = arith.addf %161, %162 : vector<8x32xf32>
    %164 = vector.extract_strided_slice %15 {offsets = [8, 0], sizes = [8, 8], strides = [1, 1]} : vector<16x8xf32> to vector<8x8xf32>
    %165 = vector.extract_strided_slice %43 {offsets = [8, 0], sizes = [8, 8], strides = [1, 1]} : vector<16x8xf32> to vector<8x8xf32>
    %166 = vector.extract_strided_slice %71 {offsets = [8, 0], sizes = [8, 32], strides = [1, 1]} : vector<16x32xf32> to vector<8x32xf32>
    %cst_109 = arith.constant dense<0.000000e+00> : vector<8x8xf32>
    %167 = tpu.matmul %164, %165, %cst_109 {dimension_numbers = #tpu.dot_dimension_numbers<[1], [1], [0], [0], [0, 0, 1, 0], [], []>} : vector<8x8xf32>, vector<8x8xf32>, vector<8x8xf32> -> vector<8x8xf32>
    %cst_110 = arith.constant 0.353553385 : f32
    %168 = vector.broadcast %cst_110 : f32 to vector<8x8xf32>
    %169 = arith.mulf %167, %168 : vector<8x8xf32>
    %cst_111 = arith.constant dense<0xFF800000> : vector<8xf32>
    %170 = vector.multi_reduction <maximumf>, %169, %cst_111 [1] : vector<8x8xf32> to vector<8xf32>
    %171 = vector.shape_cast %170 : vector<8xf32> to vector<8x1xf32>
    %172 = vector.broadcast %171 : vector<8x1xf32> to vector<8x8xf32>
    %173 = arith.subf %169, %172 : vector<8x8xf32>
    %174 = math.exp %173 : vector<8x8xf32>
    %cst_112 = arith.constant dense<0.000000e+00> : vector<8xf32>
    %175 = vector.multi_reduction <add>, %174, %cst_112 [1] : vector<8x8xf32> to vector<8xf32>
    %176 = vector.shape_cast %175 : vector<8xf32> to vector<8x1xf32>
    %177 = tpu.reciprocal %176 {approx = true} : vector<8x1xf32> -> vector<8x1xf32>
    %178 = vector.broadcast %177 : vector<8x1xf32> to vector<8x8xf32>
    %179 = arith.mulf %174, %178 : vector<8x8xf32>
    %cst_113 = arith.constant dense<0.000000e+00> : vector<8x32xf32>
    %180 = tpu.matmul %179, %166, %cst_113 {dimension_numbers = #tpu.dot_dimension_numbers<[1], [0], [0], [1], [0, 0, 1, 1], [], []>} : vector<8x8xf32>, vector<8x32xf32>, vector<8x32xf32> -> vector<8x32xf32>
    %181 = vector.extract_strided_slice %22 {offsets = [8, 0], sizes = [8, 8], strides = [1, 1]} : vector<16x8xf32> to vector<8x8xf32>
    %182 = vector.extract_strided_slice %50 {offsets = [8, 0], sizes = [8, 8], strides = [1, 1]} : vector<16x8xf32> to vector<8x8xf32>
    %183 = vector.extract_strided_slice %78 {offsets = [8, 0], sizes = [8, 32], strides = [1, 1]} : vector<16x32xf32> to vector<8x32xf32>
    %cst_114 = arith.constant dense<0.000000e+00> : vector<8x8xf32>
    %184 = tpu.matmul %181, %182, %cst_114 {dimension_numbers = #tpu.dot_dimension_numbers<[1], [1], [0], [0], [0, 0, 1, 0], [], []>} : vector<8x8xf32>, vector<8x8xf32>, vector<8x8xf32> -> vector<8x8xf32>
    %cst_115 = arith.constant 0.353553385 : f32
    %185 = vector.broadcast %cst_115 : f32 to vector<8x8xf32>
    %186 = arith.mulf %184, %185 : vector<8x8xf32>
    %cst_116 = arith.constant dense<0xFF800000> : vector<8xf32>
    %187 = vector.multi_reduction <maximumf>, %186, %cst_116 [1] : vector<8x8xf32> to vector<8xf32>
    %188 = vector.shape_cast %187 : vector<8xf32> to vector<8x1xf32>
    %189 = vector.broadcast %188 : vector<8x1xf32> to vector<8x8xf32>
    %190 = arith.subf %186, %189 : vector<8x8xf32>
    %191 = math.exp %190 : vector<8x8xf32>
    %cst_117 = arith.constant dense<0.000000e+00> : vector<8xf32>
    %192 = vector.multi_reduction <add>, %191, %cst_117 [1] : vector<8x8xf32> to vector<8xf32>
    %193 = vector.shape_cast %192 : vector<8xf32> to vector<8x1xf32>
    %194 = tpu.reciprocal %193 {approx = true} : vector<8x1xf32> -> vector<8x1xf32>
    %195 = vector.broadcast %194 : vector<8x1xf32> to vector<8x8xf32>
    %196 = arith.mulf %191, %195 : vector<8x8xf32>
    %cst_118 = arith.constant dense<0.000000e+00> : vector<8x32xf32>
    %197 = tpu.matmul %196, %183, %cst_118 {dimension_numbers = #tpu.dot_dimension_numbers<[1], [0], [0], [1], [0, 0, 1, 1], [], []>} : vector<8x8xf32>, vector<8x32xf32>, vector<8x32xf32> -> vector<8x32xf32>
    %198 = vector.extract_strided_slice %29 {offsets = [8, 0], sizes = [8, 8], strides = [1, 1]} : vector<16x8xf32> to vector<8x8xf32>
    %199 = vector.extract_strided_slice %57 {offsets = [8, 0], sizes = [8, 8], strides = [1, 1]} : vector<16x8xf32> to vector<8x8xf32>
    %200 = vector.extract_strided_slice %85 {offsets = [8, 0], sizes = [8, 32], strides = [1, 1]} : vector<16x32xf32> to vector<8x32xf32>
    %cst_119 = arith.constant dense<0.000000e+00> : vector<8x8xf32>
    %201 = tpu.matmul %198, %199, %cst_119 {dimension_numbers = #tpu.dot_dimension_numbers<[1], [1], [0], [0], [0, 0, 1, 0], [], []>} : vector<8x8xf32>, vector<8x8xf32>, vector<8x8xf32> -> vector<8x8xf32>
    %cst_120 = arith.constant 0.353553385 : f32
    %202 = vector.broadcast %cst_120 : f32 to vector<8x8xf32>
    %203 = arith.mulf %201, %202 : vector<8x8xf32>
    %cst_121 = arith.constant dense<0xFF800000> : vector<8xf32>
    %204 = vector.multi_reduction <maximumf>, %203, %cst_121 [1] : vector<8x8xf32> to vector<8xf32>
    %205 = vector.shape_cast %204 : vector<8xf32> to vector<8x1xf32>
    %206 = vector.broadcast %205 : vector<8x1xf32> to vector<8x8xf32>
    %207 = arith.subf %203, %206 : vector<8x8xf32>
    %208 = math.exp %207 : vector<8x8xf32>
    %cst_122 = arith.constant dense<0.000000e+00> : vector<8xf32>
    %209 = vector.multi_reduction <add>, %208, %cst_122 [1] : vector<8x8xf32> to vector<8xf32>
    %210 = vector.shape_cast %209 : vector<8xf32> to vector<8x1xf32>
    %211 = tpu.reciprocal %210 {approx = true} : vector<8x1xf32> -> vector<8x1xf32>
    %212 = vector.broadcast %211 : vector<8x1xf32> to vector<8x8xf32>
    %213 = arith.mulf %208, %212 : vector<8x8xf32>
    %cst_123 = arith.constant dense<0.000000e+00> : vector<8x32xf32>
    %214 = tpu.matmul %213, %200, %cst_123 {dimension_numbers = #tpu.dot_dimension_numbers<[1], [0], [0], [1], [0, 0, 1, 1], [], []>} : vector<8x8xf32>, vector<8x32xf32>, vector<8x32xf32> -> vector<8x32xf32>
    %215 = vector.extract_strided_slice %36 {offsets = [8, 0], sizes = [8, 8], strides = [1, 1]} : vector<16x8xf32> to vector<8x8xf32>
    %216 = vector.extract_strided_slice %64 {offsets = [8, 0], sizes = [8, 8], strides = [1, 1]} : vector<16x8xf32> to vector<8x8xf32>
    %217 = vector.extract_strided_slice %92 {offsets = [8, 0], sizes = [8, 32], strides = [1, 1]} : vector<16x32xf32> to vector<8x32xf32>
    %cst_124 = arith.constant dense<0.000000e+00> : vector<8x8xf32>
    %218 = tpu.matmul %215, %216, %cst_124 {dimension_numbers = #tpu.dot_dimension_numbers<[1], [1], [0], [0], [0, 0, 1, 0], [], []>} : vector<8x8xf32>, vector<8x8xf32>, vector<8x8xf32> -> vector<8x8xf32>
    %cst_125 = arith.constant 0.353553385 : f32
    %219 = vector.broadcast %cst_125 : f32 to vector<8x8xf32>
    %220 = arith.mulf %218, %219 : vector<8x8xf32>
    %cst_126 = arith.constant dense<0xFF800000> : vector<8xf32>
    %221 = vector.multi_reduction <maximumf>, %220, %cst_126 [1] : vector<8x8xf32> to vector<8xf32>
    %222 = vector.shape_cast %221 : vector<8xf32> to vector<8x1xf32>
    %223 = vector.broadcast %222 : vector<8x1xf32> to vector<8x8xf32>
    %224 = arith.subf %220, %223 : vector<8x8xf32>
    %225 = math.exp %224 : vector<8x8xf32>
    %cst_127 = arith.constant dense<0.000000e+00> : vector<8xf32>
    %226 = vector.multi_reduction <add>, %225, %cst_127 [1] : vector<8x8xf32> to vector<8xf32>
    %227 = vector.shape_cast %226 : vector<8xf32> to vector<8x1xf32>
    %228 = tpu.reciprocal %227 {approx = true} : vector<8x1xf32> -> vector<8x1xf32>
    %229 = vector.broadcast %228 : vector<8x1xf32> to vector<8x8xf32>
    %230 = arith.mulf %225, %229 : vector<8x8xf32>
    %cst_128 = arith.constant dense<0.000000e+00> : vector<8x32xf32>
    %231 = tpu.matmul %230, %217, %cst_128 {dimension_numbers = #tpu.dot_dimension_numbers<[1], [0], [0], [1], [0, 0, 1, 1], [], []>} : vector<8x8xf32>, vector<8x32xf32>, vector<8x32xf32> -> vector<8x32xf32>
    %232 = arith.addf %180, %197 : vector<8x32xf32>
    %233 = arith.addf %214, %231 : vector<8x32xf32>
    %234 = arith.addf %232, %233 : vector<8x32xf32>
    %235 = tpu.concatenate %163, %234 in 0 : vector<8x32xf32>, vector<8x32xf32> -> vector<16x32xf32>
    %c0_129 = arith.constant 0 : index
    %c0_130 = arith.constant 0 : index
    %236 = vector.load %arg11[%c0_129, %c0_130] : memref<1x32xf32, #tpu.memory_space<vmem>>, vector<1x32xf32>
    %237 = vector.broadcast %236 : vector<1x32xf32> to vector<16x32xf32>
    %238 = arith.addf %235, %237 : vector<16x32xf32>
    %239 = arith.addf %8, %238 : vector<16x32xf32>
    %c0_131 = arith.constant 0 : index
    %c0_132 = arith.constant 0 : index
    %240 = vector.load %arg12[%c0_131, %c0_132] : memref<1x32xf32, #tpu.memory_space<vmem>>, vector<1x32xf32>
    %c0_133 = arith.constant 0 : index
    %c0_134 = arith.constant 0 : index
    %241 = vector.load %arg13[%c0_133, %c0_134] : memref<1x32xf32, #tpu.memory_space<vmem>>, vector<1x32xf32>
    %cst_135 = arith.constant dense<0.000000e+00> : vector<16xf32>
    %242 = vector.multi_reduction <add>, %239, %cst_135 [1] : vector<16x32xf32> to vector<16xf32>
    %243 = vector.shape_cast %242 : vector<16xf32> to vector<16x1xf32>
    %cst_136 = arith.constant 3.200000e+01 : f32
    %244 = vector.broadcast %cst_136 : f32 to vector<16x1xf32>
    %245 = arith.divf %243, %244 : vector<16x1xf32>
    %246 = vector.broadcast %245 : vector<16x1xf32> to vector<16x32xf32>
    %247 = arith.subf %239, %246 : vector<16x32xf32>
    %248 = arith.mulf %247, %247 : vector<16x32xf32>
    %cst_137 = arith.constant dense<0.000000e+00> : vector<16xf32>
    %249 = vector.multi_reduction <add>, %248, %cst_137 [1] : vector<16x32xf32> to vector<16xf32>
    %250 = vector.shape_cast %249 : vector<16xf32> to vector<16x1xf32>
    %cst_138 = arith.constant 3.200000e+01 : f32
    %251 = vector.broadcast %cst_138 : f32 to vector<16x1xf32>
    %252 = arith.divf %250, %251 : vector<16x1xf32>
    %cst_139 = arith.constant 9.99999974E-6 : f32
    %253 = vector.broadcast %cst_139 : f32 to vector<16x1xf32>
    %254 = arith.addf %252, %253 : vector<16x1xf32>
    %255 = math.rsqrt %254 : vector<16x1xf32>
    %256 = vector.broadcast %255 : vector<16x1xf32> to vector<16x32xf32>
    %257 = arith.mulf %247, %256 : vector<16x32xf32>
    %258 = vector.broadcast %240 : vector<1x32xf32> to vector<16x32xf32>
    %259 = arith.mulf %257, %258 : vector<16x32xf32>
    %260 = vector.broadcast %241 : vector<1x32xf32> to vector<16x32xf32>
    %261 = arith.addf %259, %260 : vector<16x32xf32>
    %c0_140 = arith.constant 0 : index
    %c0_141 = arith.constant 0 : index
    %262 = vector.load %arg14[%c0_140, %c0_141] : memref<32x128xf32, #tpu.memory_space<vmem>>, vector<32x128xf32>
    %cst_142 = arith.constant dense<0.000000e+00> : vector<16x128xf32>
    %263 = tpu.matmul %261, %262, %cst_142 {dimension_numbers = #tpu.dot_dimension_numbers<[1], [0], [0], [1], [0, 0, 1, 1], [], []>} : vector<16x32xf32>, vector<32x128xf32>, vector<16x128xf32> -> vector<16x128xf32>
    %c0_143 = arith.constant 0 : index
    %c0_144 = arith.constant 0 : index
    %264 = vector.load %arg15[%c0_143, %c0_144] : memref<1x128xf32, #tpu.memory_space<vmem>>, vector<1x128xf32>
    %265 = vector.broadcast %264 : vector<1x128xf32> to vector<16x128xf32>
    %266 = arith.addf %263, %265 : vector<16x128xf32>
    %cst_145 = arith.constant 0.000000e+00 : f32
    %267 = vector.broadcast %cst_145 : f32 to vector<16x128xf32>
    %268 = arith.maximumf %266, %267 : vector<16x128xf32>
    %c0_146 = arith.constant 0 : index
    %c0_147 = arith.constant 0 : index
    %269 = vector.load %arg16[%c0_146, %c0_147] : memref<128x32xf32, #tpu.memory_space<vmem>>, vector<128x32xf32>
    %cst_148 = arith.constant dense<0.000000e+00> : vector<16x32xf32>
    %270 = tpu.matmul %268, %269, %cst_148 {dimension_numbers = #tpu.dot_dimension_numbers<[1], [0], [0], [1], [0, 0, 1, 1], [], []>} : vector<16x128xf32>, vector<128x32xf32>, vector<16x32xf32> -> vector<16x32xf32>
    %c0_149 = arith.constant 0 : index
    %c0_150 = arith.constant 0 : index
    %271 = vector.load %arg17[%c0_149, %c0_150] : memref<1x32xf32, #tpu.memory_space<vmem>>, vector<1x32xf32>
    %272 = vector.broadcast %271 : vector<1x32xf32> to vector<16x32xf32>
    %273 = arith.addf %270, %272 : vector<16x32xf32>
    %274 = arith.addf %261, %273 : vector<16x32xf32>
    %c0_151 = arith.constant 0 : index
    %c0_152 = arith.constant 0 : index
    %275 = vector.load %arg18[%c0_151, %c0_152] : memref<1x32xf32, #tpu.memory_space<vmem>>, vector<1x32xf32>
    %c0_153 = arith.constant 0 : index
    %c0_154 = arith.constant 0 : index
    %276 = vector.load %arg19[%c0_153, %c0_154] : memref<1x32xf32, #tpu.memory_space<vmem>>, vector<1x32xf32>
    %cst_155 = arith.constant dense<0.000000e+00> : vector<16xf32>
    %277 = vector.multi_reduction <add>, %274, %cst_155 [1] : vector<16x32xf32> to vector<16xf32>
    %278 = vector.shape_cast %277 : vector<16xf32> to vector<16x1xf32>
    %cst_156 = arith.constant 3.200000e+01 : f32
    %279 = vector.broadcast %cst_156 : f32 to vector<16x1xf32>
    %280 = arith.divf %278, %279 : vector<16x1xf32>
    %281 = vector.broadcast %280 : vector<16x1xf32> to vector<16x32xf32>
    %282 = arith.subf %274, %281 : vector<16x32xf32>
    %283 = arith.mulf %282, %282 : vector<16x32xf32>
    %cst_157 = arith.constant dense<0.000000e+00> : vector<16xf32>
    %284 = vector.multi_reduction <add>, %283, %cst_157 [1] : vector<16x32xf32> to vector<16xf32>
    %285 = vector.shape_cast %284 : vector<16xf32> to vector<16x1xf32>
    %cst_158 = arith.constant 3.200000e+01 : f32
    %286 = vector.broadcast %cst_158 : f32 to vector<16x1xf32>
    %287 = arith.divf %285, %286 : vector<16x1xf32>
    %cst_159 = arith.constant 9.99999974E-6 : f32
    %288 = vector.broadcast %cst_159 : f32 to vector<16x1xf32>
    %289 = arith.addf %287, %288 : vector<16x1xf32>
    %290 = math.rsqrt %289 : vector<16x1xf32>
    %291 = vector.broadcast %290 : vector<16x1xf32> to vector<16x32xf32>
    %292 = arith.mulf %282, %291 : vector<16x32xf32>
    %293 = vector.broadcast %275 : vector<1x32xf32> to vector<16x32xf32>
    %294 = arith.mulf %292, %293 : vector<16x32xf32>
    %295 = vector.broadcast %276 : vector<1x32xf32> to vector<16x32xf32>
    %296 = arith.addf %294, %295 : vector<16x32xf32>
    %c0_160 = arith.constant 0 : index
    %c0_161 = arith.constant 0 : index
    %c0_162 = arith.constant 0 : index
    %297 = vector.load %arg20[%c0_160, %c0_161, %c0_162] : memref<4x32x8xf32, #tpu.memory_space<vmem>>, vector<1x32x8xf32>
    %298 = vector.shape_cast %297 : vector<1x32x8xf32> to vector<32x8xf32>
    %cst_163 = arith.constant dense<0.000000e+00> : vector<16x8xf32>
    %299 = tpu.matmul %296, %298, %cst_163 {dimension_numbers = #tpu.dot_dimension_numbers<[1], [0], [0], [1], [0, 0, 1, 1], [], []>} : vector<16x32xf32>, vector<32x8xf32>, vector<16x8xf32> -> vector<16x8xf32>
    %c0_164 = arith.constant 0 : index
    %c0_165 = arith.constant 0 : index
    %c0_166 = arith.constant 0 : index
    %300 = vector.load %arg21[%c0_164, %c0_165, %c0_166] : memref<4x1x8xf32, #tpu.memory_space<vmem>>, vector<1x1x8xf32>
    %301 = vector.shape_cast %300 : vector<1x1x8xf32> to vector<1x8xf32>
    %302 = vector.broadcast %301 : vector<1x8xf32> to vector<16x8xf32>
    %303 = arith.addf %299, %302 : vector<16x8xf32>
    %c1_167 = arith.constant 1 : index
    %c0_168 = arith.constant 0 : index
    %c0_169 = arith.constant 0 : index
    %304 = vector.load %arg20[%c1_167, %c0_168, %c0_169] : memref<4x32x8xf32, #tpu.memory_space<vmem>>, vector<1x32x8xf32>
    %305 = vector.shape_cast %304 : vector<1x32x8xf32> to vector<32x8xf32>
    %cst_170 = arith.constant dense<0.000000e+00> : vector<16x8xf32>
    %306 = tpu.matmul %296, %305, %cst_170 {dimension_numbers = #tpu.dot_dimension_numbers<[1], [0], [0], [1], [0, 0, 1, 1], [], []>} : vector<16x32xf32>, vector<32x8xf32>, vector<16x8xf32> -> vector<16x8xf32>
    %c1_171 = arith.constant 1 : index
    %c0_172 = arith.constant 0 : index
    %c0_173 = arith.constant 0 : index
    %307 = vector.load %arg21[%c1_171, %c0_172, %c0_173] : memref<4x1x8xf32, #tpu.memory_space<vmem>>, vector<1x1x8xf32>
    %308 = vector.shape_cast %307 : vector<1x1x8xf32> to vector<1x8xf32>
    %309 = vector.broadcast %308 : vector<1x8xf32> to vector<16x8xf32>
    %310 = arith.addf %306, %309 : vector<16x8xf32>
    %c2_174 = arith.constant 2 : index
    %c0_175 = arith.constant 0 : index
    %c0_176 = arith.constant 0 : index
    %311 = vector.load %arg20[%c2_174, %c0_175, %c0_176] : memref<4x32x8xf32, #tpu.memory_space<vmem>>, vector<1x32x8xf32>
    %312 = vector.shape_cast %311 : vector<1x32x8xf32> to vector<32x8xf32>
    %cst_177 = arith.constant dense<0.000000e+00> : vector<16x8xf32>
    %313 = tpu.matmul %296, %312, %cst_177 {dimension_numbers = #tpu.dot_dimension_numbers<[1], [0], [0], [1], [0, 0, 1, 1], [], []>} : vector<16x32xf32>, vector<32x8xf32>, vector<16x8xf32> -> vector<16x8xf32>
    %c2_178 = arith.constant 2 : index
    %c0_179 = arith.constant 0 : index
    %c0_180 = arith.constant 0 : index
    %314 = vector.load %arg21[%c2_178, %c0_179, %c0_180] : memref<4x1x8xf32, #tpu.memory_space<vmem>>, vector<1x1x8xf32>
    %315 = vector.shape_cast %314 : vector<1x1x8xf32> to vector<1x8xf32>
    %316 = vector.broadcast %315 : vector<1x8xf32> to vector<16x8xf32>
    %317 = arith.addf %313, %316 : vector<16x8xf32>
    %c3_181 = arith.constant 3 : index
    %c0_182 = arith.constant 0 : index
    %c0_183 = arith.constant 0 : index
    %318 = vector.load %arg20[%c3_181, %c0_182, %c0_183] : memref<4x32x8xf32, #tpu.memory_space<vmem>>, vector<1x32x8xf32>
    %319 = vector.shape_cast %318 : vector<1x32x8xf32> to vector<32x8xf32>
    %cst_184 = arith.constant dense<0.000000e+00> : vector<16x8xf32>
    %320 = tpu.matmul %296, %319, %cst_184 {dimension_numbers = #tpu.dot_dimension_numbers<[1], [0], [0], [1], [0, 0, 1, 1], [], []>} : vector<16x32xf32>, vector<32x8xf32>, vector<16x8xf32> -> vector<16x8xf32>
    %c3_185 = arith.constant 3 : index
    %c0_186 = arith.constant 0 : index
    %c0_187 = arith.constant 0 : index
    %321 = vector.load %arg21[%c3_185, %c0_186, %c0_187] : memref<4x1x8xf32, #tpu.memory_space<vmem>>, vector<1x1x8xf32>
    %322 = vector.shape_cast %321 : vector<1x1x8xf32> to vector<1x8xf32>
    %323 = vector.broadcast %322 : vector<1x8xf32> to vector<16x8xf32>
    %324 = arith.addf %320, %323 : vector<16x8xf32>
    %c0_188 = arith.constant 0 : index
    %c0_189 = arith.constant 0 : index
    %c0_190 = arith.constant 0 : index
    %325 = vector.load %arg22[%c0_188, %c0_189, %c0_190] : memref<4x32x8xf32, #tpu.memory_space<vmem>>, vector<1x32x8xf32>
    %326 = vector.shape_cast %325 : vector<1x32x8xf32> to vector<32x8xf32>
    %cst_191 = arith.constant dense<0.000000e+00> : vector<16x8xf32>
    %327 = tpu.matmul %296, %326, %cst_191 {dimension_numbers = #tpu.dot_dimension_numbers<[1], [0], [0], [1], [0, 0, 1, 1], [], []>} : vector<16x32xf32>, vector<32x8xf32>, vector<16x8xf32> -> vector<16x8xf32>
    %c0_192 = arith.constant 0 : index
    %c0_193 = arith.constant 0 : index
    %c0_194 = arith.constant 0 : index
    %328 = vector.load %arg23[%c0_192, %c0_193, %c0_194] : memref<4x1x8xf32, #tpu.memory_space<vmem>>, vector<1x1x8xf32>
    %329 = vector.shape_cast %328 : vector<1x1x8xf32> to vector<1x8xf32>
    %330 = vector.broadcast %329 : vector<1x8xf32> to vector<16x8xf32>
    %331 = arith.addf %327, %330 : vector<16x8xf32>
    %c1_195 = arith.constant 1 : index
    %c0_196 = arith.constant 0 : index
    %c0_197 = arith.constant 0 : index
    %332 = vector.load %arg22[%c1_195, %c0_196, %c0_197] : memref<4x32x8xf32, #tpu.memory_space<vmem>>, vector<1x32x8xf32>
    %333 = vector.shape_cast %332 : vector<1x32x8xf32> to vector<32x8xf32>
    %cst_198 = arith.constant dense<0.000000e+00> : vector<16x8xf32>
    %334 = tpu.matmul %296, %333, %cst_198 {dimension_numbers = #tpu.dot_dimension_numbers<[1], [0], [0], [1], [0, 0, 1, 1], [], []>} : vector<16x32xf32>, vector<32x8xf32>, vector<16x8xf32> -> vector<16x8xf32>
    %c1_199 = arith.constant 1 : index
    %c0_200 = arith.constant 0 : index
    %c0_201 = arith.constant 0 : index
    %335 = vector.load %arg23[%c1_199, %c0_200, %c0_201] : memref<4x1x8xf32, #tpu.memory_space<vmem>>, vector<1x1x8xf32>
    %336 = vector.shape_cast %335 : vector<1x1x8xf32> to vector<1x8xf32>
    %337 = vector.broadcast %336 : vector<1x8xf32> to vector<16x8xf32>
    %338 = arith.addf %334, %337 : vector<16x8xf32>
    %c2_202 = arith.constant 2 : index
    %c0_203 = arith.constant 0 : index
    %c0_204 = arith.constant 0 : index
    %339 = vector.load %arg22[%c2_202, %c0_203, %c0_204] : memref<4x32x8xf32, #tpu.memory_space<vmem>>, vector<1x32x8xf32>
    %340 = vector.shape_cast %339 : vector<1x32x8xf32> to vector<32x8xf32>
    %cst_205 = arith.constant dense<0.000000e+00> : vector<16x8xf32>
    %341 = tpu.matmul %296, %340, %cst_205 {dimension_numbers = #tpu.dot_dimension_numbers<[1], [0], [0], [1], [0, 0, 1, 1], [], []>} : vector<16x32xf32>, vector<32x8xf32>, vector<16x8xf32> -> vector<16x8xf32>
    %c2_206 = arith.constant 2 : index
    %c0_207 = arith.constant 0 : index
    %c0_208 = arith.constant 0 : index
    %342 = vector.load %arg23[%c2_206, %c0_207, %c0_208] : memref<4x1x8xf32, #tpu.memory_space<vmem>>, vector<1x1x8xf32>
    %343 = vector.shape_cast %342 : vector<1x1x8xf32> to vector<1x8xf32>
    %344 = vector.broadcast %343 : vector<1x8xf32> to vector<16x8xf32>
    %345 = arith.addf %341, %344 : vector<16x8xf32>
    %c3_209 = arith.constant 3 : index
    %c0_210 = arith.constant 0 : index
    %c0_211 = arith.constant 0 : index
    %346 = vector.load %arg22[%c3_209, %c0_210, %c0_211] : memref<4x32x8xf32, #tpu.memory_space<vmem>>, vector<1x32x8xf32>
    %347 = vector.shape_cast %346 : vector<1x32x8xf32> to vector<32x8xf32>
    %cst_212 = arith.constant dense<0.000000e+00> : vector<16x8xf32>
    %348 = tpu.matmul %296, %347, %cst_212 {dimension_numbers = #tpu.dot_dimension_numbers<[1], [0], [0], [1], [0, 0, 1, 1], [], []>} : vector<16x32xf32>, vector<32x8xf32>, vector<16x8xf32> -> vector<16x8xf32>
    %c3_213 = arith.constant 3 : index
    %c0_214 = arith.constant 0 : index
    %c0_215 = arith.constant 0 : index
    %349 = vector.load %arg23[%c3_213, %c0_214, %c0_215] : memref<4x1x8xf32, #tpu.memory_space<vmem>>, vector<1x1x8xf32>
    %350 = vector.shape_cast %349 : vector<1x1x8xf32> to vector<1x8xf32>
    %351 = vector.broadcast %350 : vector<1x8xf32> to vector<16x8xf32>
    %352 = arith.addf %348, %351 : vector<16x8xf32>
    %c0_216 = arith.constant 0 : index
    %c0_217 = arith.constant 0 : index
    %c0_218 = arith.constant 0 : index
    %353 = vector.load %arg24[%c0_216, %c0_217, %c0_218] : memref<4x32x32xf32, #tpu.memory_space<vmem>>, vector<1x32x32xf32>
    %354 = vector.shape_cast %353 : vector<1x32x32xf32> to vector<32x32xf32>
    %cst_219 = arith.constant dense<0.000000e+00> : vector<16x32xf32>
    %355 = tpu.matmul %296, %354, %cst_219 {dimension_numbers = #tpu.dot_dimension_numbers<[1], [0], [0], [1], [0, 0, 1, 1], [], []>} : vector<16x32xf32>, vector<32x32xf32>, vector<16x32xf32> -> vector<16x32xf32>
    %c0_220 = arith.constant 0 : index
    %c0_221 = arith.constant 0 : index
    %c0_222 = arith.constant 0 : index
    %356 = vector.load %arg25[%c0_220, %c0_221, %c0_222] : memref<4x1x32xf32, #tpu.memory_space<vmem>>, vector<1x1x32xf32>
    %357 = vector.shape_cast %356 : vector<1x1x32xf32> to vector<1x32xf32>
    %358 = vector.broadcast %357 : vector<1x32xf32> to vector<16x32xf32>
    %359 = arith.addf %355, %358 : vector<16x32xf32>
    %c1_223 = arith.constant 1 : index
    %c0_224 = arith.constant 0 : index
    %c0_225 = arith.constant 0 : index
    %360 = vector.load %arg24[%c1_223, %c0_224, %c0_225] : memref<4x32x32xf32, #tpu.memory_space<vmem>>, vector<1x32x32xf32>
    %361 = vector.shape_cast %360 : vector<1x32x32xf32> to vector<32x32xf32>
    %cst_226 = arith.constant dense<0.000000e+00> : vector<16x32xf32>
    %362 = tpu.matmul %296, %361, %cst_226 {dimension_numbers = #tpu.dot_dimension_numbers<[1], [0], [0], [1], [0, 0, 1, 1], [], []>} : vector<16x32xf32>, vector<32x32xf32>, vector<16x32xf32> -> vector<16x32xf32>
    %c1_227 = arith.constant 1 : index
    %c0_228 = arith.constant 0 : index
    %c0_229 = arith.constant 0 : index
    %363 = vector.load %arg25[%c1_227, %c0_228, %c0_229] : memref<4x1x32xf32, #tpu.memory_space<vmem>>, vector<1x1x32xf32>
    %364 = vector.shape_cast %363 : vector<1x1x32xf32> to vector<1x32xf32>
    %365 = vector.broadcast %364 : vector<1x32xf32> to vector<16x32xf32>
    %366 = arith.addf %362, %365 : vector<16x32xf32>
    %c2_230 = arith.constant 2 : index
    %c0_231 = arith.constant 0 : index
    %c0_232 = arith.constant 0 : index
    %367 = vector.load %arg24[%c2_230, %c0_231, %c0_232] : memref<4x32x32xf32, #tpu.memory_space<vmem>>, vector<1x32x32xf32>
    %368 = vector.shape_cast %367 : vector<1x32x32xf32> to vector<32x32xf32>
    %cst_233 = arith.constant dense<0.000000e+00> : vector<16x32xf32>
    %369 = tpu.matmul %296, %368, %cst_233 {dimension_numbers = #tpu.dot_dimension_numbers<[1], [0], [0], [1], [0, 0, 1, 1], [], []>} : vector<16x32xf32>, vector<32x32xf32>, vector<16x32xf32> -> vector<16x32xf32>
    %c2_234 = arith.constant 2 : index
    %c0_235 = arith.constant 0 : index
    %c0_236 = arith.constant 0 : index
    %370 = vector.load %arg25[%c2_234, %c0_235, %c0_236] : memref<4x1x32xf32, #tpu.memory_space<vmem>>, vector<1x1x32xf32>
    %371 = vector.shape_cast %370 : vector<1x1x32xf32> to vector<1x32xf32>
    %372 = vector.broadcast %371 : vector<1x32xf32> to vector<16x32xf32>
    %373 = arith.addf %369, %372 : vector<16x32xf32>
    %c3_237 = arith.constant 3 : index
    %c0_238 = arith.constant 0 : index
    %c0_239 = arith.constant 0 : index
    %374 = vector.load %arg24[%c3_237, %c0_238, %c0_239] : memref<4x32x32xf32, #tpu.memory_space<vmem>>, vector<1x32x32xf32>
    %375 = vector.shape_cast %374 : vector<1x32x32xf32> to vector<32x32xf32>
    %cst_240 = arith.constant dense<0.000000e+00> : vector<16x32xf32>
    %376 = tpu.matmul %296, %375, %cst_240 {dimension_numbers = #tpu.dot_dimension_numbers<[1], [0], [0], [1], [0, 0, 1, 1], [], []>} : vector<16x32xf32>, vector<32x32xf32>, vector<16x32xf32> -> vector<16x32xf32>
    %c3_241 = arith.constant 3 : index
    %c0_242 = arith.constant 0 : index
    %c0_243 = arith.constant 0 : index
    %377 = vector.load %arg25[%c3_241, %c0_242, %c0_243] : memref<4x1x32xf32, #tpu.memory_space<vmem>>, vector<1x1x32xf32>
    %378 = vector.shape_cast %377 : vector<1x1x32xf32> to vector<1x32xf32>
    %379 = vector.broadcast %378 : vector<1x32xf32> to vector<16x32xf32>
    %380 = arith.addf %376, %379 : vector<16x32xf32>
    %381 = vector.extract_strided_slice %303 {offsets = [0, 0], sizes = [8, 8], strides = [1, 1]} : vector<16x8xf32> to vector<8x8xf32>
    %382 = vector.extract_strided_slice %331 {offsets = [0, 0], sizes = [8, 8], strides = [1, 1]} : vector<16x8xf32> to vector<8x8xf32>
    %383 = vector.extract_strided_slice %359 {offsets = [0, 0], sizes = [8, 32], strides = [1, 1]} : vector<16x32xf32> to vector<8x32xf32>
    %cst_244 = arith.constant dense<0.000000e+00> : vector<8x8xf32>
    %384 = tpu.matmul %381, %382, %cst_244 {dimension_numbers = #tpu.dot_dimension_numbers<[1], [1], [0], [0], [0, 0, 1, 0], [], []>} : vector<8x8xf32>, vector<8x8xf32>, vector<8x8xf32> -> vector<8x8xf32>
    %cst_245 = arith.constant 0.353553385 : f32
    %385 = vector.broadcast %cst_245 : f32 to vector<8x8xf32>
    %386 = arith.mulf %384, %385 : vector<8x8xf32>
    %cst_246 = arith.constant dense<0xFF800000> : vector<8xf32>
    %387 = vector.multi_reduction <maximumf>, %386, %cst_246 [1] : vector<8x8xf32> to vector<8xf32>
    %388 = vector.shape_cast %387 : vector<8xf32> to vector<8x1xf32>
    %389 = vector.broadcast %388 : vector<8x1xf32> to vector<8x8xf32>
    %390 = arith.subf %386, %389 : vector<8x8xf32>
    %391 = math.exp %390 : vector<8x8xf32>
    %cst_247 = arith.constant dense<0.000000e+00> : vector<8xf32>
    %392 = vector.multi_reduction <add>, %391, %cst_247 [1] : vector<8x8xf32> to vector<8xf32>
    %393 = vector.shape_cast %392 : vector<8xf32> to vector<8x1xf32>
    %394 = tpu.reciprocal %393 {approx = true} : vector<8x1xf32> -> vector<8x1xf32>
    %395 = vector.broadcast %394 : vector<8x1xf32> to vector<8x8xf32>
    %396 = arith.mulf %391, %395 : vector<8x8xf32>
    %cst_248 = arith.constant dense<0.000000e+00> : vector<8x32xf32>
    %397 = tpu.matmul %396, %383, %cst_248 {dimension_numbers = #tpu.dot_dimension_numbers<[1], [0], [0], [1], [0, 0, 1, 1], [], []>} : vector<8x8xf32>, vector<8x32xf32>, vector<8x32xf32> -> vector<8x32xf32>
    %398 = vector.extract_strided_slice %310 {offsets = [0, 0], sizes = [8, 8], strides = [1, 1]} : vector<16x8xf32> to vector<8x8xf32>
    %399 = vector.extract_strided_slice %338 {offsets = [0, 0], sizes = [8, 8], strides = [1, 1]} : vector<16x8xf32> to vector<8x8xf32>
    %400 = vector.extract_strided_slice %366 {offsets = [0, 0], sizes = [8, 32], strides = [1, 1]} : vector<16x32xf32> to vector<8x32xf32>
    %cst_249 = arith.constant dense<0.000000e+00> : vector<8x8xf32>
    %401 = tpu.matmul %398, %399, %cst_249 {dimension_numbers = #tpu.dot_dimension_numbers<[1], [1], [0], [0], [0, 0, 1, 0], [], []>} : vector<8x8xf32>, vector<8x8xf32>, vector<8x8xf32> -> vector<8x8xf32>
    %cst_250 = arith.constant 0.353553385 : f32
    %402 = vector.broadcast %cst_250 : f32 to vector<8x8xf32>
    %403 = arith.mulf %401, %402 : vector<8x8xf32>
    %cst_251 = arith.constant dense<0xFF800000> : vector<8xf32>
    %404 = vector.multi_reduction <maximumf>, %403, %cst_251 [1] : vector<8x8xf32> to vector<8xf32>
    %405 = vector.shape_cast %404 : vector<8xf32> to vector<8x1xf32>
    %406 = vector.broadcast %405 : vector<8x1xf32> to vector<8x8xf32>
    %407 = arith.subf %403, %406 : vector<8x8xf32>
    %408 = math.exp %407 : vector<8x8xf32>
    %cst_252 = arith.constant dense<0.000000e+00> : vector<8xf32>
    %409 = vector.multi_reduction <add>, %408, %cst_252 [1] : vector<8x8xf32> to vector<8xf32>
    %410 = vector.shape_cast %409 : vector<8xf32> to vector<8x1xf32>
    %411 = tpu.reciprocal %410 {approx = true} : vector<8x1xf32> -> vector<8x1xf32>
    %412 = vector.broadcast %411 : vector<8x1xf32> to vector<8x8xf32>
    %413 = arith.mulf %408, %412 : vector<8x8xf32>
    %cst_253 = arith.constant dense<0.000000e+00> : vector<8x32xf32>
    %414 = tpu.matmul %413, %400, %cst_253 {dimension_numbers = #tpu.dot_dimension_numbers<[1], [0], [0], [1], [0, 0, 1, 1], [], []>} : vector<8x8xf32>, vector<8x32xf32>, vector<8x32xf32> -> vector<8x32xf32>
    %415 = vector.extract_strided_slice %317 {offsets = [0, 0], sizes = [8, 8], strides = [1, 1]} : vector<16x8xf32> to vector<8x8xf32>
    %416 = vector.extract_strided_slice %345 {offsets = [0, 0], sizes = [8, 8], strides = [1, 1]} : vector<16x8xf32> to vector<8x8xf32>
    %417 = vector.extract_strided_slice %373 {offsets = [0, 0], sizes = [8, 32], strides = [1, 1]} : vector<16x32xf32> to vector<8x32xf32>
    %cst_254 = arith.constant dense<0.000000e+00> : vector<8x8xf32>
    %418 = tpu.matmul %415, %416, %cst_254 {dimension_numbers = #tpu.dot_dimension_numbers<[1], [1], [0], [0], [0, 0, 1, 0], [], []>} : vector<8x8xf32>, vector<8x8xf32>, vector<8x8xf32> -> vector<8x8xf32>
    %cst_255 = arith.constant 0.353553385 : f32
    %419 = vector.broadcast %cst_255 : f32 to vector<8x8xf32>
    %420 = arith.mulf %418, %419 : vector<8x8xf32>
    %cst_256 = arith.constant dense<0xFF800000> : vector<8xf32>
    %421 = vector.multi_reduction <maximumf>, %420, %cst_256 [1] : vector<8x8xf32> to vector<8xf32>
    %422 = vector.shape_cast %421 : vector<8xf32> to vector<8x1xf32>
    %423 = vector.broadcast %422 : vector<8x1xf32> to vector<8x8xf32>
    %424 = arith.subf %420, %423 : vector<8x8xf32>
    %425 = math.exp %424 : vector<8x8xf32>
    %cst_257 = arith.constant dense<0.000000e+00> : vector<8xf32>
    %426 = vector.multi_reduction <add>, %425, %cst_257 [1] : vector<8x8xf32> to vector<8xf32>
    %427 = vector.shape_cast %426 : vector<8xf32> to vector<8x1xf32>
    %428 = tpu.reciprocal %427 {approx = true} : vector<8x1xf32> -> vector<8x1xf32>
    %429 = vector.broadcast %428 : vector<8x1xf32> to vector<8x8xf32>
    %430 = arith.mulf %425, %429 : vector<8x8xf32>
    %cst_258 = arith.constant dense<0.000000e+00> : vector<8x32xf32>
    %431 = tpu.matmul %430, %417, %cst_258 {dimension_numbers = #tpu.dot_dimension_numbers<[1], [0], [0], [1], [0, 0, 1, 1], [], []>} : vector<8x8xf32>, vector<8x32xf32>, vector<8x32xf32> -> vector<8x32xf32>
    %432 = vector.extract_strided_slice %324 {offsets = [0, 0], sizes = [8, 8], strides = [1, 1]} : vector<16x8xf32> to vector<8x8xf32>
    %433 = vector.extract_strided_slice %352 {offsets = [0, 0], sizes = [8, 8], strides = [1, 1]} : vector<16x8xf32> to vector<8x8xf32>
    %434 = vector.extract_strided_slice %380 {offsets = [0, 0], sizes = [8, 32], strides = [1, 1]} : vector<16x32xf32> to vector<8x32xf32>
    %cst_259 = arith.constant dense<0.000000e+00> : vector<8x8xf32>
    %435 = tpu.matmul %432, %433, %cst_259 {dimension_numbers = #tpu.dot_dimension_numbers<[1], [1], [0], [0], [0, 0, 1, 0], [], []>} : vector<8x8xf32>, vector<8x8xf32>, vector<8x8xf32> -> vector<8x8xf32>
    %cst_260 = arith.constant 0.353553385 : f32
    %436 = vector.broadcast %cst_260 : f32 to vector<8x8xf32>
    %437 = arith.mulf %435, %436 : vector<8x8xf32>
    %cst_261 = arith.constant dense<0xFF800000> : vector<8xf32>
    %438 = vector.multi_reduction <maximumf>, %437, %cst_261 [1] : vector<8x8xf32> to vector<8xf32>
    %439 = vector.shape_cast %438 : vector<8xf32> to vector<8x1xf32>
    %440 = vector.broadcast %439 : vector<8x1xf32> to vector<8x8xf32>
    %441 = arith.subf %437, %440 : vector<8x8xf32>
    %442 = math.exp %441 : vector<8x8xf32>
    %cst_262 = arith.constant dense<0.000000e+00> : vector<8xf32>
    %443 = vector.multi_reduction <add>, %442, %cst_262 [1] : vector<8x8xf32> to vector<8xf32>
    %444 = vector.shape_cast %443 : vector<8xf32> to vector<8x1xf32>
    %445 = tpu.reciprocal %444 {approx = true} : vector<8x1xf32> -> vector<8x1xf32>
    %446 = vector.broadcast %445 : vector<8x1xf32> to vector<8x8xf32>
    %447 = arith.mulf %442, %446 : vector<8x8xf32>
    %cst_263 = arith.constant dense<0.000000e+00> : vector<8x32xf32>
    %448 = tpu.matmul %447, %434, %cst_263 {dimension_numbers = #tpu.dot_dimension_numbers<[1], [0], [0], [1], [0, 0, 1, 1], [], []>} : vector<8x8xf32>, vector<8x32xf32>, vector<8x32xf32> -> vector<8x32xf32>
    %449 = arith.addf %397, %414 : vector<8x32xf32>
    %450 = arith.addf %431, %448 : vector<8x32xf32>
    %451 = arith.addf %449, %450 : vector<8x32xf32>
    %452 = vector.extract_strided_slice %303 {offsets = [8, 0], sizes = [8, 8], strides = [1, 1]} : vector<16x8xf32> to vector<8x8xf32>
    %453 = vector.extract_strided_slice %331 {offsets = [8, 0], sizes = [8, 8], strides = [1, 1]} : vector<16x8xf32> to vector<8x8xf32>
    %454 = vector.extract_strided_slice %359 {offsets = [8, 0], sizes = [8, 32], strides = [1, 1]} : vector<16x32xf32> to vector<8x32xf32>
    %cst_264 = arith.constant dense<0.000000e+00> : vector<8x8xf32>
    %455 = tpu.matmul %452, %453, %cst_264 {dimension_numbers = #tpu.dot_dimension_numbers<[1], [1], [0], [0], [0, 0, 1, 0], [], []>} : vector<8x8xf32>, vector<8x8xf32>, vector<8x8xf32> -> vector<8x8xf32>
    %cst_265 = arith.constant 0.353553385 : f32
    %456 = vector.broadcast %cst_265 : f32 to vector<8x8xf32>
    %457 = arith.mulf %455, %456 : vector<8x8xf32>
    %cst_266 = arith.constant dense<0xFF800000> : vector<8xf32>
    %458 = vector.multi_reduction <maximumf>, %457, %cst_266 [1] : vector<8x8xf32> to vector<8xf32>
    %459 = vector.shape_cast %458 : vector<8xf32> to vector<8x1xf32>
    %460 = vector.broadcast %459 : vector<8x1xf32> to vector<8x8xf32>
    %461 = arith.subf %457, %460 : vector<8x8xf32>
    %462 = math.exp %461 : vector<8x8xf32>
    %cst_267 = arith.constant dense<0.000000e+00> : vector<8xf32>
    %463 = vector.multi_reduction <add>, %462, %cst_267 [1] : vector<8x8xf32> to vector<8xf32>
    %464 = vector.shape_cast %463 : vector<8xf32> to vector<8x1xf32>
    %465 = tpu.reciprocal %464 {approx = true} : vector<8x1xf32> -> vector<8x1xf32>
    %466 = vector.broadcast %465 : vector<8x1xf32> to vector<8x8xf32>
    %467 = arith.mulf %462, %466 : vector<8x8xf32>
    %cst_268 = arith.constant dense<0.000000e+00> : vector<8x32xf32>
    %468 = tpu.matmul %467, %454, %cst_268 {dimension_numbers = #tpu.dot_dimension_numbers<[1], [0], [0], [1], [0, 0, 1, 1], [], []>} : vector<8x8xf32>, vector<8x32xf32>, vector<8x32xf32> -> vector<8x32xf32>
    %469 = vector.extract_strided_slice %310 {offsets = [8, 0], sizes = [8, 8], strides = [1, 1]} : vector<16x8xf32> to vector<8x8xf32>
    %470 = vector.extract_strided_slice %338 {offsets = [8, 0], sizes = [8, 8], strides = [1, 1]} : vector<16x8xf32> to vector<8x8xf32>
    %471 = vector.extract_strided_slice %366 {offsets = [8, 0], sizes = [8, 32], strides = [1, 1]} : vector<16x32xf32> to vector<8x32xf32>
    %cst_269 = arith.constant dense<0.000000e+00> : vector<8x8xf32>
    %472 = tpu.matmul %469, %470, %cst_269 {dimension_numbers = #tpu.dot_dimension_numbers<[1], [1], [0], [0], [0, 0, 1, 0], [], []>} : vector<8x8xf32>, vector<8x8xf32>, vector<8x8xf32> -> vector<8x8xf32>
    %cst_270 = arith.constant 0.353553385 : f32
    %473 = vector.broadcast %cst_270 : f32 to vector<8x8xf32>
    %474 = arith.mulf %472, %473 : vector<8x8xf32>
    %cst_271 = arith.constant dense<0xFF800000> : vector<8xf32>
    %475 = vector.multi_reduction <maximumf>, %474, %cst_271 [1] : vector<8x8xf32> to vector<8xf32>
    %476 = vector.shape_cast %475 : vector<8xf32> to vector<8x1xf32>
    %477 = vector.broadcast %476 : vector<8x1xf32> to vector<8x8xf32>
    %478 = arith.subf %474, %477 : vector<8x8xf32>
    %479 = math.exp %478 : vector<8x8xf32>
    %cst_272 = arith.constant dense<0.000000e+00> : vector<8xf32>
    %480 = vector.multi_reduction <add>, %479, %cst_272 [1] : vector<8x8xf32> to vector<8xf32>
    %481 = vector.shape_cast %480 : vector<8xf32> to vector<8x1xf32>
    %482 = tpu.reciprocal %481 {approx = true} : vector<8x1xf32> -> vector<8x1xf32>
    %483 = vector.broadcast %482 : vector<8x1xf32> to vector<8x8xf32>
    %484 = arith.mulf %479, %483 : vector<8x8xf32>
    %cst_273 = arith.constant dense<0.000000e+00> : vector<8x32xf32>
    %485 = tpu.matmul %484, %471, %cst_273 {dimension_numbers = #tpu.dot_dimension_numbers<[1], [0], [0], [1], [0, 0, 1, 1], [], []>} : vector<8x8xf32>, vector<8x32xf32>, vector<8x32xf32> -> vector<8x32xf32>
    %486 = vector.extract_strided_slice %317 {offsets = [8, 0], sizes = [8, 8], strides = [1, 1]} : vector<16x8xf32> to vector<8x8xf32>
    %487 = vector.extract_strided_slice %345 {offsets = [8, 0], sizes = [8, 8], strides = [1, 1]} : vector<16x8xf32> to vector<8x8xf32>
    %488 = vector.extract_strided_slice %373 {offsets = [8, 0], sizes = [8, 32], strides = [1, 1]} : vector<16x32xf32> to vector<8x32xf32>
    %cst_274 = arith.constant dense<0.000000e+00> : vector<8x8xf32>
    %489 = tpu.matmul %486, %487, %cst_274 {dimension_numbers = #tpu.dot_dimension_numbers<[1], [1], [0], [0], [0, 0, 1, 0], [], []>} : vector<8x8xf32>, vector<8x8xf32>, vector<8x8xf32> -> vector<8x8xf32>
    %cst_275 = arith.constant 0.353553385 : f32
    %490 = vector.broadcast %cst_275 : f32 to vector<8x8xf32>
    %491 = arith.mulf %489, %490 : vector<8x8xf32>
    %cst_276 = arith.constant dense<0xFF800000> : vector<8xf32>
    %492 = vector.multi_reduction <maximumf>, %491, %cst_276 [1] : vector<8x8xf32> to vector<8xf32>
    %493 = vector.shape_cast %492 : vector<8xf32> to vector<8x1xf32>
    %494 = vector.broadcast %493 : vector<8x1xf32> to vector<8x8xf32>
    %495 = arith.subf %491, %494 : vector<8x8xf32>
    %496 = math.exp %495 : vector<8x8xf32>
    %cst_277 = arith.constant dense<0.000000e+00> : vector<8xf32>
    %497 = vector.multi_reduction <add>, %496, %cst_277 [1] : vector<8x8xf32> to vector<8xf32>
    %498 = vector.shape_cast %497 : vector<8xf32> to vector<8x1xf32>
    %499 = tpu.reciprocal %498 {approx = true} : vector<8x1xf32> -> vector<8x1xf32>
    %500 = vector.broadcast %499 : vector<8x1xf32> to vector<8x8xf32>
    %501 = arith.mulf %496, %500 : vector<8x8xf32>
    %cst_278 = arith.constant dense<0.000000e+00> : vector<8x32xf32>
    %502 = tpu.matmul %501, %488, %cst_278 {dimension_numbers = #tpu.dot_dimension_numbers<[1], [0], [0], [1], [0, 0, 1, 1], [], []>} : vector<8x8xf32>, vector<8x32xf32>, vector<8x32xf32> -> vector<8x32xf32>
    %503 = vector.extract_strided_slice %324 {offsets = [8, 0], sizes = [8, 8], strides = [1, 1]} : vector<16x8xf32> to vector<8x8xf32>
    %504 = vector.extract_strided_slice %352 {offsets = [8, 0], sizes = [8, 8], strides = [1, 1]} : vector<16x8xf32> to vector<8x8xf32>
    %505 = vector.extract_strided_slice %380 {offsets = [8, 0], sizes = [8, 32], strides = [1, 1]} : vector<16x32xf32> to vector<8x32xf32>
    %cst_279 = arith.constant dense<0.000000e+00> : vector<8x8xf32>
    %506 = tpu.matmul %503, %504, %cst_279 {dimension_numbers = #tpu.dot_dimension_numbers<[1], [1], [0], [0], [0, 0, 1, 0], [], []>} : vector<8x8xf32>, vector<8x8xf32>, vector<8x8xf32> -> vector<8x8xf32>
    %cst_280 = arith.constant 0.353553385 : f32
    %507 = vector.broadcast %cst_280 : f32 to vector<8x8xf32>
    %508 = arith.mulf %506, %507 : vector<8x8xf32>
    %cst_281 = arith.constant dense<0xFF800000> : vector<8xf32>
    %509 = vector.multi_reduction <maximumf>, %508, %cst_281 [1] : vector<8x8xf32> to vector<8xf32>
    %510 = vector.shape_cast %509 : vector<8xf32> to vector<8x1xf32>
    %511 = vector.broadcast %510 : vector<8x1xf32> to vector<8x8xf32>
    %512 = arith.subf %508, %511 : vector<8x8xf32>
    %513 = math.exp %512 : vector<8x8xf32>
    %cst_282 = arith.constant dense<0.000000e+00> : vector<8xf32>
    %514 = vector.multi_reduction <add>, %513, %cst_282 [1] : vector<8x8xf32> to vector<8xf32>
    %515 = vector.shape_cast %514 : vector<8xf32> to vector<8x1xf32>
    %516 = tpu.reciprocal %515 {approx = true} : vector<8x1xf32> -> vector<8x1xf32>
    %517 = vector.broadcast %516 : vector<8x1xf32> to vector<8x8xf32>
    %518 = arith.mulf %513, %517 : vector<8x8xf32>
    %cst_283 = arith.constant dense<0.000000e+00> : vector<8x32xf32>
    %519 = tpu.matmul %518, %505, %cst_283 {dimension_numbers = #tpu.dot_dimension_numbers<[1], [0], [0], [1], [0, 0, 1, 1], [], []>} : vector<8x8xf32>, vector<8x32xf32>, vector<8x32xf32> -> vector<8x32xf32>
    %520 = arith.addf %468, %485 : vector<8x32xf32>
    %521 = arith.addf %502, %519 : vector<8x32xf32>
    %522 = arith.addf %520, %521 : vector<8x32xf32>
    %523 = tpu.concatenate %451, %522 in 0 : vector<8x32xf32>, vector<8x32xf32> -> vector<16x32xf32>
    %c0_284 = arith.constant 0 : index
    %c0_285 = arith.constant 0 : index
    %524 = vector.load %arg26[%c0_284, %c0_285] : memref<1x32xf32, #tpu.memory_space<vmem>>, vector<1x32xf32>
    %525 = vector.broadcast %524 : vector<1x32xf32> to vector<16x32xf32>
    %526 = arith.addf %523, %525 : vector<16x32xf32>
    %527 = arith.addf %296, %526 : vector<16x32xf32>
    %c0_286 = arith.constant 0 : index
    %c0_287 = arith.constant 0 : index
    %528 = vector.load %arg27[%c0_286, %c0_287] : memref<1x32xf32, #tpu.memory_space<vmem>>, vector<1x32xf32>
    %c0_288 = arith.constant 0 : index
    %c0_289 = arith.constant 0 : index
    %529 = vector.load %arg28[%c0_288, %c0_289] : memref<1x32xf32, #tpu.memory_space<vmem>>, vector<1x32xf32>
    %cst_290 = arith.constant dense<0.000000e+00> : vector<16xf32>
    %530 = vector.multi_reduction <add>, %527, %cst_290 [1] : vector<16x32xf32> to vector<16xf32>
    %531 = vector.shape_cast %530 : vector<16xf32> to vector<16x1xf32>
    %cst_291 = arith.constant 3.200000e+01 : f32
    %532 = vector.broadcast %cst_291 : f32 to vector<16x1xf32>
    %533 = arith.divf %531, %532 : vector<16x1xf32>
    %534 = vector.broadcast %533 : vector<16x1xf32> to vector<16x32xf32>
    %535 = arith.subf %527, %534 : vector<16x32xf32>
    %536 = arith.mulf %535, %535 : vector<16x32xf32>
    %cst_292 = arith.constant dense<0.000000e+00> : vector<16xf32>
    %537 = vector.multi_reduction <add>, %536, %cst_292 [1] : vector<16x32xf32> to vector<16xf32>
    %538 = vector.shape_cast %537 : vector<16xf32> to vector<16x1xf32>
    %cst_293 = arith.constant 3.200000e+01 : f32
    %539 = vector.broadcast %cst_293 : f32 to vector<16x1xf32>
    %540 = arith.divf %538, %539 : vector<16x1xf32>
    %cst_294 = arith.constant 9.99999974E-6 : f32
    %541 = vector.broadcast %cst_294 : f32 to vector<16x1xf32>
    %542 = arith.addf %540, %541 : vector<16x1xf32>
    %543 = math.rsqrt %542 : vector<16x1xf32>
    %544 = vector.broadcast %543 : vector<16x1xf32> to vector<16x32xf32>
    %545 = arith.mulf %535, %544 : vector<16x32xf32>
    %546 = vector.broadcast %528 : vector<1x32xf32> to vector<16x32xf32>
    %547 = arith.mulf %545, %546 : vector<16x32xf32>
    %548 = vector.broadcast %529 : vector<1x32xf32> to vector<16x32xf32>
    %549 = arith.addf %547, %548 : vector<16x32xf32>
    %c0_295 = arith.constant 0 : index
    %c0_296 = arith.constant 0 : index
    %550 = vector.load %arg29[%c0_295, %c0_296] : memref<32x128xf32, #tpu.memory_space<vmem>>, vector<32x128xf32>
    %cst_297 = arith.constant dense<0.000000e+00> : vector<16x128xf32>
    %551 = tpu.matmul %549, %550, %cst_297 {dimension_numbers = #tpu.dot_dimension_numbers<[1], [0], [0], [1], [0, 0, 1, 1], [], []>} : vector<16x32xf32>, vector<32x128xf32>, vector<16x128xf32> -> vector<16x128xf32>
    %c0_298 = arith.constant 0 : index
    %c0_299 = arith.constant 0 : index
    %552 = vector.load %arg30[%c0_298, %c0_299] : memref<1x128xf32, #tpu.memory_space<vmem>>, vector<1x128xf32>
    %553 = vector.broadcast %552 : vector<1x128xf32> to vector<16x128xf32>
    %554 = arith.addf %551, %553 : vector<16x128xf32>
    %cst_300 = arith.constant 0.000000e+00 : f32
    %555 = vector.broadcast %cst_300 : f32 to vector<16x128xf32>
    %556 = arith.maximumf %554, %555 : vector<16x128xf32>
    %c0_301 = arith.constant 0 : index
    %c0_302 = arith.constant 0 : index
    %557 = vector.load %arg31[%c0_301, %c0_302] : memref<128x32xf32, #tpu.memory_space<vmem>>, vector<128x32xf32>
    %cst_303 = arith.constant dense<0.000000e+00> : vector<16x32xf32>
    %558 = tpu.matmul %556, %557, %cst_303 {dimension_numbers = #tpu.dot_dimension_numbers<[1], [0], [0], [1], [0, 0, 1, 1], [], []>} : vector<16x128xf32>, vector<128x32xf32>, vector<16x32xf32> -> vector<16x32xf32>
    %c0_304 = arith.constant 0 : index
    %c0_305 = arith.constant 0 : index
    %559 = vector.load %arg32[%c0_304, %c0_305] : memref<1x32xf32, #tpu.memory_space<vmem>>, vector<1x32xf32>
    %560 = vector.broadcast %559 : vector<1x32xf32> to vector<16x32xf32>
    %561 = arith.addf %558, %560 : vector<16x32xf32>
    %562 = arith.addf %549, %561 : vector<16x32xf32>
    %c0_306 = arith.constant 0 : index
    %c0_307 = arith.constant 0 : index
    %563 = vector.load %arg33[%c0_306, %c0_307] : memref<1x32xf32, #tpu.memory_space<vmem>>, vector<1x32xf32>
    %c0_308 = arith.constant 0 : index
    %c0_309 = arith.constant 0 : index
    %564 = vector.load %arg34[%c0_308, %c0_309] : memref<1x32xf32, #tpu.memory_space<vmem>>, vector<1x32xf32>
    %cst_310 = arith.constant dense<0.000000e+00> : vector<16xf32>
    %565 = vector.multi_reduction <add>, %562, %cst_310 [1] : vector<16x32xf32> to vector<16xf32>
    %566 = vector.shape_cast %565 : vector<16xf32> to vector<16x1xf32>
    %cst_311 = arith.constant 3.200000e+01 : f32
    %567 = vector.broadcast %cst_311 : f32 to vector<16x1xf32>
    %568 = arith.divf %566, %567 : vector<16x1xf32>
    %569 = vector.broadcast %568 : vector<16x1xf32> to vector<16x32xf32>
    %570 = arith.subf %562, %569 : vector<16x32xf32>
    %571 = arith.mulf %570, %570 : vector<16x32xf32>
    %cst_312 = arith.constant dense<0.000000e+00> : vector<16xf32>
    %572 = vector.multi_reduction <add>, %571, %cst_312 [1] : vector<16x32xf32> to vector<16xf32>
    %573 = vector.shape_cast %572 : vector<16xf32> to vector<16x1xf32>
    %cst_313 = arith.constant 3.200000e+01 : f32
    %574 = vector.broadcast %cst_313 : f32 to vector<16x1xf32>
    %575 = arith.divf %573, %574 : vector<16x1xf32>
    %cst_314 = arith.constant 9.99999974E-6 : f32
    %576 = vector.broadcast %cst_314 : f32 to vector<16x1xf32>
    %577 = arith.addf %575, %576 : vector<16x1xf32>
    %578 = math.rsqrt %577 : vector<16x1xf32>
    %579 = vector.broadcast %578 : vector<16x1xf32> to vector<16x32xf32>
    %580 = arith.mulf %570, %579 : vector<16x32xf32>
    %581 = vector.broadcast %563 : vector<1x32xf32> to vector<16x32xf32>
    %582 = arith.mulf %580, %581 : vector<16x32xf32>
    %583 = vector.broadcast %564 : vector<1x32xf32> to vector<16x32xf32>
    %584 = arith.addf %582, %583 : vector<16x32xf32>
    %c0_315 = arith.constant 0 : index
    %c0_316 = arith.constant 0 : index
    %585 = vector.load %arg35[%c0_315, %c0_316] : memref<32x16xf32, #tpu.memory_space<vmem>>, vector<32x16xf32>
    %cst_317 = arith.constant dense<0.000000e+00> : vector<16x16xf32>
    %586 = tpu.matmul %584, %585, %cst_317 {dimension_numbers = #tpu.dot_dimension_numbers<[1], [0], [0], [1], [0, 0, 1, 1], [], []>} : vector<16x32xf32>, vector<32x16xf32>, vector<16x16xf32> -> vector<16x16xf32>
    %c0_318 = arith.constant 0 : index
    %c0_319 = arith.constant 0 : index
    %587 = vector.load %arg36[%c0_318, %c0_319] : memref<1x16xf32, #tpu.memory_space<vmem>>, vector<1x16xf32>
    %588 = vector.broadcast %587 : vector<1x16xf32> to vector<16x16xf32>
    %589 = arith.addf %586, %588 : vector<16x16xf32>
    %590 = vector.shape_cast %589 : vector<16x16xf32> to vector<2x8x16xf32>
    %c0_320 = arith.constant 0 : index
    %c0_321 = arith.constant 0 : index
    %c0_322 = arith.constant 0 : index
    %591 = vector.load %arg37[%c0_320, %c0_321, %c0_322] : memref<2x8x16xf32, #tpu.memory_space<vmem>>, vector<2x8x16xf32>
    tpu.vector_store %arg37[%c0_320, %c0_321, %c0_322], %590 {strides = array<i32>} : memref<2x8x16xf32, #tpu.memory_space<vmem>>, vector<2x8x16xf32>,
    return
  }
  func.func @transform_0(%arg0: i32) -> (i32, i32, i32) {
    %c0_i32 = arith.constant 0 : i32
    %c0_i32_0 = arith.constant 0 : i32
    %c0_i32_1 = arith.constant 0 : i32
    return %arg0, %c0_i32, %c0_i32_0 : i32, i32, i32
  }
  func.func @transform_1(%arg0: i32) -> (i32, i32) {
    %c0_i32 = arith.constant 0 : i32
    %c0_i32_0 = arith.constant 0 : i32
    %c0_i32_1 = arith.constant 0 : i32
    return %c0_i32, %c0_i32_0 : i32, i32
  }
  func.func @transform_2(%arg0: i32) -> (i32, i32) {
    %c0_i32 = arith.constant 0 : i32
    %c0_i32_0 = arith.constant 0 : i32
    %c0_i32_1 = arith.constant 0 : i32
    return %c0_i32, %c0_i32_0 : i32, i32
  }
  func.func @transform_3(%arg0: i32) -> (i32, i32) {
    %c0_i32 = arith.constant 0 : i32
    %c0_i32_0 = arith.constant 0 : i32
    %c0_i32_1 = arith.constant 0 : i32
    return %c0_i32, %c0_i32_0 : i32, i32
  }
  func.func @transform_4(%arg0: i32) -> (i32, i32, i32) {
    %c0_i32 = arith.constant 0 : i32
    %c0_i32_0 = arith.constant 0 : i32
    %c0_i32_1 = arith.constant 0 : i32
    %c0_i32_2 = arith.constant 0 : i32
    return %c0_i32, %c0_i32_0, %c0_i32_1 : i32, i32, i32
  }
  func.func @transform_5(%arg0: i32) -> (i32, i32, i32) {
    %c0_i32 = arith.constant 0 : i32
    %c0_i32_0 = arith.constant 0 : i32
    %c0_i32_1 = arith.constant 0 : i32
    %c0_i32_2 = arith.constant 0 : i32
    return %c0_i32, %c0_i32_0, %c0_i32_1 : i32, i32, i32
  }
  func.func @transform_6(%arg0: i32) -> (i32, i32, i32) {
    %c0_i32 = arith.constant 0 : i32
    %c0_i32_0 = arith.constant 0 : i32
    %c0_i32_1 = arith.constant 0 : i32
    %c0_i32_2 = arith.constant 0 : i32
    return %c0_i32, %c0_i32_0, %c0_i32_1 : i32, i32, i32
  }
  func.func @transform_7(%arg0: i32) -> (i32, i32, i32) {
    %c0_i32 = arith.constant 0 : i32
    %c0_i32_0 = arith.constant 0 : i32
    %c0_i32_1 = arith.constant 0 : i32
    %c0_i32_2 = arith.constant 0 : i32
    return %c0_i32, %c0_i32_0, %c0_i32_1 : i32, i32, i32
  }
  func.func @transform_8(%arg0: i32) -> (i32, i32, i32) {
    %c0_i32 = arith.constant 0 : i32
    %c0_i32_0 = arith.constant 0 : i32
    %c0_i32_1 = arith.constant 0 : i32
    %c0_i32_2 = arith.constant 0 : i32
    return %c0_i32, %c0_i32_0, %c0_i32_1 : i32, i32, i32
  }
  func.func @transform_9(%arg0: i32) -> (i32, i32, i32) {
    %c0_i32 = arith.constant 0 : i32
    %c0_i32_0 = arith.constant 0 : i32
    %c0_i32_1 = arith.constant 0 : i32
    %c0_i32_2 = arith.constant 0 : i32
    return %c0_i32, %c0_i32_0, %c0_i32_1 : i32, i32, i32
  }
  func.func @transform_10(%arg0: i32) -> (i32, i32) {
    %c0_i32 = arith.constant 0 : i32
    %c0_i32_0 = arith.constant 0 : i32
    %c0_i32_1 = arith.constant 0 : i32
    return %c0_i32, %c0_i32_0 : i32, i32
  }
  func.func @transform_11(%arg0: i32) -> (i32, i32) {
    %c0_i32 = arith.constant 0 : i32
    %c0_i32_0 = arith.constant 0 : i32
    %c0_i32_1 = arith.constant 0 : i32
    return %c0_i32, %c0_i32_0 : i32, i32
  }
  func.func @transform_12(%arg0: i32) -> (i32, i32) {
    %c0_i32 = arith.constant 0 : i32
    %c0_i32_0 = arith.constant 0 : i32
    %c0_i32_1 = arith.constant 0 : i32
    return %c0_i32, %c0_i32_0 : i32, i32
  }
  func.func @transform_13(%arg0: i32) -> (i32, i32) {
    %c0_i32 = arith.constant 0 : i32
    %c0_i32_0 = arith.constant 0 : i32
    %c0_i32_1 = arith.constant 0 : i32
    return %c0_i32, %c0_i32_0 : i32, i32
  }
  func.func @transform_14(%arg0: i32) -> (i32, i32) {
    %c0_i32 = arith.constant 0 : i32
    %c0_i32_0 = arith.constant 0 : i32
    %c0_i32_1 = arith.constant 0 : i32
    return %c0_i32, %c0_i32_0 : i32, i32
  }
  func.func @transform_15(%arg0: i32) -> (i32, i32) {
    %c0_i32 = arith.constant 0 : i32
    %c0_i32_0 = arith.constant 0 : i32
    %c0_i32_1 = arith.constant 0 : i32
    return %c0_i32, %c0_i32_0 : i32, i32
  }
  func.func @transform_16(%arg0: i32) -> (i32, i32) {
    %c0_i32 = arith.constant 0 : i32
    %c0_i32_0 = arith.constant 0 : i32
    %c0_i32_1 = arith.constant 0 : i32
    return %c0_i32, %c0_i32_0 : i32, i32
  }
  func.func @transform_17(%arg0: i32) -> (i32, i32) {
    %c0_i32 = arith.constant 0 : i32
    %c0_i32_0 = arith.constant 0 : i32
    %c0_i32_1 = arith.constant 0 : i32
    return %c0_i32, %c0_i32_0 : i32, i32
  }
  func.func @transform_18(%arg0: i32) -> (i32, i32) {
    %c0_i32 = arith.constant 0 : i32
    %c0_i32_0 = arith.constant 0 : i32
    %c0_i32_1 = arith.constant 0 : i32
    return %c0_i32, %c0_i32_0 : i32, i32
  }
  func.func @transform_19(%arg0: i32) -> (i32, i32, i32) {
    %c0_i32 = arith.constant 0 : i32
    %c0_i32_0 = arith.constant 0 : i32
    %c0_i32_1 = arith.constant 0 : i32
    %c0_i32_2 = arith.constant 0 : i32
    return %c0_i32, %c0_i32_0, %c0_i32_1 : i32, i32, i32
  }
  func.func @transform_20(%arg0: i32) -> (i32, i32, i32) {
    %c0_i32 = arith.constant 0 : i32
    %c0_i32_0 = arith.constant 0 : i32
    %c0_i32_1 = arith.constant 0 : i32
    %c0_i32_2 = arith.constant 0 : i32
    return %c0_i32, %c0_i32_0, %c0_i32_1 : i32, i32, i32
  }
  func.func @transform_21(%arg0: i32) -> (i32, i32, i32) {
    %c0_i32 = arith.constant 0 : i32
    %c0_i32_0 = arith.constant 0 : i32
    %c0_i32_1 = arith.constant 0 : i32
    %c0_i32_2 = arith.constant 0 : i32
    return %c0_i32, %c0_i32_0, %c0_i32_1 : i32, i32, i32
  }
  func.func @transform_22(%arg0: i32) -> (i32, i32, i32) {
    %c0_i32 = arith.constant 0 : i32
    %c0_i32_0 = arith.constant 0 : i32
    %c0_i32_1 = arith.constant 0 : i32
    %c0_i32_2 = arith.constant 0 : i32
    return %c0_i32, %c0_i32_0, %c0_i32_1 : i32, i32, i32
  }
  func.func @transform_23(%arg0: i32) -> (i32, i32, i32) {
    %c0_i32 = arith.constant 0 : i32
    %c0_i32_0 = arith.constant 0 : i32
    %c0_i32_1 = arith.constant 0 : i32
    %c0_i32_2 = arith.constant 0 : i32
    return %c0_i32, %c0_i32_0, %c0_i32_1 : i32, i32, i32
  }
  func.func @transform_24(%arg0: i32) -> (i32, i32, i32) {
    %c0_i32 = arith.constant 0 : i32
    %c0_i32_0 = arith.constant 0 : i32
    %c0_i32_1 = arith.constant 0 : i32
    %c0_i32_2 = arith.constant 0 : i32
    return %c0_i32, %c0_i32_0, %c0_i32_1 : i32, i32, i32
  }
  func.func @transform_25(%arg0: i32) -> (i32, i32) {
    %c0_i32 = arith.constant 0 : i32
    %c0_i32_0 = arith.constant 0 : i32
    %c0_i32_1 = arith.constant 0 : i32
    return %c0_i32, %c0_i32_0 : i32, i32
  }
  func.func @transform_26(%arg0: i32) -> (i32, i32) {
    %c0_i32 = arith.constant 0 : i32
    %c0_i32_0 = arith.constant 0 : i32
    %c0_i32_1 = arith.constant 0 : i32
    return %c0_i32, %c0_i32_0 : i32, i32
  }
  func.func @transform_27(%arg0: i32) -> (i32, i32) {
    %c0_i32 = arith.constant 0 : i32
    %c0_i32_0 = arith.constant 0 : i32
    %c0_i32_1 = arith.constant 0 : i32
    return %c0_i32, %c0_i32_0 : i32, i32
  }
  func.func @transform_28(%arg0: i32) -> (i32, i32) {
    %c0_i32 = arith.constant 0 : i32
    %c0_i32_0 = arith.constant 0 : i32
    %c0_i32_1 = arith.constant 0 : i32
    return %c0_i32, %c0_i32_0 : i32, i32
  }
  func.func @transform_29(%arg0: i32) -> (i32, i32) {
    %c0_i32 = arith.constant 0 : i32
    %c0_i32_0 = arith.constant 0 : i32
    %c0_i32_1 = arith.constant 0 : i32
    return %c0_i32, %c0_i32_0 : i32, i32
  }
  func.func @transform_30(%arg0: i32) -> (i32, i32) {
    %c0_i32 = arith.constant 0 : i32
    %c0_i32_0 = arith.constant 0 : i32
    %c0_i32_1 = arith.constant 0 : i32
    return %c0_i32, %c0_i32_0 : i32, i32
  }
  func.func @transform_31(%arg0: i32) -> (i32, i32) {
    %c0_i32 = arith.constant 0 : i32
    %c0_i32_0 = arith.constant 0 : i32
    %c0_i32_1 = arith.constant 0 : i32
    return %c0_i32, %c0_i32_0 : i32, i32
  }
  func.func @transform_32(%arg0: i32) -> (i32, i32) {
    %c0_i32 = arith.constant 0 : i32
    %c0_i32_0 = arith.constant 0 : i32
    %c0_i32_1 = arith.constant 0 : i32
    return %c0_i32, %c0_i32_0 : i32, i32
  }
  func.func @transform_33(%arg0: i32) -> (i32, i32) {
    %c0_i32 = arith.constant 0 : i32
    %c0_i32_0 = arith.constant 0 : i32
    %c0_i32_1 = arith.constant 0 : i32
    return %c0_i32, %c0_i32_0 : i32, i32
  }
  func.func @transform_34(%arg0: i32) -> (i32, i32) {
    %c0_i32 = arith.constant 0 : i32
    %c0_i32_0 = arith.constant 0 : i32
    %c0_i32_1 = arith.constant 0 : i32
    return %c0_i32, %c0_i32_0 : i32, i32
  }
  func.func @transform_35(%arg0: i32) -> (i32, i32) {
    %c0_i32 = arith.constant 0 : i32
    %c0_i32_0 = arith.constant 0 : i32
    %c0_i32_1 = arith.constant 0 : i32
    return %c0_i32, %c0_i32_0 : i32, i32
  }
  func.func @transform_36(%arg0: i32) -> (i32, i32, i32) {
    %c0_i32 = arith.constant 0 : i32
    %c0_i32_0 = arith.constant 0 : i32
    %c0_i32_1 = arith.constant 0 : i32
    return %arg0, %c0_i32, %c0_i32_0 : i32, i32, i32
  }
}

</mosaic_0001>

<bundles_post_ra>
// kernel: tpu_custom_call.1
= control target key start
LH: loop header
LB: loop body
LE: loop exit
PB: predicated region body
PF: predicated region fallthrough
CT: control target
= control target key end

     0   :  { %s8230_s6 = smov 1   ;;  %s8231_s10 = smov 2   ;;  %s9204_s0 = inlined_call_operand.smem [shape: u32[37], index: -1, kind: input, shape index: {}] }
   0x1   :  { %s8279_s5 = sld [smem:[%s9204_s0]]   ;;  %s8232_s14 = smov 3  }
   0x2   :  { %s8284_s9 = sld [smem:[%s9204_s0 + %s8230_s6]]   ;;  %s8233_s18 = smov 4  }
   0x3   :  { %s8289_s13 = sld [smem:[%s9204_s0 + %s8231_s10]]   ;;  %s8234_s22 = smov 5  }
   0x4   :  { %s8294_s17 = sld [smem:[%s9204_s0 + %s8232_s14]]   ;;  %s8235_s26 = smov 6  }
   0x5   :  { %s8299_s21 = sld [smem:[%s9204_s0 + %s8233_s18]]   ;;  %s8236_s30 = smov 7  }
   0x6   :  { %s8304_s25 = sld [smem:[%s9204_s0 + %s8234_s22]]   ;;  %s8237_s4 = smov 8  }
   0x7   :  { %9225 = sst [smem:[#allocation5_spill]] %s8279_s5  ;;  %s8238_s10 = smov 9  }
   0x8   :  { %9226 = sst [smem:[#allocation6_spill]] %s8284_s9  ;;  %s8239_s15 = smov 10  }
   0x9   :  { %9227 = sst [smem:[#allocation7_spill]] %s8289_s13  ;;  %s8240_s20 = smov 11  }
   0xa   :  { %s8309_s29 = sld [smem:[%s9204_s0 + %s8235_s26]]   ;;  %s8241_s26 = smov 12  }
   0xb   :  { %s8314_s3 = sld [smem:[%s9204_s0 + %s8236_s30]]   ;;  %s8242_s1 = smov 13  }
   0xc   :  { %s8319_s8 = sld [smem:[%s9204_s0 + %s8237_s4]]   ;;  %s8243_s7 = smov 14  }
   0xd   :  { %s8324_s14 = sld [smem:[%s9204_s0 + %s8238_s10]]   ;;  %s8245_s22 = smov 16  }
   0xe   :  { %s8329_s19 = sld [smem:[%s9204_s0 + %s8239_s15]]   ;;  %s8244_s15 = smov 15  }
   0xf   :  { %s8334_s24 = sld [smem:[%s9204_s0 + %s8240_s20]]   ;;  %s8246_s28 = smov 17  }
  0x10   :  { %s8339_s30 = sld [smem:[%s9204_s0 + %s8241_s26]]  }
  0x11   :  { %9228 = sst [smem:[#allocation8_spill]] %s8314_s3 }
  0x12   :  { %9229 = sst [smem:[#allocation9_spill]] %s8319_s8 }
  0x13   :  { %s8344_s6 = sld [smem:[%s9204_s0 + %s8242_s1]]  }
  0x14   :  { %s8349_s12 = sld [smem:[%s9204_s0 + %s8243_s7]]   ;;  %s8247_s7 = smov 18  }
  0x15   :  { %s8354_s20 = sld [smem:[%s9204_s0 + %s8244_s15]]   ;;  %s8248_s15 = smov 19  }
  0x16   :  { %s8359_s27 = sld [smem:[%s9204_s0 + %s8245_s22]]   ;;  %s8249_s22 = smov 20  }
  0x17   :  { %s8364_s4 = sld [smem:[%s9204_s0 + %s8246_s28]]   ;;  %s8250_s28 = smov 21  }
  0x19   :  { %9230 = sst [smem:[#allocation10_spill]] %s8344_s6 }
  0x1a   :  { %9231 = sst [smem:[#allocation11_spill]] %s8349_s12 }
  0x1b   :  { %9232 = sst [smem:[#allocation12_spill]] %s8354_s20 }
  0x1c   :  { %9233 = sst [smem:[#allocation13_spill]] %s8359_s27 }
  0x1d   :  { %9234 = sst [smem:[#allocation14_spill]] %s8364_s4 }
  0x1e   :  { %s8369_s12 = sld [smem:[%s9204_s0 + %s8247_s7]]   ;;  %s8251_s7 = smov 22  }
  0x1f   :  { %s8374_s20 = sld [smem:[%s9204_s0 + %s8248_s15]]   ;;  %s8252_s15 = smov 23  }
  0x20   :  { %s8379_s27 = sld [smem:[%s9204_s0 + %s8249_s22]]   ;;  %s8253_s22 = smov 24  }
  0x21   :  { %s8384_s4 = sld [smem:[%s9204_s0 + %s8250_s28]]   ;;  %s8254_s28 = smov 25  }
  0x24   :  { %9235 = sst [smem:[#allocation15_spill]] %s8369_s12 }
  0x25   :  { %9236 = sst [smem:[#allocation16_spill]] %s8374_s20 }
  0x26   :  { %9237 = sst [smem:[#allocation17_spill]] %s8379_s27 }
  0x27   :  { %9238 = sst [smem:[#allocation18_spill]] %s8384_s4 }
  0x28   :  { %s8389_s12 = sld [smem:[%s9204_s0 + %s8251_s7]]   ;;  %s8255_s7 = smov 26  }
  0x29   :  { %s8394_s20 = sld [smem:[%s9204_s0 + %s8252_s15]]   ;;  %s8256_s15 = smov 27  }
  0x2a   :  { %s8399_s27 = sld [smem:[%s9204_s0 + %s8253_s22]]   ;;  %s8257_s22 = smov 28  }
  0x2b   :  { %s8404_s4 = sld [smem:[%s9204_s0 + %s8254_s28]]   ;;  %s8258_s28 = smov 29  }
  0x2e   :  { %9239 = sst [smem:[#allocation19_spill]] %s8389_s12 }
  0x2f   :  { %9240 = sst [smem:[#allocation20_spill]] %s8394_s20 }
  0x30   :  { %9241 = sst [smem:[#allocation21_spill]] %s8399_s27 }
  0x31   :  { %9242 = sst [smem:[#allocation22_spill]] %s8404_s4 }
  0x32   :  { %s8409_s12 = sld [smem:[%s9204_s0 + %s8255_s7]]   ;;  %s8259_s7 = smov 30  }
  0x33   :  { %s8414_s20 = sld [smem:[%s9204_s0 + %s8256_s15]]   ;;  %s8260_s15 = smov 31  }
  0x34   :  { %s8419_s27 = sld [smem:[%s9204_s0 + %s8257_s22]]   ;;  %s8261_s22 = smov 32  }
  0x35   :  { %s8424_s4 = sld [smem:[%s9204_s0 + %s8258_s28]]   ;;  %s8262_s28 = smov 33  }
  0x38   :  { %9243 = sst [smem:[#allocation23_spill]] %s8409_s12 }
  0x39   :  { %9244 = sst [smem:[#allocation24_spill]] %s8414_s20 }
  0x3a   :  { %9245 = sst [smem:[#allocation25_spill]] %s8419_s27 }
  0x3b   :  { %9246 = sst [smem:[#allocation26_spill]] %s8424_s4 }
  0x3c   :  { %s8429_s12 = sld [smem:[%s9204_s0 + %s8259_s7]]   ;;  %s8263_s7 = smov 34  }
  0x3d   :  { %s8434_s20 = sld [smem:[%s9204_s0 + %s8260_s15]]   ;;  %s8264_s15 = smov 35  }
  0x3e   :  { %s8439_s27 = sld [smem:[%s9204_s0 + %s8261_s22]]   ;;  %s8265_s22 = smov 36  }
  0x3f   :  { %s8444_s4 = sld [smem:[%s9204_s0 + %s8262_s28]]  }
  0x42   :  { %9247 = sst [smem:[#allocation27_spill]] %s8429_s12 }
  0x43   :  { %9248 = sst [smem:[#allocation28_spill]] %s8434_s20 }
  0x44   :  { %9249 = sst [smem:[#allocation29_spill]] %s8439_s27 }
  0x45   :  { %9250 = sst [smem:[#allocation30_spill]] %s8444_s4 }
  0x46   :  { %s8449_s12 = sld [smem:[%s9204_s0 + %s8263_s7]]  }
  0x47   :  { %s8454_s20 = sld [smem:[%s9204_s0 + %s8264_s15]]  }
  0x48   :  { %s8459_s27 = sld [smem:[%s9204_s0 + %s8265_s22]]  }
  0x4c   :  { %9251 = sst [smem:[#allocation31_spill]] %s8449_s12 }
  0x4d   :  { %78 = vsyncpa [#allocation3], 0 }
  0x4e   :  { %80 = vsyncpa [#allocation3 + $0x1], 0  ;;  %s8461_s28 = smov 0   ;;  %s8463_s1 = smov 0  }
  0x4f   :  { %s8465_s2 = smov 0   ;;  %s8467_s7 = smov 0  }
  0x50 LB: > { %s9252_s12 = sld [smem:[#allocation31_spill]]  ;;  %s9253_s9 = sld [smem:[#allocation6_spill]]  ;;  %s8216_s28 = sphi %s8461_s28, %s9281_s28   ;;  %s8228_s7 = sphi %s8467_s7, %s9284_s7   ;;  %s8224_s2 = sphi %s8465_s2, %s9283_s2   ;;  %s8220_s1 = sphi %s8463_s1, %s9282_s1  }
  0x51   : > { %s9254_s8 = sld [smem:[#allocation9_spill]]  ;;  %s9255_s6 = sld [smem:[#allocation10_spill]] }
  0x52   : > { %s9256_s3 = sld [smem:[#allocation8_spill]]  ;;  %s8482_s0 = sadd.s32 4294967295, %s8228_s7  }
  0x53   : > { %s6683_s10 = sadd.s32 4294967294, %s8228_s7   ;;  %s8486_s11 = sadd.s32 1, %s8228_s7  }
  0x54   : > { %s854_s15 = sadd.s32 1, %s8224_s2  ;;  %s851_s16 = ssub.s32 %s8228_s7, %s8486_s11 }
  0x55   : > { %p864_p0 = scmp.ne.s32.totalorder %s8224_s2, %s8220_s1  ;;  %p852_p1 = scmp.eq.s32.totalorder %s851_s16, 0 }
  0x56   : > { %p865_p2 = scmp.eq.s32.totalorder %s8482_s0, 1  ;;  %p870_p3 = scmp.ne.s32.totalorder %s8220_s1, %s8216_s28 }
  0x57   : > { %p871_p4 = scmp.eq.s32.totalorder %s6683_s10, 1  ;;  %p6686_p7 = scmp.ge.s32.totalorder %s8228_s7, 1 }
  0x58   : > { %s8497_s18 = scalar_select %p852_p1, %s8224_s2, %s854_s15  }
  0x59   : > { %p8499_p5 = por %p865_p2, %p864_p0  ;;  %p8503_p6 = por %p871_p4, %p870_p3 }
  0x5a   : > { %p1003_p8 = scmp.lt.s32.totalorder %s8228_s7, 3 }
  0x5c   : > { %p1004_p9 = pnand %p6686_p7, %p1003_p8 }
  0x5d   : > { %s9259_s13 = sld [smem:[#allocation7_spill]] (!%p1004_p9)  ;;  %s6688_s26 = sshll.u32 (!%p1004_p9), %s8482_s0, 1  ;;  %v1196_v1 = vld [vmem:[%s8299_s21] sm:$0xff] (!%p1004_p9)  ;;  %v1197_v2 = vld [vmem:[%s8299_s21 + $0x8] sm:$0xff] (!%p1004_p9)  ;;  %vm1110_vm0 = vcmask (!%p1004_p9), 64512   ;;  %v1198_v9 = vld [vmem:[%s8299_s21 + $0x10] sm:$0xff] (!%p1004_p9) }
  0x5e   : > { %1007 = sbr.rel (%p1004_p9) target bundleno = 7864 (0x1eb8), region = 164  ;;  %s9260_s5 = sld [smem:[#allocation5_spill]] (!%p1004_p9)  ;;  %v7727_v3 = vpack.c.bf16 (!%p1004_p9), %v1197_v2, %v1196_v1  ;;  %v6712_v4 = vld [vmem:[%s8299_s21 + $0x60] sm:$0xff] (!%p1004_p9)  ;;  %v6713_v5 = vld [vmem:[%s8299_s21 + $0x68] sm:$0xff] (!%p1004_p9)  ;;  %v1199_v10 = vld [vmem:[%s8299_s21 + $0x18] sm:$0xff] (!%p1004_p9)  ;;  %vm1207_vm1 = vcmask (!%p1004_p9), 261120  }
  0x5f   : > { %p1094_p10 = scmp.lt.s32.totalorder (!%p1004_p9), %s6688_s26, 3  ;;  %v7751_v6 = vpack.c.bf16 (!%p1004_p9), %v6713_v5, %v6712_v4  ;;  %v6714_v11 = vld [vmem:[%s8299_s21 + $0x70] sm:$0xff] (!%p1004_p9)  ;;  %v7731_v12 = vpack.c.bf16 (!%p1004_p9), %v1199_v10, %v1198_v9  ;;  %v6715_v13 = vld [vmem:[%s8299_s21 + $0x78] sm:$0xff] (!%p1004_p9)  ;;  %v6696_v15 = vld [vmem:[%s8299_s21 + $0x20] sm:$0xff] (!%p1004_p9)  ;;  %vm8267_vm2 = vmmov (!%p1004_p9), 0   ;;  %s9261_s16 = sld [smem:[#allocation12_spill]] (!%p1004_p9) }
  0x60   : > { %7728 = vmatprep.subr.bf16.mxu1 (!%p1004_p9), %v7727_v3  ;;  %v7755_v14 = vpack.c.bf16 (!%p1004_p9), %v6715_v13, %v6714_v11  ;;  %v6697_v16 = vld [vmem:[%s8299_s21 + $0x28] sm:$0xff] (!%p1004_p9)  ;;  %v6723_v18 = vld [vmem:[%s8309_s29 + $0x20] sm:$0xff] (!%p1004_p9)  ;;  %v6698_v28 = vld [vmem:[%s8299_s21 + $0x30] sm:$0xff] (!%p1004_p9)  ;;  %s9280_s4 = sld [smem:[#allocation30_spill]] (!%p1004_p9)  ;;  %vm6568_vm3 = vcmask (!%p1004_p9), 130048  }
  0x61   : > { %7730 = vmatpush3.bf16.msra.mxu1 (!%p1004_p9), %v7727_v3  ;;  %v7735_v17 = vpack.c.bf16 (!%p1004_p9), %v6697_v16, %v6696_v15  ;;  %v6724_v19 = vld [vmem:[%s8309_s29 + $0x28] sm:$0xff] (!%p1004_p9)  ;;  %v6690_v21 = vld [vmem:[%s8294_s17] ss:$0 sm:$0xff] (!%p1004_p9)  ;;  %v6699_v29 = vld [vmem:[%s8299_s21 + $0x38] sm:$0xff] (!%p1004_p9) }
  0x62   : > { %7732 = vmatprep.subr.bf16.mxu1 (!%p1004_p9), %v7731_v12  ;;  %v7767_v20 = vpack.c.bf16 (!%p1004_p9), %v6724_v19, %v6723_v18  ;;  %v1192_v25 = vld [vmem:[%s9253_s9] sm:$0xff] (!%p1004_p9)  ;;  %v1193_v26 = vld [vmem:[%s9253_s9 + $0x8] sm:$0xff] (!%p1004_p9)  ;;  %v6725_v30 = vld [vmem:[%s8309_s29 + $0x30] sm:$0xff] (!%p1004_p9)  ;;  %v7739_v35 = vpack.c.bf16 (!%p1004_p9), %v6699_v29, %v6698_v28  ;;  %s6929_s9 = sshll.u32 (!%p1004_p9), %s8482_s0, 8  ;;  %s8268_s0 = smov (!%p1004_p9), [#allocation2]  }
  0x63   : > { %v1102_v0 = vld [vmem:[%s9259_s13] sm:$0xff] (!%p1004_p9)  ;;  %v6726_v31 = vld [vmem:[%s8309_s29 + $0x38] sm:$0xff] (!%p1004_p9)  ;;  %v6705_v37 = vld [vmem:[%s8299_s21 + $0x48] sm:$0xff] (!%p1004_p9) }
  0x64   : > { %7195 = vmatprep.subr.mxu0 (!%p1004_p9), %v1102_v0  ;;  %v6704_v34 = vld [vmem:[%s8299_s21 + $0x40] sm:$0xff] (!%p1004_p9)  ;;  %v7771_v36 = vpack.c.bf16 (!%p1004_p9), %v6726_v31, %v6725_v30  ;;  %v6740_v39 = vld [vmem:[%s8309_s29 + $0x68] sm:$0xff] (!%p1004_p9)  ;;  %v6706_v42 = vld [vmem:[%s8299_s21 + $0x50] sm:$0xff] (!%p1004_p9) }
  0x65   : > { %7196 = vmatpush3.msra.mxu0 %v1102_v0  ;;  %s9286_s26 = smov (!%p1094_p10, %s6688_s26), 3  ;;  %7734 = vmatpush3.bf16.msra.mxu1 %v7731_v12  ;;  %v6739_v38 = vld [vmem:[%s8309_s29 + $0x60] sm:$0xff]  ;;  %v7743_v40 = vpack.c.bf16 %v6705_v37, %v6704_v34  ;;  %v6707_v43 = vld [vmem:[%s8299_s21 + $0x58] sm:$0xff]  ;;  %v6741_v44 = vld [vmem:[%s8309_s29 + $0x70] sm:$0xff] }
  0x66   : > { %7752 = vmatprep.subr.bf16.mxu0 %v7751_v6  ;;  %s6689_s10 = sshll.u32 %s9286_s26, 3  ;;  %7736 = vmatprep.subr.bf16.mxu1 %v7735_v17  ;;  %v7783_v41 = vpack.c.bf16 %v6740_v39, %v6739_v38  ;;  %v6742_v45 = vld [vmem:[%s8309_s29 + $0x78] sm:$0xff]  ;;  %v7747_v46 = vpack.c.bf16 %v6707_v43, %v6706_v42  ;;  %v1553_v48 = vld [vmem:[%s8309_s29] sm:$0xff]  ;;  %v1554_v49 = vld [vmem:[%s8309_s29 + $0x8] sm:$0xff]  ;;  %s9262_s26 = sld [smem:[#allocation11_spill]] }
  0x67   : > { %s1097_s15 = scalar_lea.vmem %s9260_s5, %s6689_s10  ;;  %v7787_v47 = vpack.c.bf16 %v6742_v45, %v6741_v44  ;;  %v6750_v50 = vld [vmem:[%s9254_s8 + $0x20] sm:$0xff]  ;;  %v6751_v51 = vld [vmem:[%s9254_s8 + $0x28] sm:$0xff]  ;;  %v7759_v52 = vpack.c.bf16 %v1554_v49, %v1553_v48  ;;  %v1555_v54 = vld [vmem:[%s8309_s29 + $0x10] sm:$0xff]  ;;  %s9263_s10 = sld [smem:[#allocation13_spill]] }
  0x68   : > { %v1100_v7 = vld [vmem:[%s1097_s15] sm:$0xff]  ;;  %v1101_v8 = vld [vmem:[%s1097_s15 + $0x8] sm:$0xff]  ;;  %v7799_v53 = vpack.c.bf16 %v6751_v51, %v6750_v50  ;;  %v1556_v55 = vld [vmem:[%s8309_s29 + $0x18] sm:$0xff]  ;;  %s9264_s15 = sld [smem:[#allocation16_spill]]  ;;  %s9268_s5 = sld [smem:[#allocation20_spill]] }
  0x69   : > { %7197 = vmatprep.mubr.msk.f32.mxu0 %vm1110_vm0, %v1100_v7  ;;  %v6752_v56 = vld [vmem:[%s9254_s8 + $0x30] sm:$0xff]  ;;  %v6753_v57 = vld [vmem:[%s9254_s8 + $0x38] sm:$0xff]  ;;  %v7763_v58 = vpack.c.bf16 %v1556_v55, %v1555_v54  ;;  %v6731_v59 = vld [vmem:[%s8309_s29 + $0x40] sm:$0xff] }
  0x6a   : > { %7198 = vmatmul.mubr.msk.f32.vlgmr.msra.gmra.mrb[0].mxu0 %vm1110_vm0, %v1101_v8  ;;  %v6732_v60 = vld [vmem:[%s8309_s29 + $0x48] sm:$0xff]  ;;  %v7803_v61 = vpack.c.bf16 %v6753_v57, %v6752_v56  ;;  %v6766_v62 = vld [vmem:[%s9254_s8 + $0x60] sm:$0xff]  ;;  %v6733_v2 = vld [vmem:[%s8309_s29 + $0x50] sm:$0xff] }
  0x6b   : > { %7754 = vmatpush3.bf16.msra.mxu0 %v7751_v6  ;;  %v6767_v63 = vld [vmem:[%s9254_s8 + $0x68] sm:$0xff]  ;;  %v7775_v0 = vpack.c.bf16 %v6732_v60, %v6731_v59  ;;  %v6734_v3 = vld [vmem:[%s8309_s29 + $0x58] sm:$0xff]  ;;  %v6768_v4 = vld [vmem:[%s9254_s8 + $0x70] sm:$0xff] }
  0x6c   : > { %7756 = vmatprep.subr.bf16.mxu0 %v7755_v14  ;;  %v7815_v1 = vpack.c.bf16 %v6767_v63, %v6766_v62  ;;  %v6769_v5 = vld [vmem:[%s9254_s8 + $0x78] sm:$0xff]  ;;  %v7779_v6 = vpack.c.bf16 %v6734_v3, %v6733_v2  ;;  %v1903_v7 = vld [vmem:[%s9254_s8] sm:$0xff]  ;;  %v1904_v8 = vld [vmem:[%s9254_s8 + $0x8] sm:$0xff] }
  0x6d   : > { %v7819_v9 = vpack.c.bf16 %v6769_v5, %v6768_v4  ;;  %v7791_v10 = vpack.c.bf16 %v1904_v8, %v1903_v7  ;;  %v1905_v11 = vld [vmem:[%s9254_s8 + $0x10] sm:$0xff]  ;;  %v1906_v12 = vld [vmem:[%s9254_s8 + $0x18] sm:$0xff]  ;;  %v6759_v15 = vld [vmem:[%s9254_s8 + $0x48] sm:$0xff] }
  0x6e   : > { %v7795_v13 = vpack.c.bf16 %v1906_v12, %v1905_v11  ;;  %v6761_v18 = vld [vmem:[%s9254_s8 + $0x58] sm:$0xff]  ;;  %v6701_v29 = vld [vmem:[%s8304_s25 + $0x1] ss:$0 sm:$0xff]  ;;  %v8645_v42 = vld [vmem:[%s9256_s3 + $0x3] ss:$0 sm:$0xff] }
  0x6f   : > { %7758 = vmatpush3.bf16.msra.mxu0 %v7755_v14  ;;  %v6758_v14 = vld [vmem:[%s9254_s8 + $0x40] sm:$0xff] }
  0x70   : > { %7768 = vmatprep.subr.bf16.mxu0 %v7767_v20  ;;  %v7807_v16 = vpack.c.bf16 %v6759_v15, %v6758_v14  ;;  %v6728_v30 = vld [vmem:[%s9256_s3 + $0x1] ss:$0 sm:$0xff]  ;;  %v6720_v49 = vld [vmem:[%s9256_s3] ss:$0 sm:$0xff]  ;;  %v6736_v60 = vld [vmem:[%s9256_s3 + $0x2] ss:$0 sm:$0xff] }
  0x71   : > { %v6755_v50 = vld [vmem:[%s8324_s14 + $0x1] ss:$0 sm:$0xff]  ;;  %v6747_v7 = vld [vmem:[%s8324_s14] ss:$0 sm:$0xff]  ;;  %v8684_v11 = vld [vmem:[%s8324_s14 + $0x2] ss:$0 sm:$0xff] }
  0x72   : > { %s9267_s3 = sld [smem:[#allocation15_spill]] }
 0x13d   : > { %v7199_v22 = vpop.f32.mrb[0].mxu0 }
 0x13e   : > { %v1189_v23 = vadd.f32 %v7199_v22, %v6690_v21  ;;  %v1183_v24 = vpop.f32.mrb[1].mxu0  ;;  %v8625_v22 = vld [vmem:[%s8304_s25 + $0x3] ss:$0 sm:$0xff] }
 0x13f   : > { %v1184_v27 = vadd.f32 %v6690_v21, %v1183_v24  ;;  %v6693_v21 = vld [vmem:[%s8304_s25] ss:$0 sm:$0xff] }
 0x140   : > { %v8535_v33 = vadd.f32 %v1193_v26, %v1189_v23 }
 0x141   : > { %v8533_v32 = vadd.f32 %v1192_v25, %v1184_v27 }
 0x143   : > { %7208 = vmatprep.mubr.msk.f32.mxu1 %vm1207_vm1, %v8533_v32  ;;  %7241 = vmatprep.mubr.msk.f32.mxu0 %vm1207_vm1, %v8533_v32 }
 0x144   : > { %7209 = vmatmul.mubr.msk.f32.vlgmr.msra.gmra.mrb[0].mxu1 %vm1207_vm1, %v8535_v33  ;;  %7242 = vmatmul.mubr.msk.f32.vlgmr.msra.gmra.mrb[2].mxu0 %vm1207_vm1, %v8535_v33 }
 0x145   : > { %7738 = vmatpush3.bf16.msra.mxu1 %v7735_v17  ;;  %7770 = vmatpush3.bf16.msra.mxu0 %v7767_v20  ;;  %v6760_v17 = vld [vmem:[%s9254_s8 + $0x50] sm:$0xff]  ;;  %v8266_v20 = vmov 0.0  }
 0x146   : > { %7219 = vmatprep.mubr.msk.f32.mxu1 %vm1207_vm1, %v8533_v32  ;;  %7263 = vmatprep.mubr.msk.f32.mxu0 %vm1207_vm1, %v8533_v32  ;;  %v7811_v19 = vpack.c.bf16 %v6761_v18, %v6760_v17 }
 0x147   : > { %7740 = vmatprep.subr.bf16.mxu1 %v7739_v35  ;;  %7772 = vmatprep.subr.bf16.mxu0 %v7771_v36 }
 0x149   : > { %7742 = vmatpush3.bf16.msra.mxu1 %v7739_v35  ;;  %7774 = vmatpush3.bf16.msra.mxu0 %v7771_v36 }
 0x14a   : > { %7744 = vmatprep.subr.bf16.mxu1 %v7743_v40  ;;  %7784 = vmatprep.subr.bf16.mxu0 %v7783_v41 }
 0x14c   : > { %7220 = vmatmul.mubr.msk.f32.vlgmr.msra.gmra.mrb[2].mxu1 %vm1207_vm1, %v8535_v33  ;;  %7264 = vmatmul.mubr.msk.f32.vlgmr.msra.gmra.mrb[4].mxu0 %vm1207_vm1, %v8535_v33 }
 0x14d   : > { %7746 = vmatpush3.bf16.msra.mxu1 %v7743_v40  ;;  %7230 = vmatprep.mubr.msk.f32.mxu1 %vm1207_vm1, %v8533_v32 }
 0x14e   : > { %7786 = vmatpush3.bf16.msra.mxu0 %v7783_v41  ;;  %7285 = vmatprep.mubr.msk.f32.mxu0 %vm1207_vm1, %v8533_v32  ;;  %v6709_v41 = vld [vmem:[%s8304_s25 + $0x2] ss:$0 sm:$0xff] }
 0x14f   : > { %7748 = vmatprep.subr.bf16.mxu1 %v7747_v46  ;;  %7788 = vmatprep.subr.bf16.mxu0 %v7787_v47 }
 0x151   : > { %7750 = vmatpush3.bf16.msra.mxu1 %v7747_v46 }
 0x152   : > { %7790 = vmatpush3.bf16.msra.mxu0 %v7787_v47  ;;  %7760 = vmatprep.subr.bf16.mxu1 %v7759_v52 }
 0x153   : > { %7800 = vmatprep.subr.bf16.mxu0 %v7799_v53 }
 0x154   : > { %7231 = vmatmul.mubr.msk.f32.vlgmr.msra.gmra.mrb[4].mxu1 %vm1207_vm1, %v8535_v33 }
 0x155   : > { %7286 = vmatmul.mubr.msk.f32.vlgmr.msra.gmra.mrb[6].mxu0 %vm1207_vm1, %v8535_v33  ;;  %7762 = vmatpush3.bf16.msra.mxu1 %v7759_v52 }
 0x156   : > { %7252 = vmatprep.mubr.msk.f32.mxu1 %vm1207_vm1, %v8533_v32  ;;  %7802 = vmatpush3.bf16.msra.mxu0 %v7799_v53 }
 0x157   : > { %7307 = vmatprep.mubr.msk.f32.mxu0 %vm1207_vm1, %v8533_v32  ;;  %7764 = vmatprep.subr.bf16.mxu1 %v7763_v58 }
 0x158   : > { %7804 = vmatprep.subr.bf16.mxu0 %v7803_v61 }
 0x159   : > { %7766 = vmatpush3.bf16.msra.mxu1 %v7763_v58 }
 0x15a   : > { %7806 = vmatpush3.bf16.msra.mxu0 %v7803_v61  ;;  %7776 = vmatprep.subr.bf16.mxu1 %v7775_v0  ;;  %v6771_v61 = vld [vmem:[%s8324_s14 + $0x3] ss:$0 sm:$0xff] }
 0x15b   : > { %7816 = vmatprep.subr.bf16.mxu0 %v7815_v1 }
 0x15c   : > { %7253 = vmatmul.mubr.msk.f32.vlgmr.msra.gmra.mrb[6].mxu1 %vm1207_vm1, %v8535_v33 }
 0x15d   : > { %7308 = vmatmul.mubr.msk.f32.vlgmr.msra.gmra.mrb[8].mxu0 %vm1207_vm1, %v8535_v33  ;;  %7778 = vmatpush3.bf16.msra.mxu1 %v7775_v0 }
 0x15e   : > { %7274 = vmatprep.mubr.msk.f32.mxu1 %vm1207_vm1, %v8533_v32  ;;  %7818 = vmatpush3.bf16.msra.mxu0 %v7815_v1 }
 0x15f   : > { %7329 = vmatprep.mubr.msk.f32.mxu0 %vm1207_vm1, %v8533_v32  ;;  %7780 = vmatprep.subr.bf16.mxu1 %v7779_v6 }
 0x160   : > { %7820 = vmatprep.subr.bf16.mxu0 %v7819_v9 }
 0x161   : > { %7782 = vmatpush3.bf16.msra.mxu1 %v7779_v6 }
 0x162   : > { %7822 = vmatpush3.bf16.msra.mxu0 %v7819_v9  ;;  %7792 = vmatprep.subr.bf16.mxu1 %v7791_v10 }
 0x163   : > { %7337 = vmatprep.subr.mxu0 %v8266_v20 }
 0x164   : > { %7275 = vmatmul.mubr.msk.f32.vlgmr.msra.gmra.mrb[8].mxu1 %vm1207_vm1, %v8535_v33 }
 0x165   : > { %7330 = vmatmul.mubr.msk.f32.vlgmr.msra.gmra.mrb[10].mxu0 %vm1207_vm1, %v8535_v33  ;;  %7794 = vmatpush3.bf16.msra.mxu1 %v7791_v10 }
 0x166   : > { %7296 = vmatprep.mubr.msk.f32.mxu1 %vm1207_vm1, %v8533_v32  ;;  %7796 = vmatprep.subr.bf16.mxu1 %v7795_v13 }
 0x167   : > { %7339 = vmatprep.mubr.msk.f32.mxu0 %vm8267_vm2, %v8266_v20 }
 0x169   : > { %7798 = vmatpush3.bf16.msra.mxu1 %v7795_v13 }
 0x16a   : > { %7808 = vmatprep.subr.bf16.mxu1 %v7807_v16 }
 0x16c   : > { %7297 = vmatmul.mubr.msk.f32.vlgmr.msra.gmra.mrb[10].mxu1 %vm1207_vm1, %v8535_v33 }
 0x16d   : > { %7810 = vmatpush3.bf16.msra.mxu1 %v7807_v16  ;;  %7318 = vmatprep.mubr.msk.f32.mxu1 %vm1207_vm1, %v8533_v32 }
 0x16e   : > { %7812 = vmatprep.subr.bf16.mxu1 %v7811_v19 }
 0x171   : > { %7814 = vmatpush3.bf16.msra.mxu1 %v7811_v19 }
 0x172   : > { %7332 = vmatprep.subr.mxu1 %v8266_v20 }
 0x174   : > { %7319 = vmatmul.mubr.msk.f32.vlgmr.msra.gmra.mrb[12].mxu1 %vm1207_vm1, %v8535_v33 }
 0x175   : > { %7334 = vmatprep.mubr.msk.f32.mxu1 %vm8267_vm2, %v8266_v20 }
 0x217   : > { %v7210_v23 = vpop.f32.mrb[0].mxu1  ;;  %v7243_v24 = vpop.f32.mrb[2].mxu0 }
 0x218   : > { %v8627_v25 = vadd.f32 %v7210_v23, %v6693_v21  ;;  %v8630_v26 = vadd.f32 %v7243_v24, %v8625_v22  ;;  %v1280_v27 = vpop.f32.mrb[1].mxu1  ;;  %v8632_v28 = vpop.f32.mrb[3].mxu0 }
 0x219   : > { %v1281_v58 = vadd.f32 %v6693_v21, %v1280_v27 }
 0x21f   : > { %v7221_v31 = vpop.f32.mrb[2].mxu1  ;;  %v7265_v34 = vpop.f32.mrb[4].mxu0 }
 0x220   : > { %v8636_v35 = vadd.f32 %v7221_v31, %v6701_v29  ;;  %v8638_v36 = vadd.f32 %v7265_v34, %v6728_v30  ;;  %v1368_v37 = vpop.f32.mrb[3].mxu1  ;;  %v1718_v38 = vpop.f32.mrb[5].mxu0 }
 0x221   : > { %v1719_v39 = vadd.f32 %v6728_v30, %v1718_v38  ;;  %v1369_v40 = vadd.f32 %v6701_v29, %v1368_v37 }
 0x223   : > { %7338 = vmatpush3.xpose.msk.msra.mxu0 %vm1110_vm0, %v1719_v39 }
 0x224   : > { %7347 = vmatprep.subr.mxu0 %v8266_v20 }
 0x226   : > { %7340 = vmatmul.mubr.msk.f32.vlgmr.msra.gmra.mrb[12].mxu0 %vm1110_vm0, %v1369_v40 }
 0x227   : > { %v7232_v43 = vpop.f32.mrb[4].mxu1  ;;  %7349 = vmatprep.mubr.msk.f32.mxu0 %vm8267_vm2, %v8266_v20 }
 0x228   : > { %v8649_v44 = vadd.f32 %v7232_v43, %v6709_v41  ;;  %v7287_v45 = vpop.f32.mrb[6].mxu0  ;;  %v1456_v46 = vpop.f32.mrb[5].mxu1 }
 0x229   : > { %v8652_v47 = vadd.f32 %v7287_v45, %v8645_v42  ;;  %v8654_v48 = vpop.f32.mrb[7].mxu0  ;;  %v1457_v5 = vadd.f32 %v6709_v41, %v1456_v46  ;;  %v1545_v41 = vadd.f32 %v8625_v22, %v8632_v28 }
 0x22a   : > { %v1895_v40 = vadd.f32 %v8645_v42, %v8654_v48 }
 0x22f   : > { %v7254_v51 = vpop.f32.mrb[6].mxu1 }
 0x230   : > { %v8658_v52 = vadd.f32 %v7254_v51, %v6720_v49  ;;  %v7309_v53 = vpop.f32.mrb[8].mxu0  ;;  %v1630_v54 = vpop.f32.mrb[7].mxu1 }
 0x231   : > { %v8660_v55 = vadd.f32 %v7309_v53, %v6755_v50  ;;  %v1631_v56 = vadd.f32 %v6720_v49, %v1630_v54  ;;  %v2068_v57 = vpop.f32.mrb[9].mxu0 }
 0x232   : > { %v2069_v59 = vadd.f32 %v6755_v50, %v2068_v57 }
 0x233   : > { %7333 = vmatpush3.xpose.msk.msra.mxu1 %vm1110_vm0, %v1631_v56 }
 0x234   : > { %7342 = vmatprep.subr.mxu1 %v8266_v20 }
 0x236   : > { %7335 = vmatmul.mubr.msk.f32.vlgmr.msra.gmra.mrb[14].mxu1 %vm1110_vm0, %v1281_v58 }
 0x237   : > { %v7276_v62 = vpop.f32.mrb[8].mxu1  ;;  %7343 = vmatpush3.msra.mxu1 %v2069_v59  ;;  %7344 = vmatprep.mubr.msk.f32.mxu1 %vm8267_vm2, %v8266_v20 }
 0x238   : > { %v8669_v63 = vadd.f32 %v7276_v62, %v6736_v60  ;;  %v7331_v0 = vpop.f32.mrb[10].mxu0  ;;  %v1806_v1 = vpop.f32.mrb[9].mxu1  ;;  %7352 = vmatprep.subr.mxu1 %v8266_v20 }
 0x239   : > { %v8672_v2 = vadd.f32 %v7331_v0, %v6771_v61  ;;  %v1807_v3 = vadd.f32 %v6736_v60, %v1806_v1  ;;  %v2244_v4 = vpop.f32.mrb[11].mxu0 }
 0x23a   : > { %v2245_v6 = vadd.f32 %v6771_v61, %v2244_v4 }
 0x23b   : > { %7348 = vmatpush3.xpose.msk.msra.mxu0 %vm1110_vm0, %v1807_v3 }
 0x23c   : > { %7357 = vmatprep.subr.mxu0 %v8266_v20 }
 0x23e   : > { %7350 = vmatmul.mubr.msk.f32.vlgmr.msra.gmra.mrb[14].mxu0 %vm1110_vm0, %v1457_v5 }
 0x23f   : > { %v7298_v8 = vpop.f32.mrb[10].mxu1  ;;  %7358 = vmatpush3.msra.mxu0 %v2245_v6  ;;  %7359 = vmatprep.mubr.msk.f32.mxu0 %vm8267_vm2, %v8266_v20 }
 0x240   : > { %v8680_v9 = vadd.f32 %v7298_v8, %v6747_v7  ;;  %v1980_v10 = vpop.f32.mrb[11].mxu1  ;;  %7367 = vmatprep.subr.mxu0 %v8266_v20 }
 0x241   : > { %v1981_v43 = vadd.f32 %v6747_v7, %v1980_v10 }
 0x247   : > { %v7320_v12 = vpop.f32.mrb[12].mxu1 }
 0x248   : > { %v8687_v13 = vadd.f32 %v7320_v12, %v8684_v11  ;;  %v8689_v14 = vpop.f32.mrb[13].mxu1 }
 0x249   : > { %v2157_v12 = vadd.f32 %v8684_v11, %v8689_v14 }
 0x2f9   : > { %v2413_v15 = vpop.f32.mrb[12].mxu0 }
 0x2fa   : > { %v2417_v16 = vmul.f32 0.35355338, %v2413_v15  ;;  %v7341_v17 = vpop.f32.mrb[13].mxu0 }
 0x2fc   : > { %v2418_v18 = vsel %vm1110_vm0, %v2417_v16, -inf }
 0x2fd   : > { %2419 = vmax.xlane.f32.xlu0 %v2418_v18 }
 0x309   : > { %v2325_v19 = vpop.f32.mrb[14].mxu1 }
 0x30a   : > { %v7336_v21 = vpop.f32.mrb[15].mxu1  ;;  %v2329_v60 = vmul.f32 0.35355338, %v2325_v19 }
 0x30c   : > { %v2330_v0 = vsel %vm1110_vm0, %v2329_v60, -inf }
 0x311   : > { %v2574_v23 = vpop.f32.mrb[14].mxu0 }
 0x312   : > { %v7351_v24 = vpop.f32.mrb[15].mxu0  ;;  %v2578_v50 = vmul.f32 0.35355338, %v2574_v23 }
 0x314   : > { %v2579_v28 = vsel %vm1110_vm0, %v2578_v50, -inf }
 0x38a   : > { %v2420_v27 = vpop.xlane.xlu0 %2419 }
 0x38b   : > { %v2421_v29 = vsub.f32 %v2417_v16, %v2420_v27 }
 0x38d   : > { %v2422_v30 = vmul.f32 1.442695, %v2421_v29 }
 0x38f   : > { %8086 = vpow2.f32 %v2422_v30 }
 0x399   : > { %v8087_v31 = vpop.eup %8086 }
 0x39a   : > { %v2424_v34 = vsel %vm1110_vm0, %v8087_v31, 0.0 }
 0x39b   : > { %2425 = vadd.xlane.f32.xlu0 %v2424_v34 }
 0x428   : > { %v2426_v37 = vpop.xlane.xlu0 %2425 }
 0x429   : > { %8088 = vrcp.f32 %v2426_v37 }
 0x433   : > { %v8089_v38 = vpop.eup %8088 }
 0x434   : > { %v2428_v39 = vmul.f32 %v8089_v38, %v8087_v31 }
 0x436   : > { %7345 = vmatmul.mubr.msk.f32.vlgmr.msra.gmra.mrb[16].mxu1 %vm1110_vm0, %v2428_v39 }
 0x437   : > { %7353 = vmatpush3.xpose.msk.msra.mxu1 %vm1110_vm0, %v1895_v40  ;;  %7354 = vmatprep.mubr.msk.f32.mxu1 %vm8267_vm2, %v8266_v20 }
 0x438   : > { %7362 = vmatprep.subr.mxu1 %v8266_v20 }
 0x43a   : > { %7355 = vmatmul.mubr.msk.f32.vlgmr.msra.gmra.mrb[18].mxu1 %vm1110_vm0, %v1545_v41 }
 0x43b   : > { %7363 = vmatpush3.msra.mxu1 %v1981_v43  ;;  %7364 = vmatprep.mubr.msk.f32.mxu1 %vm8267_vm2, %v8266_v20 }
 0x43c   : > { %7372 = vmatprep.subr.mxu1 %v8266_v20 }
 0x509   : > { %v8706_v42 = vpop.f32.mrb[16].mxu1 }
 0x50a   : > { %v7346_v45 = vpop.f32.mrb[17].mxu1 }
 0x50d   : > { %v2662_v46 = vpop.f32.mrb[18].mxu1 }
 0x50e   : > { %v2666_v48 = vmul.f32 0.35355338, %v2662_v46  ;;  %v7356_v49 = vpop.f32.mrb[19].mxu1 }
 0x510   : > { %v2667_v22 = vsel %vm1110_vm0, %v2666_v48, -inf }
 0x511   : > { %2668 = vmax.xlane.f32.xlu1 %v2667_v22 }
 0x515   : > { %2580 = vmax.xlane.f32.xlu1 %v2579_v28 }
 0x59e   : > { %v2669_v51 = vpop.xlane.xlu1 %2668 }
 0x59f   : > { %v2670_v53 = vsub.f32 %v2666_v48, %v2669_v51 }
 0x5a1   : > { %v2671_v54 = vmul.f32 1.442695, %v2670_v53 }
 0x5a2   : > { %v2581_v56 = vpop.xlane.xlu1 %2580 }
 0x5a3   : > { %8090 = vpow2.f32 %v2671_v54  ;;  %v2582_v57 = vsub.f32 %v2578_v50, %v2581_v56 }
 0x5a5   : > { %v2583_v58 = vmul.f32 1.442695, %v2582_v57 }
 0x5a7   : > { %8092 = vpow2.f32 %v2583_v58 }
 0x5ad   : > { %v8091_v59 = vpop.eup %8090 }
 0x5ae   : > { %v2673_v61 = vsel %vm1110_vm0, %v8091_v59, 0.0 }
 0x5af   : > { %2674 = vadd.xlane.f32.xlu0 %v2673_v61 }
 0x5b1   : > { %v8093_v62 = vpop.eup %8092 }
 0x5b2   : > { %v2585_v1 = vsel %vm1110_vm0, %v8093_v62, 0.0 }
 0x5b3   : > { %2331 = vmax.xlane.f32.xlu0 %v2330_v0  ;;  %2586 = vadd.xlane.f32.xlu1 %v2585_v1 }
 0x63c   : > { %v2675_v3 = vpop.xlane.xlu0 %2674 }
 0x63d   : > { %8094 = vrcp.f32 %v2675_v3 }
 0x640   : > { %v2332_v4 = vpop.xlane.xlu0 %2331  ;;  %v2587_v5 = vpop.xlane.xlu1 %2586 }
 0x641   : > { %v2333_v6 = vsub.f32 %v2329_v60, %v2332_v4  ;;  %8096 = vrcp.f32 %v2587_v5 }
 0x643   : > { %v2334_v7 = vmul.f32 1.442695, %v2333_v6 }
 0x645   : > { %8098 = vpow2.f32 %v2334_v7 }
 0x647   : > { %v8095_v8 = vpop.eup %8094 }
 0x648   : > { %v2677_v10 = vmul.f32 %v8095_v8, %v8091_v59 }
 0x64a   : > { %7360 = vmatmul.mubr.msk.f32.vlgmr.msra.gmra.mrb[16].mxu0 %vm1110_vm0, %v2677_v10 }
 0x64b   : > { %v8097_v15 = vpop.eup %8096  ;;  %7368 = vmatpush3.msra.mxu0 %v2157_v12  ;;  %7369 = vmatprep.mubr.msk.f32.mxu0 %vm8267_vm2, %v8266_v20 }
 0x64c   : > { %v2589_v16 = vmul.f32 %v8097_v15, %v8093_v62  ;;  %7377 = vmatprep.subr.mxu0 %v8266_v20 }
 0x64e   : > { %7370 = vmatmul.mubr.msk.f32.vlgmr.msra.gmra.mrb[18].mxu0 %vm1110_vm0, %v2589_v16 }
 0x64f   : > { %v8099_v17 = vpop.eup %8098  ;;  %7379 = vmatprep.mubr.msk.f32.mxu0 %vm8267_vm2, %v8266_v20 }
 0x650   : > { %v2336_v18 = vsel %vm1110_vm0, %v8099_v17, 0.0 }
 0x651   : > { %2337 = vadd.xlane.f32.xlu0 %v2336_v18 }
 0x652   : > { %7378 = vmatpush3.xpose.msk.msra.mxu0 %vm1110_vm0, %v8638_v36 }
 0x653   : > { %7387 = vmatprep.subr.mxu0 %v8266_v20 }
 0x655   : > { %7380 = vmatmul.mubr.msk.f32.vlgmr.msra.gmra.mrb[20].mxu0 %vm1110_vm0, %v8636_v35 }
 0x656   : > { %7388 = vmatpush3.xpose.msk.msra.mxu0 %vm1110_vm0, %v8669_v63  ;;  %7389 = vmatprep.mubr.msk.f32.mxu0 %vm8267_vm2, %v8266_v20 }
 0x657   : > { %7397 = vmatprep.subr.mxu0 %v8266_v20 }
 0x659   : > { %7390 = vmatmul.mubr.msk.f32.vlgmr.msra.gmra.mrb[22].mxu0 %vm1110_vm0, %v8649_v44 }
 0x65a   : > { %7398 = vmatpush3.msra.mxu0 %v8672_v2  ;;  %7399 = vmatprep.mubr.msk.f32.mxu0 %vm8267_vm2, %v8266_v20 }
 0x65b   : > { %7407 = vmatprep.subr.mxu0 %v8266_v20 }
 0x6de   : > { %v2338_v36 = vpop.xlane.xlu0 %2337 }
 0x6df   : > { %8100 = vrcp.f32 %v2338_v36 }
 0x6e9   : > { %v8101_v35 = vpop.eup %8100 }
 0x6ea   : > { %v2340_v11 = vmul.f32 %v8101_v35, %v8099_v17 }
 0x6ec   : > { %7365 = vmatmul.mubr.msk.f32.vlgmr.msra.gmra.mrb[20].mxu1 %vm1110_vm0, %v2340_v11 }
 0x6ed   : > { %7373 = vmatpush3.xpose.msk.msra.mxu1 %vm1110_vm0, %v8658_v52  ;;  %7374 = vmatprep.mubr.msk.f32.mxu1 %vm8267_vm2, %v8266_v20 }
 0x6ee   : > { %7382 = vmatprep.subr.mxu1 %v8266_v20 }
 0x6f0   : > { %7375 = vmatmul.mubr.msk.f32.vlgmr.msra.gmra.mrb[22].mxu1 %vm1110_vm0, %v8627_v25 }
 0x6f1   : > { %7383 = vmatpush3.msra.mxu1 %v8660_v55  ;;  %7384 = vmatprep.mubr.msk.f32.mxu1 %vm8267_vm2, %v8266_v20 }
 0x6f2   : > { %7392 = vmatprep.subr.mxu1 %v8266_v20 }
 0x71d   : > { %v2747_v44 = vpop.f32.mrb[16].mxu0 }
 0x71e   : > { %v7361_v63 = vpop.f32.mrb[17].mxu0 }
 0x721   : > { %v2893_v2 = vpop.f32.mrb[18].mxu0 }
 0x722   : > { %v2894_v14 = vadd.f32 %v2893_v2, %v2747_v44  ;;  %v7371_v52 = vpop.f32.mrb[19].mxu0 }
 0x728   : > { %v3058_v19 = vpop.f32.mrb[20].mxu0 }
 0x729   : > { %v3062_v21 = vmul.f32 0.35355338, %v3058_v19  ;;  %v7381_v23 = vpop.f32.mrb[21].mxu0 }
 0x72b   : > { %v3063_v24 = vsel %vm1110_vm0, %v3062_v21, -inf }
 0x72c   : > { %3064 = vmax.xlane.f32.xlu1 %v3063_v24  ;;  %v3219_v27 = vpop.f32.mrb[22].mxu0 }
 0x72d   : > { %v7391_v25 = vpop.f32.mrb[23].mxu0  ;;  %v3223_v57 = vmul.f32 0.35355338, %v3219_v27 }
 0x7b9   : > { %v3065_v29 = vpop.xlane.xlu1 %3064 }
 0x7ba   : > { %v3066_v55 = vsub.f32 %v3062_v21, %v3065_v29  ;;  %v8787_v29 = vld [vmem:[%s8334_s24] ss:$0 sm:$0xff] }
 0x7bc   : > { %v3067_v30 = vmul.f32 1.442695, %v3066_v55 }
 0x7be   : > { %8102 = vpow2.f32 %v3067_v30  ;;  %v8790_v30 = vld [vmem:[%s8339_s30] ss:$0 sm:$0xff] }
 0x7bf   : > { %v2820_v31 = vpop.f32.mrb[20].mxu1 }
 0x7c0   : > { %v2821_v34 = vadd.f32 %v2820_v31, %v8706_v42  ;;  %v7366_v37 = vpop.f32.mrb[21].mxu1 }
 0x7c2   : > { %v2897_v38 = vadd.f32 %v2894_v14, %v2821_v34 }
 0x7c3   : > { %v2970_v39 = vpop.f32.mrb[22].mxu1 }
 0x7c4   : > { %v7376_v40 = vpop.f32.mrb[23].mxu1  ;;  %v2974_v43 = vmul.f32 0.35355338, %v2970_v39 }
 0x7c6   : > { %v2975_v46 = vsel %vm1110_vm0, %v2974_v43, -inf }
 0x7c8   : > { %v8103_v41 = vpop.eup %8102 }
 0x7c9   : > { %v3069_v45 = vsel %vm1110_vm0, %v8103_v41, 0.0 }
 0x7ca   : > { %3070 = vadd.xlane.f32.xlu1 %v3069_v45 }
 0x7ce   : > { %2976 = vmax.xlane.f32.xlu1 %v2975_v46 }
 0x857   : > { %v3071_v48 = vpop.xlane.xlu1 %3070 }
 0x858   : > { %8104 = vrcp.f32 %v3071_v48 }
 0x85b   : > { %v2977_v42 = vpop.xlane.xlu1 %2976 }
 0x85c   : > { %v2978_v22 = vsub.f32 %v2974_v43, %v2977_v42 }
 0x85e   : > { %v2979_v28 = vmul.f32 1.442695, %v2978_v22 }
 0x860   : > { %8106 = vpow2.f32 %v2979_v28 }
 0x862   : > { %v8105_v49 = vpop.eup %8104 }
 0x863   : > { %v3073_v50 = vmul.f32 %v8105_v49, %v8103_v41 }
 0x865   : > { %7385 = vmatmul.mubr.msk.f32.vlgmr.msra.gmra.mrb[24].mxu1 %vm1110_vm0, %v3073_v50 }
 0x866   : > { %7393 = vmatpush3.xpose.msk.msra.mxu1 %vm1110_vm0, %v8652_v47  ;;  %7394 = vmatprep.mubr.msk.f32.mxu1 %vm8267_vm2, %v8266_v20 }
 0x867   : > { %7402 = vmatprep.subr.mxu1 %v8266_v20 }
 0x869   : > { %7395 = vmatmul.mubr.msk.f32.vlgmr.msra.gmra.mrb[26].mxu1 %vm1110_vm0, %v8630_v26  ;;  %v8770_v26 = vld [vmem:[%s8329_s19] ss:$0 sm:$0xff] }
 0x86a   : > { %7403 = vmatpush3.msra.mxu1 %v8680_v9  ;;  %7404 = vmatprep.mubr.msk.f32.mxu1 %vm8267_vm2, %v8266_v20  ;;  %v3224_v9 = vsel %vm1110_vm0, %v3223_v57, -inf  ;;  %v3550_v59 = vadd.f32 %v8770_v26, %v2897_v38  ;;  %v8107_v60 = vpop.eup %8106 }
 0x86b   : > { %v2981_v61 = vsel %vm1110_vm0, %v8107_v60, 0.0 }
 0x86c   : > { %v3552_v62 = vadd.f32 %v3550_v59, %v8533_v32  ;;  %v3695_v59 = vld [vmem:[%s9261_s16 + $0x10] sm:$0xff] }
 0x86e   : > { %v3556_v0 = vsel %vm1207_vm1, %v3552_v62, 0.0 }
 0x938   : > { %v8766_v51 = vpop.f32.mrb[24].mxu1 }
 0x939   : > { %v7386_v47 = vpop.f32.mrb[25].mxu1 }
 0x93c   : > { %v3307_v53 = vpop.f32.mrb[26].mxu1 }
 0x93d   : > { %v3311_v54 = vmul.f32 0.35355338, %v3307_v53  ;;  %v7396_v56 = vpop.f32.mrb[27].mxu1  ;;  %v3599_v53 = vld [vmem:[%s9255_s6] sm:$0xff] }
 0x93f   : > { %v3312_v58 = vsel %vm1110_vm0, %v3311_v54, -inf }
 0x940   : > { %3313 = vmax.xlane.f32.xlu0 %v3312_v58 }
 0x944   : > { %3225 = vmax.xlane.f32.xlu0 %v3224_v9  ;;  %v3694_v9 = vld [vmem:[%s9261_s16 + $0x8] sm:$0xff] }
 0x948   : > { %2982 = vadd.xlane.f32.xlu0 %v2981_v61  ;;  %v3696_v61 = vld [vmem:[%s9261_s16 + $0x18] sm:$0xff] }
 0x94c   : > { %3557 = vadd.xlane.f32.xlu0 %v3556_v0  ;;  %v3697_v0 = vld [vmem:[%s9261_s16 + $0x20] sm:$0xff] }
 0x9cd   : > { %v3314_v1 = vpop.xlane.xlu0 %3313 }
 0x9ce   : > { %v3315_v3 = vsub.f32 %v3311_v54, %v3314_v1  ;;  %v3600_v54 = vld [vmem:[%s9255_s6 + $0x8] sm:$0xff] }
 0x9cf   : > { %v7823_v56 = vpack.c.bf16 %v3600_v54, %v3599_v53  ;;  %v3698_v1 = vld [vmem:[%s9261_s16 + $0x28] sm:$0xff]  ;;  %v3837_v53 = vld [vmem:[%s9264_s15] sm:$0xff] }
 0x9d0   : > { %v3316_v4 = vmul.f32 1.442695, %v3315_v3  ;;  %v7839_v3 = vpack.c.bf16 %v3698_v1, %v3697_v0  ;;  %v3838_v54 = vld [vmem:[%s9264_s15 + $0x8] sm:$0xff]  ;;  %v6810_v0 = vld [vmem:[%s9264_s15 + $0x20] sm:$0xff] }
 0x9d1   : > { %v3226_v5 = vpop.xlane.xlu0 %3225  ;;  %7824 = vmatprep.subr.bf16.mxu1 %v7823_v56  ;;  %v6811_v1 = vld [vmem:[%s9264_s15 + $0x28] sm:$0xff] }
 0x9d2   : > { %8108 = vpow2.f32 %v3316_v4  ;;  %v3227_v6 = vsub.f32 %v3223_v57, %v3226_v5  ;;  %v3602_v57 = vld [vmem:[%s9255_s6 + $0x18] sm:$0xff]  ;;  %v3699_v4 = vld [vmem:[%s9261_s16 + $0x30] sm:$0xff] }
 0x9d3   : > { %v3700_v5 = vld [vmem:[%s9261_s16 + $0x38] sm:$0xff] }
 0x9d4   : > { %v3228_v7 = vmul.f32 1.442695, %v3227_v6  ;;  %v7843_v6 = vpack.c.bf16 %v3700_v5, %v3699_v4  ;;  %v7871_v4 = vpack.c.bf16 %v6811_v1, %v6810_v0  ;;  %v6864_v1 = vld [vmem:[%s9268_s5 + $0x20] sm:$0xff] }
 0x9d5   : > { %v2983_v8 = vpop.xlane.xlu0 %2982 }
 0x9d6   : > { %8110 = vpow2.f32 %v3228_v7  ;;  %v3701_v7 = vld [vmem:[%s9261_s16 + $0x40] sm:$0xff] }
 0x9d7   : > { %8112 = vrcp.f32 %v2983_v8  ;;  %v3702_v8 = vld [vmem:[%s9261_s16 + $0x48] sm:$0xff] }
 0x9d9   : > { %v3558_v10 = vpop.xlane.xlu0 %3557 }
 0x9da   : > { %v3563_v12 = vmul.f32 0.03125, %v3558_v10  ;;  %v7847_v10 = vpack.c.bf16 %v3702_v8, %v3701_v7 }
 0x9dc   : > { %v8109_v15 = vpop.eup %8108  ;;  %v3565_v16 = vsub.f32 %v3552_v62, %v3563_v12  ;;  %v7835_v62 = vpack.c.bf16 %v3696_v61, %v3695_v59  ;;  %v3703_v12 = vld [vmem:[%s9261_s16 + $0x50] sm:$0xff] }
 0x9dd   : > { %v3318_v32 = vsel %vm1110_vm0, %v8109_v15, 0.0 }
 0x9de   : > { %3319 = vadd.xlane.f32.xlu1 %v3318_v32  ;;  %v3567_v17 = vmul.f32 %v3565_v16, %v3565_v16  ;;  %v3705_v32 = vld [vmem:[%s9261_s16 + $0x60] sm:$0xff] }
 0x9e0   : > { %v8111_v18 = vpop.eup %8110  ;;  %v3569_v36 = vsel %vm1207_vm1, %v3567_v17, 0.0  ;;  %v3706_v17 = vld [vmem:[%s9261_s16 + $0x68] sm:$0xff] }
 0x9e1   : > { %v8113_v35 = vpop.eup %8112  ;;  %3570 = vadd.xlane.f32.xlu0 %v3569_v36  ;;  %v3230_v11 = vsel %vm1110_vm0, %v8111_v18, 0.0 }
 0x9e2   : > { %v2985_v44 = vmul.f32 %v8113_v35, %v8107_v60  ;;  %3231 = vadd.xlane.f32.xlu1 %v3230_v11 }
 0x9e4   : > { %7405 = vmatmul.mubr.msk.f32.vlgmr.msra.gmra.mrb[28].mxu1 %vm1110_vm0, %v2985_v44 }
 0x9e5   : > { %7826 = vmatpush3.bf16.msra.mxu1 %v7823_v56 }
 0xa6b   : > { %v3320_v63 = vpop.xlane.xlu1 %3319 }
 0xa6c   : > { %8114 = vrcp.f32 %v3320_v63 }
 0xa6e   : > { %v3571_v2 = vpop.xlane.xlu0 %3570 }
 0xa6f   : > { %v3575_v14 = vmul.f32 0.03125, %v3571_v2  ;;  %v3232_v52 = vpop.xlane.xlu1 %3231 }
 0xa70   : > { %8116 = vrcp.f32 %v3232_v52  ;;  %v3707_v52 = vld [vmem:[%s9261_s16 + $0x70] sm:$0xff] }
 0xa71   : > { %v3577_v19 = vadd.f32 1e-05, %v3575_v14 }
 0xa73   : > { %8118 = vrsqrt.f32 %v3577_v19  ;;  %v3708_v19 = vld [vmem:[%s9261_s16 + $0x78] sm:$0xff] }
 0xa76   : > { %v8115_v21 = vpop.eup %8114 }
 0xa77   : > { %v3322_v23 = vmul.f32 %v8115_v21, %v8109_v15  ;;  %v3704_v15 = vld [vmem:[%s9261_s16 + $0x58] sm:$0xff]  ;;  %v7859_v21 = vpack.c.bf16 %v3708_v19, %v3707_v52 }
 0xa79   : > { %7400 = vmatmul.mubr.msk.f32.vlgmr.msra.gmra.mrb[24].mxu0 %vm1110_vm0, %v3322_v23  ;;  %v6801_v23 = vld [vmem:[%s9262_s26] ss:$0 sm:$0xff]  ;;  %s9265_s26 = sld [smem:[#allocation18_spill]] }
 0xa7a   : > { %v8117_v24 = vpop.eup %8116  ;;  %7408 = vmatpush3.msra.mxu0 %v8687_v13  ;;  %7409 = vmatprep.mubr.msk.f32.mxu0 %vm8267_vm2, %v8266_v20 }
 0xa7b   : > { %v3234_v27 = vmul.f32 %v8117_v24, %v8111_v18  ;;  %v7855_v18 = vpack.c.bf16 %v3706_v17, %v3705_v32 }
 0xa7d   : > { %v8119_v25 = vpop.eup %8118  ;;  %7410 = vmatmul.mubr.msk.f32.vlgmr.msra.gmra.mrb[26].mxu0 %vm1110_vm0, %v3234_v27 }
 0xa7e   : > { %v3581_v55 = vmul.f32 %v8119_v25, %v3565_v16  ;;  %v7851_v16 = vpack.c.bf16 %v3704_v15, %v3703_v12 }
 0xa7f   : > { %v4193_v56 = vld [vmem:[%s9265_s26] sm:$0xff]  ;;  %v4195_v59 = vld [vmem:[%s9265_s26 + $0x10] sm:$0xff]  ;;  %v4196_v61 = vld [vmem:[%s9265_s26 + $0x18] sm:$0xff] }
 0xa80   : > { %v3589_v31 = vmul.f32 %v8787_v29, %v3581_v55  ;;  %v6846_v5 = vld [vmem:[%s9265_s26 + $0x48] sm:$0xff]  ;;  %v6847_v52 = vld [vmem:[%s9265_s26 + $0x50] sm:$0xff]  ;;  %v6848_v19 = vld [vmem:[%s9265_s26 + $0x58] sm:$0xff] }
 0xa82   : > { %v8794_v34 = vadd.f32 %v8790_v30, %v3589_v31 }
 0xa84   : > { %7420 = vmatprep.mubr.msk.f32.mxu1 %vm1207_vm1, %v8794_v34 }
 0xab7   : > { %v3465_v13 = vpop.f32.mrb[28].mxu1 }
 0xab8   : > { %v3466_v37 = vadd.f32 %v3465_v13, %v8766_v51  ;;  %v7406_v38 = vpop.f32.mrb[29].mxu1 }
 0xb4c   : > { %v3392_v39 = vpop.f32.mrb[24].mxu0 }
 0xb4d   : > { %v7401_v40 = vpop.f32.mrb[25].mxu0 }
 0xb50   : > { %v3538_v41 = vpop.f32.mrb[26].mxu0 }
 0xb51   : > { %v3539_v43 = vadd.f32 %v3538_v41, %v3392_v39  ;;  %v7411_v45 = vpop.f32.mrb[27].mxu0 }
 0xb53   : > { %v3542_v46 = vadd.f32 %v3539_v43, %v3466_v37 }
 0xb55   : > { %v3551_v48 = vadd.f32 %v8770_v26, %v3542_v46  ;;  %v3693_v26 = vld [vmem:[%s9261_s16] sm:$0xff] }
 0xb56   : > { %v7831_v60 = vpack.c.bf16 %v3694_v9, %v3693_v26  ;;  %v3839_v26 = vld [vmem:[%s9264_s15 + $0x10] sm:$0xff]  ;;  %v3840_v9 = vld [vmem:[%s9264_s15 + $0x18] sm:$0xff] }
 0xb57   : > { %v3553_v49 = vadd.f32 %v3551_v48, %v8535_v33  ;;  %v3601_v33 = vld [vmem:[%s9255_s6 + $0x10] sm:$0xff]  ;;  %s9275_s6 = sld [smem:[#allocation25_spill]] }
 0xb58   : > { %v7827_v58 = vpack.c.bf16 %v3602_v57, %v3601_v33  ;;  %7832 = vmatprep.subr.bf16.mxu0 %v7831_v60  ;;  %v7863_v33 = vpack.c.bf16 %v3838_v54, %v3837_v53  ;;  %v4194_v57 = vld [vmem:[%s9265_s26 + $0x8] sm:$0xff]  ;;  %v6837_v53 = vld [vmem:[%s9265_s26 + $0x20] sm:$0xff] }
 0xb59   : > { %v3559_v50 = vsel %vm1207_vm1, %v3553_v49, 0.0  ;;  %7834 = vmatpush3.bf16.msra.mxu0 %v7831_v60  ;;  %v7867_v60 = vpack.c.bf16 %v3840_v9, %v3839_v26  ;;  %v6838_v54 = vld [vmem:[%s9265_s26 + $0x28] sm:$0xff]  ;;  %v6853_v9 = vld [vmem:[%s9265_s26 + $0x60] sm:$0xff] }
 0xb5a   : > { %3560 = vadd.xlane.f32.xlu1 %v3559_v50  ;;  %7828 = vmatprep.subr.bf16.mxu1 %v7827_v58 }
 0xb5b   : > { %7830 = vmatpush3.bf16.msra.mxu1 %v7827_v58  ;;  %7836 = vmatprep.subr.bf16.mxu0 %v7835_v62  ;;  %v7895_v58 = vpack.c.bf16 %v4194_v57, %v4193_v56  ;;  %v6839_v57 = vld [vmem:[%s9265_s26 + $0x30] sm:$0xff] }
 0xb5c   : > { %7864 = vmatprep.subr.bf16.mxu1 %v7863_v33 }
 0xb5d   : > { %7838 = vmatpush3.bf16.msra.mxu0 %v7835_v62  ;;  %v7899_v62 = vpack.c.bf16 %v4196_v61, %v4195_v59  ;;  %v6854_v59 = vld [vmem:[%s9265_s26 + $0x68] sm:$0xff]  ;;  %v6855_v61 = vld [vmem:[%s9265_s26 + $0x70] sm:$0xff] }
 0xb5e   : > { %7840 = vmatprep.subr.bf16.mxu0 %v7839_v3 }
 0xb61   : > { %7842 = vmatpush3.bf16.msra.mxu0 %v7839_v3  ;;  %v6845_v3 = vld [vmem:[%s9265_s26 + $0x40] sm:$0xff] }
 0xb62   : > { %7844 = vmatprep.subr.bf16.mxu0 %v7843_v6 }
 0xb65   : > { %7846 = vmatpush3.bf16.msra.mxu0 %v7843_v6  ;;  %v7911_v6 = vpack.c.bf16 %v6846_v5, %v6845_v3  ;;  %v6865_v3 = vld [vmem:[%s9268_s5 + $0x28] sm:$0xff]  ;;  %v6866_v5 = vld [vmem:[%s9268_s5 + $0x30] sm:$0xff] }
 0xb66   : > { %7848 = vmatprep.subr.bf16.mxu0 %v7847_v10 }
 0xb69   : > { %7850 = vmatpush3.bf16.msra.mxu0 %v7847_v10 }
 0xb6a   : > { %7852 = vmatprep.subr.bf16.mxu0 %v7851_v16 }
 0xb6d   : > { %7854 = vmatpush3.bf16.msra.mxu0 %v7851_v16 }
 0xb6e   : > { %7856 = vmatprep.subr.bf16.mxu0 %v7855_v18 }
 0xb71   : > { %7858 = vmatpush3.bf16.msra.mxu0 %v7855_v18 }
 0xb72   : > { %7860 = vmatprep.subr.bf16.mxu0 %v7859_v21 }
 0xb75   : > { %7862 = vmatpush3.bf16.msra.mxu0 %v7859_v21 }
 0xb76   : > { %7896 = vmatprep.subr.bf16.mxu0 %v7895_v58 }
 0xbe7   : > { %v3561_v42 = vpop.xlane.xlu1 %3560 }
 0xbe8   : > { %v3564_v22 = vmul.f32 0.03125, %v3561_v42 }
 0xbea   : > { %v3566_v28 = vsub.f32 %v3553_v49, %v3564_v22 }
 0xbec   : > { %v3568_v51 = vmul.f32 %v3566_v28, %v3566_v28 }
 0xbee   : > { %v3572_v47 = vsel %vm1207_vm1, %v3568_v51, 0.0 }
 0xbef   : > { %3573 = vadd.xlane.f32.xlu1 %v3572_v47 }
 0xc7c   : > { %v3574_v36 = vpop.xlane.xlu1 %3573 }
 0xc7d   : > { %v3576_v35 = vmul.f32 0.03125, %v3574_v36 }
 0xc7f   : > { %v3578_v11 = vadd.f32 1e-05, %v3576_v35 }
 0xc81   : > { %8120 = vrsqrt.f32 %v3578_v11  ;;  %v6806_v11 = vld [vmem:[%s9267_s3] ss:$0 sm:$0xff]  ;;  %s9269_s3 = sld [smem:[#allocation17_spill]] }
 0xc8b   : > { %v8121_v44 = vpop.eup %8120 }
 0xc8c   : > { %v3582_v63 = vmul.f32 %v8121_v44, %v3566_v28 }
 0xc8e   : > { %v3590_v2 = vmul.f32 %v8787_v29, %v3582_v63  ;;  %v6804_v29 = vld [vmem:[%s9263_s10] ss:$0 sm:$0xff]  ;;  %s9266_s10 = sld [smem:[#allocation14_spill]] }
 0xc90   : > { %v3598_v14 = vadd.f32 %v8790_v30, %v3590_v2  ;;  %v6812_v2 = vld [vmem:[%s9264_s15 + $0x30] sm:$0xff] }
 0xc92   : > { %7421 = vmatmul.mubr.msk.f32.vlgmr.msra.gmra.mrb[30].mxu1 %vm1207_vm1, %v3598_v14 }
 0xc93   : > { %7866 = vmatpush3.bf16.msra.mxu1 %v7863_v33  ;;  %v7903_v33 = vpack.c.bf16 %v6838_v54, %v6837_v53 }
 0xc94   : > { %7868 = vmatprep.subr.bf16.mxu1 %v7867_v60  ;;  %v6805_v17 = vld [vmem:[%s9266_s10] ss:$0 sm:$0xff]  ;;  %s9270_s10 = sld [smem:[#allocation19_spill]] }
 0xc97   : > { %7870 = vmatpush3.bf16.msra.mxu1 %v7867_v60  ;;  %v7919_v60 = vpack.c.bf16 %v6854_v59, %v6853_v9 }
 0xc98   : > { %7872 = vmatprep.subr.bf16.mxu1 %v7871_v4 }
 0xd65   : > { %v7422_v24 = vpop.f32.mrb[30].mxu1 }
 0xd66   : > { %v3688_v27 = vadd.f32 %v7422_v24, %v6801_v23  ;;  %v3682_v25 = vpop.f32.mrb[31].mxu1  ;;  %v6818_v24 = vld [vmem:[%s9264_s15 + $0x40] sm:$0xff] }
 0xd67   : > { %v3683_v55 = vadd.f32 %v6801_v23, %v3682_v25  ;;  %v7915_v25 = vpack.c.bf16 %v6848_v19, %v6847_v52  ;;  %v6815_v19 = vld [vmem:[%s9269_s3 + $0x1] ss:$0 sm:$0xff] }
 0xd68   : > { %v3692_v13 = vmax.f32 %v3688_v27, 0.0 }
 0xd69   : > { %v3691_v31 = vmax.f32 %v3683_v55, 0.0  ;;  %v6819_v55 = vld [vmem:[%s9264_s15 + $0x48] sm:$0xff] }
 0xd6b   : > { %7455 = vmatprep.mubr.f32.mxu0 %v3691_v31  ;;  %v4543_v31 = vld [vmem:[%s9268_s5] sm:$0xff] }
 0xd6c   : > { %7456 = vmatmul.mubr.f32.vlgmr.msra.gmra.mrb[28].mxu0 %v3692_v13  ;;  %v4544_v13 = vld [vmem:[%s9268_s5 + $0x8] sm:$0xff] }
 0xd6d   : > { %7898 = vmatpush3.bf16.msra.mxu0 %v7895_v58  ;;  %v6840_v58 = vld [vmem:[%s9265_s26 + $0x38] sm:$0xff] }
 0xd6e   : > { %7900 = vmatprep.subr.bf16.mxu0 %v7899_v62  ;;  %v7907_v26 = vpack.c.bf16 %v6840_v58, %v6839_v57  ;;  %v6858_v58 = vld [vmem:[%s9270_s10 + $0x3] ss:$0 sm:$0xff] }
 0xd71   : > { %7902 = vmatpush3.bf16.msra.mxu0 %v7899_v62  ;;  %v6856_v62 = vld [vmem:[%s9265_s26 + $0x78] sm:$0xff] }
 0xd72   : > { %7912 = vmatprep.subr.bf16.mxu0 %v7911_v6  ;;  %v7923_v0 = vpack.c.bf16 %v6856_v62, %v6855_v61 }
 0xe3f   : > { %v7457_v37 = vpop.f32.mrb[28].mxu0 }
 0xe40   : > { %v3788_v30 = vadd.f32 %v7457_v37, %v6804_v29  ;;  %v3782_v38 = vpop.f32.mrb[29].mxu0  ;;  %v7927_v37 = vpack.c.bf16 %v4544_v13, %v4543_v31 }
 0xe41   : > { %v3783_v39 = vadd.f32 %v6804_v29, %v3782_v38  ;;  %v7879_v29 = vpack.c.bf16 %v6819_v55, %v6818_v24  ;;  %v6821_v38 = vld [vmem:[%s9264_s15 + $0x58] sm:$0xff]  ;;  %v6850_v24 = vld [vmem:[%s9270_s10 + $0x2] ss:$0 sm:$0xff] }
 0xe42   : > { %v3792_v40 = vadd.f32 %v3788_v30, %v3598_v14  ;;  %v6813_v14 = vld [vmem:[%s9264_s15 + $0x38] sm:$0xff]  ;;  %v6820_v30 = vld [vmem:[%s9264_s15 + $0x50] sm:$0xff] }
 0xe43   : > { %v3791_v41 = vadd.f32 %v3783_v39, %v8794_v34  ;;  %v7875_v27 = vpack.c.bf16 %v6813_v14, %v6812_v2  ;;  %v4545_v39 = vld [vmem:[%s9268_s5 + $0x10] sm:$0xff] }
 0xe44   : > { %v3798_v43 = vsel %vm1207_vm1, %v3792_v40, 0.0 }
 0xe45   : > { %3799 = vadd.xlane.f32.xlu1 %v3798_v43  ;;  %v3795_v45 = vsel %vm1207_vm1, %v3791_v41, 0.0 }
 0xe46   : > { %3796 = vadd.xlane.f32.xlu0 %v3795_v45  ;;  %v6826_v45 = vld [vmem:[%s9264_s15 + $0x60] sm:$0xff] }
 0xed2   : > { %v3800_v46 = vpop.xlane.xlu1 %3799 }
 0xed3   : > { %v3802_v48 = vmul.f32 0.03125, %v3800_v46  ;;  %v3797_v49 = vpop.xlane.xlu0 %3796  ;;  %v6827_v46 = vld [vmem:[%s9264_s15 + $0x68] sm:$0xff] }
 0xed4   : > { %v3801_v50 = vmul.f32 0.03125, %v3797_v49  ;;  %v6873_v49 = vld [vmem:[%s9268_s5 + $0x48] sm:$0xff] }
 0xed5   : > { %v3804_v42 = vsub.f32 %v3792_v40, %v3802_v48  ;;  %v4546_v40 = vld [vmem:[%s9268_s5 + $0x18] sm:$0xff]  ;;  %v6872_v48 = vld [vmem:[%s9268_s5 + $0x40] sm:$0xff] }
 0xed6   : > { %v3803_v22 = vsub.f32 %v3791_v41, %v3801_v50  ;;  %v7883_v41 = vpack.c.bf16 %v6821_v38, %v6820_v30  ;;  %v7931_v43 = vpack.c.bf16 %v4546_v40, %v4545_v39  ;;  %v7887_v50 = vpack.c.bf16 %v6827_v46, %v6826_v45  ;;  %v8970_v46 = vld [vmem:[%s9269_s3 + $0x3] ss:$0 sm:$0xff] }
 0xed7   : > { %v3806_v28 = vmul.f32 %v3804_v42, %v3804_v42 }
 0xed8   : > { %v3805_v34 = vmul.f32 %v3803_v22, %v3803_v22 }
 0xed9   : > { %v3810_v51 = vsel %vm1207_vm1, %v3806_v28, 0.0  ;;  %v6829_v28 = vld [vmem:[%s9264_s15 + $0x78] sm:$0xff] }
 0xeda   : > { %3811 = vadd.xlane.f32.xlu1 %v3810_v51  ;;  %v3807_v47 = vsel %vm1207_vm1, %v3805_v34, 0.0  ;;  %v6874_v34 = vld [vmem:[%s9268_s5 + $0x50] sm:$0xff]  ;;  %v6875_v51 = vld [vmem:[%s9268_s5 + $0x58] sm:$0xff] }
 0xedb   : > { %3808 = vadd.xlane.f32.xlu0 %v3807_v47  ;;  %v7947_v56 = vpack.c.bf16 %v6875_v51, %v6874_v34  ;;  %v6842_v51 = vld [vmem:[%s9270_s10 + $0x1] ss:$0 sm:$0xff] }
 0xf67   : > { %v3812_v7 = vpop.xlane.xlu1 %3811 }
 0xf68   : > { %v3814_v8 = vmul.f32 0.03125, %v3812_v7  ;;  %v3809_v10 = vpop.xlane.xlu0 %3808 }
 0xf69   : > { %v3813_v12 = vmul.f32 0.03125, %v3809_v10  ;;  %v6881_v10 = vld [vmem:[%s9268_s5 + $0x68] sm:$0xff] }
 0xf6a   : > { %v3816_v15 = vadd.f32 1e-05, %v3814_v8  ;;  %v6880_v8 = vld [vmem:[%s9268_s5 + $0x60] sm:$0xff] }
 0xf6b   : > { %v3815_v16 = vadd.f32 1e-05, %v3813_v12  ;;  %v7951_v12 = vpack.c.bf16 %v6881_v10, %v6880_v8 }
 0xf6c   : > { %8122 = vrsqrt.f32 %v3816_v15  ;;  %v6882_v15 = vld [vmem:[%s9268_s5 + $0x70] sm:$0xff] }
 0xf6d   : > { %8124 = vrsqrt.f32 %v3815_v16  ;;  %v6883_v16 = vld [vmem:[%s9268_s5 + $0x78] sm:$0xff] }
 0xf76   : > { %v8123_v32 = vpop.eup %8122 }
 0xf77   : > { %v8125_v18 = vpop.eup %8124  ;;  %v3820_v36 = vmul.f32 %v8123_v32, %v3804_v42  ;;  %v7943_v42 = vpack.c.bf16 %v6873_v49, %v6872_v48  ;;  %v7955_v32 = vpack.c.bf16 %v6883_v16, %v6882_v15 }
 0xf78   : > { %v3819_v35 = vmul.f32 %v8125_v18, %v3803_v22  ;;  %v6828_v22 = vld [vmem:[%s9264_s15 + $0x70] sm:$0xff]  ;;  %v6834_v18 = vld [vmem:[%s9270_s10] ss:$0 sm:$0xff] }
 0xf79   : > { %v3828_v44 = vmul.f32 %v6805_v17, %v3820_v36  ;;  %v7891_v47 = vpack.c.bf16 %v6829_v28, %v6828_v22 }
 0xf7a   : > { %v3827_v63 = vmul.f32 %v6805_v17, %v3819_v35  ;;  %v6807_v17 = vld [vmem:[%s9269_s3] ss:$0 sm:$0xff] }
 0xf7b   : > { %v8853_v23 = vadd.f32 %v6806_v11, %v3828_v44 }
 0xf7c   : > { %v8851_v21 = vadd.f32 %v6806_v11, %v3827_v63 }
 0xf7e   : > { %7466 = vmatprep.mubr.msk.f32.mxu1 %vm1207_vm1, %v8851_v21  ;;  %7510 = vmatprep.mubr.msk.f32.mxu0 %vm1207_vm1, %v8851_v21 }
 0xf7f   : > { %7467 = vmatmul.mubr.msk.f32.vlgmr.msra.gmra.mrb[32].mxu1 %vm1207_vm1, %v8853_v23  ;;  %7511 = vmatmul.mubr.msk.f32.vlgmr.msra.gmra.mrb[30].mxu0 %vm1207_vm1, %v8853_v23 }
 0xf80   : > { %7874 = vmatpush3.bf16.msra.mxu1 %v7871_v4  ;;  %7914 = vmatpush3.bf16.msra.mxu0 %v7911_v6  ;;  %v7935_v4 = vpack.c.bf16 %v6865_v3, %v6864_v1  ;;  %v6867_v6 = vld [vmem:[%s9268_s5 + $0x38] sm:$0xff]  ;;  %s9271_s5 = sld [smem:[#allocation21_spill]] }
 0xf81   : > { %7477 = vmatprep.mubr.msk.f32.mxu1 %vm1207_vm1, %v8851_v21  ;;  %7532 = vmatprep.mubr.msk.f32.mxu0 %vm1207_vm1, %v8851_v21  ;;  %v7939_v7 = vpack.c.bf16 %v6867_v6, %v6866_v5 }
 0xf82   : > { %7876 = vmatprep.subr.bf16.mxu1 %v7875_v27  ;;  %7916 = vmatprep.subr.bf16.mxu0 %v7915_v25 }
 0xf84   : > { %7878 = vmatpush3.bf16.msra.mxu1 %v7875_v27  ;;  %7918 = vmatpush3.bf16.msra.mxu0 %v7915_v25 }
 0xf85   : > { %7880 = vmatprep.subr.bf16.mxu1 %v7879_v29  ;;  %7928 = vmatprep.subr.bf16.mxu0 %v7927_v37 }
 0xf86   : > { %v8960_v30 = vld [vmem:[%s9271_s5] ss:$0 sm:$0xff]  ;;  %v8973_v48 = vld [vmem:[%s9271_s5 + $0x2] ss:$0 sm:$0xff]  ;;  %v6869_v61 = vld [vmem:[%s9271_s5 + $0x1] ss:$0 sm:$0xff] }
 0xf87   : > { %7478 = vmatmul.mubr.msk.f32.vlgmr.msra.gmra.mrb[34].mxu1 %vm1207_vm1, %v8853_v23  ;;  %7533 = vmatmul.mubr.msk.f32.vlgmr.msra.gmra.mrb[32].mxu0 %vm1207_vm1, %v8853_v23 }
 0xf88   : > { %7882 = vmatpush3.bf16.msra.mxu1 %v7879_v29  ;;  %7488 = vmatprep.mubr.msk.f32.mxu1 %vm1207_vm1, %v8851_v21 }
 0xf89   : > { %7930 = vmatpush3.bf16.msra.mxu0 %v7927_v37  ;;  %7554 = vmatprep.mubr.msk.f32.mxu0 %vm1207_vm1, %v8851_v21  ;;  %v6823_v37 = vld [vmem:[%s9269_s3 + $0x2] ss:$0 sm:$0xff]  ;;  %s9272_s3 = sld [smem:[#allocation22_spill]] }
 0xf8a   : > { %7884 = vmatprep.subr.bf16.mxu1 %v7883_v41  ;;  %7932 = vmatprep.subr.bf16.mxu0 %v7931_v43 }
 0xf8c   : > { %7886 = vmatpush3.bf16.msra.mxu1 %v7883_v41 }
 0xf8d   : > { %7934 = vmatpush3.bf16.msra.mxu0 %v7931_v43  ;;  %7888 = vmatprep.subr.bf16.mxu1 %v7887_v50 }
 0xf8e   : > { %7944 = vmatprep.subr.bf16.mxu0 %v7943_v42 }
 0xf8f   : > { %7489 = vmatmul.mubr.msk.f32.vlgmr.msra.gmra.mrb[36].mxu1 %vm1207_vm1, %v8853_v23 }
 0xf90   : > { %7555 = vmatmul.mubr.msk.f32.vlgmr.msra.gmra.mrb[34].mxu0 %vm1207_vm1, %v8853_v23  ;;  %7890 = vmatpush3.bf16.msra.mxu1 %v7887_v50 }
 0xf91   : > { %7499 = vmatprep.mubr.msk.f32.mxu1 %vm1207_vm1, %v8851_v21  ;;  %7946 = vmatpush3.bf16.msra.mxu0 %v7943_v42 }
 0xf92   : > { %7576 = vmatprep.mubr.msk.f32.mxu0 %vm1207_vm1, %v8851_v21  ;;  %7892 = vmatprep.subr.bf16.mxu1 %v7891_v47 }
 0xf93   : > { %7948 = vmatprep.subr.bf16.mxu0 %v7947_v56 }
 0xf94   : > { %7894 = vmatpush3.bf16.msra.mxu1 %v7891_v47 }
 0xf95   : > { %7950 = vmatpush3.bf16.msra.mxu0 %v7947_v56  ;;  %7904 = vmatprep.subr.bf16.mxu1 %v7903_v33 }
 0xf96   : > { %7590 = vmatprep.subr.mxu0 %v8266_v20 }
 0xf97   : > { %7500 = vmatmul.mubr.msk.f32.vlgmr.msra.gmra.mrb[38].mxu1 %vm1207_vm1, %v8853_v23 }
 0xf98   : > { %7577 = vmatmul.mubr.msk.f32.vlgmr.msra.gmra.mrb[36].mxu0 %vm1207_vm1, %v8853_v23  ;;  %7906 = vmatpush3.bf16.msra.mxu1 %v7903_v33 }
 0xf99   : > { %7521 = vmatprep.mubr.msk.f32.mxu1 %vm1207_vm1, %v8851_v21  ;;  %7908 = vmatprep.subr.bf16.mxu1 %v7907_v26 }
 0xf9a   : > { %7592 = vmatprep.mubr.msk.f32.mxu0 %vm8267_vm2, %v8266_v20 }
 0xf9c   : > { %7910 = vmatpush3.bf16.msra.mxu1 %v7907_v26 }
 0xf9d   : > { %7920 = vmatprep.subr.bf16.mxu1 %v7919_v60 }
 0xf9f   : > { %7522 = vmatmul.mubr.msk.f32.vlgmr.msra.gmra.mrb[40].mxu1 %vm1207_vm1, %v8853_v23 }
 0xfa0   : > { %7922 = vmatpush3.bf16.msra.mxu1 %v7919_v60  ;;  %7543 = vmatprep.mubr.msk.f32.mxu1 %vm1207_vm1, %v8851_v21 }
 0xfa1   : > { %7924 = vmatprep.subr.bf16.mxu1 %v7923_v0 }
 0xfa4   : > { %7926 = vmatpush3.bf16.msra.mxu1 %v7923_v0 }
 0xfa5   : > { %7936 = vmatprep.subr.bf16.mxu1 %v7935_v4 }
 0xfa7   : > { %7544 = vmatmul.mubr.msk.f32.vlgmr.msra.gmra.mrb[42].mxu1 %vm1207_vm1, %v8853_v23 }
 0xfa8   : > { %7938 = vmatpush3.bf16.msra.mxu1 %v7935_v4  ;;  %7565 = vmatprep.mubr.msk.f32.mxu1 %vm1207_vm1, %v8851_v21  ;;  %v6885_v4 = vld [vmem:[%s9271_s5 + $0x3] ss:$0 sm:$0xff]  ;;  %s9274_s5 = sld [smem:[#allocation24_spill]] }
 0xfa9   : > { %7940 = vmatprep.subr.bf16.mxu1 %v7939_v7 }
 0xfac   : > { %7942 = vmatpush3.bf16.msra.mxu1 %v7939_v7 }
 0xfad   : > { %7952 = vmatprep.subr.bf16.mxu1 %v7951_v12 }
 0xfaf   : > { %7566 = vmatmul.mubr.msk.f32.vlgmr.msra.gmra.mrb[44].mxu1 %vm1207_vm1, %v8853_v23 }
 0xfb0   : > { %7954 = vmatpush3.bf16.msra.mxu1 %v7951_v12  ;;  %7587 = vmatprep.mubr.msk.f32.mxu1 %vm1207_vm1, %v8851_v21 }
 0xfb1   : > { %7956 = vmatprep.subr.bf16.mxu1 %v7955_v32 }
 0xfb4   : > { %7958 = vmatpush3.bf16.msra.mxu1 %v7955_v32 }
 0xfb5   : > { %7600 = vmatprep.subr.mxu1 %v8266_v20 }
 0xfb7   : > { %7588 = vmatmul.mubr.msk.f32.vlgmr.msra.gmra.mrb[46].mxu1 %vm1207_vm1, %v8853_v23 }
 0xfb8   : > { %7602 = vmatprep.mubr.msk.f32.mxu1 %vm8267_vm2, %v8266_v20 }
0x1052   : > { %v7468_v36 = vpop.f32.mrb[32].mxu1  ;;  %v7512_v35 = vpop.f32.mrb[30].mxu0 }
0x1053   : > { %v8943_v11 = vadd.f32 %v7468_v36, %v6807_v17  ;;  %v8945_v44 = vadd.f32 %v7512_v35, %v6834_v18  ;;  %v3920_v63 = vpop.f32.mrb[33].mxu1  ;;  %v4270_v2 = vpop.f32.mrb[31].mxu0 }
0x1054   : > { %v4271_v14 = vadd.f32 %v6834_v18, %v4270_v2  ;;  %v3921_v52 = vadd.f32 %v6807_v17, %v3920_v63 }
0x1056   : > { %7591 = vmatpush3.xpose.msk.msra.mxu0 %vm1110_vm0, %v4271_v14 }
0x1057   : > { %7595 = vmatprep.subr.mxu0 %v8266_v20 }
0x1059   : > { %7593 = vmatmul.mubr.msk.f32.vlgmr.msra.gmra.mrb[38].mxu0 %vm1110_vm0, %v3921_v52 }
0x105a   : > { %v7479_v27 = vpop.f32.mrb[34].mxu1  ;;  %v7534_v25 = vpop.f32.mrb[32].mxu0  ;;  %7597 = vmatprep.mubr.msk.f32.mxu0 %vm8267_vm2, %v8266_v20 }
0x105b   : > { %v8954_v55 = vadd.f32 %v7479_v27, %v6815_v19  ;;  %v8956_v31 = vadd.f32 %v7534_v25, %v6850_v24  ;;  %v4008_v13 = vpop.f32.mrb[35].mxu1  ;;  %v4446_v29 = vpop.f32.mrb[33].mxu0 }
0x105c   : > { %v4009_v33 = vadd.f32 %v6815_v19, %v4008_v13  ;;  %v4447_v57 = vadd.f32 %v6850_v24, %v4446_v29 }
0x1062   : > { %v7490_v38 = vpop.f32.mrb[36].mxu1 }
0x1063   : > { %v8962_v39 = vadd.f32 %v7490_v38, %v6823_v37  ;;  %v7556_v40 = vpop.f32.mrb[34].mxu0  ;;  %v4096_v41 = vpop.f32.mrb[37].mxu1 }
0x1064   : > { %v8965_v43 = vadd.f32 %v7556_v40, %v8960_v30  ;;  %v8967_v45 = vpop.f32.mrb[35].mxu0  ;;  %v4097_v9 = vadd.f32 %v6823_v37, %v4096_v41 }
0x106a   : > { %v7501_v49 = vpop.f32.mrb[38].mxu1 }
0x106b   : > { %v8976_v50 = vadd.f32 %v7501_v49, %v8970_v46  ;;  %v7578_v42 = vpop.f32.mrb[36].mxu0  ;;  %v8978_v22 = vpop.f32.mrb[39].mxu1  ;;  %v4621_v49 = vadd.f32 %v8960_v30, %v8967_v45 }
0x106c   : > { %v8981_v28 = vadd.f32 %v7578_v42, %v8973_v48  ;;  %v8983_v34 = vpop.f32.mrb[37].mxu0  ;;  %v4185_v41 = vadd.f32 %v8970_v46, %v8978_v22 }
0x1072   : > { %v7523_v47 = vpop.f32.mrb[40].mxu1 }
0x1073   : > { %v8986_v53 = vadd.f32 %v7523_v47, %v6842_v51  ;;  %v4358_v54 = vpop.f32.mrb[41].mxu1 }
0x1074   : > { %v4359_v56 = vadd.f32 %v6842_v51, %v4358_v54 }
0x1076   : > { %7596 = vmatpush3.xpose.msk.msra.mxu0 %vm1110_vm0, %v4359_v56 }
0x1077   : > { %7605 = vmatprep.subr.mxu0 %v8266_v20 }
0x1079   : > { %7598 = vmatmul.mubr.msk.f32.vlgmr.msra.gmra.mrb[40].mxu0 %vm1110_vm0, %v4009_v33 }
0x107a   : > { %v7545_v26 = vpop.f32.mrb[42].mxu1  ;;  %7606 = vmatpush3.xpose.msk.msra.mxu0 %vm1110_vm0, %v4447_v57  ;;  %7607 = vmatprep.mubr.msk.f32.mxu0 %vm8267_vm2, %v8266_v20 }
0x107b   : > { %v8995_v59 = vadd.f32 %v7545_v26, %v6858_v58  ;;  %v4534_v60 = vpop.f32.mrb[43].mxu1  ;;  %7615 = vmatprep.subr.mxu0 %v8266_v20 }
0x107c   : > { %v4535_v40 = vadd.f32 %v6858_v58, %v4534_v60 }
0x107d   : > { %7608 = vmatmul.mubr.msk.f32.vlgmr.msra.gmra.mrb[42].mxu0 %vm1110_vm0, %v4097_v9 }
0x107e   : > { %7617 = vmatprep.mubr.msk.f32.mxu0 %vm8267_vm2, %v8266_v20 }
0x1082   : > { %v7567_v62 = vpop.f32.mrb[44].mxu1 }
0x1083   : > { %v9002_v0 = vadd.f32 %v7567_v62, %v6869_v61  ;;  %v4708_v1 = vpop.f32.mrb[45].mxu1 }
0x1084   : > { %v4709_v3 = vadd.f32 %v6869_v61, %v4708_v1 }
0x1086   : > { %7601 = vmatpush3.msra.mxu1 %v4709_v3 }
0x1087   : > { %7610 = vmatprep.subr.mxu1 %v8266_v20 }
0x108a   : > { %v7589_v5 = vpop.f32.mrb[46].mxu1 }
0x108b   : > { %v9006_v6 = vadd.f32 %v7589_v5, %v6885_v4  ;;  %v4884_v7 = vpop.f32.mrb[47].mxu1 }
0x108c   : > { %v4885_v8 = vadd.f32 %v6885_v4, %v4884_v7 }
0x108e   : > { %7616 = vmatpush3.msra.mxu0 %v4885_v8 }
0x108f   : > { %7625 = vmatprep.subr.mxu0 %v8266_v20 }
0x112c   : > { %v4965_v10 = vpop.f32.mrb[38].mxu0 }
0x112d   : > { %v7594_v12 = vpop.f32.mrb[39].mxu0  ;;  %v4969_v26 = vmul.f32 0.35355338, %v4965_v10  ;;  %v4797_v10 = vadd.f32 %v8973_v48, %v8983_v34 }
0x112f   : > { %v4970_v60 = vsel %vm1110_vm0, %v4969_v26, -inf }
0x114c   : > { %v5053_v15 = vpop.f32.mrb[40].mxu0 }
0x114d   : > { %v5057_v16 = vmul.f32 0.35355338, %v5053_v15  ;;  %v7599_v32 = vpop.f32.mrb[41].mxu0 }
0x114f   : > { %v5058_v17 = vsel %vm1110_vm0, %v5057_v16, -inf }
0x1150   : > { %5059 = vmax.xlane.f32.xlu0 %v5058_v17  ;;  %v5214_v18 = vpop.f32.mrb[42].mxu0 }
0x1151   : > { %v7609_v36 = vpop.f32.mrb[43].mxu0  ;;  %v5218_v52 = vmul.f32 0.35355338, %v5214_v18 }
0x1153   : > { %v5219_v24 = vsel %vm1110_vm0, %v5218_v52, -inf }
0x11dd   : > { %v5060_v35 = vpop.xlane.xlu0 %5059 }
0x11de   : > { %v5061_v63 = vsub.f32 %v5057_v16, %v5060_v35 }
0x11e0   : > { %v5062_v2 = vmul.f32 1.442695, %v5061_v63 }
0x11e2   : > { %8126 = vpow2.f32 %v5062_v2 }
0x11ec   : > { %v8127_v14 = vpop.eup %8126 }
0x11ed   : > { %v5064_v19 = vsel %vm1110_vm0, %v8127_v14, 0.0 }
0x11ee   : > { %5065 = vadd.xlane.f32.xlu1 %v5064_v19 }
0x11f2   : > { %5220 = vmax.xlane.f32.xlu1 %v5219_v24 }
0x127b   : > { %v5066_v27 = vpop.xlane.xlu1 %5065 }
0x127c   : > { %8128 = vrcp.f32 %v5066_v27 }
0x127f   : > { %v5221_v25 = vpop.xlane.xlu1 %5220 }
0x1280   : > { %v5222_v13 = vsub.f32 %v5218_v52, %v5221_v25 }
0x1282   : > { %v5223_v29 = vmul.f32 1.442695, %v5222_v13 }
0x1284   : > { %8130 = vpow2.f32 %v5223_v29 }
0x1286   : > { %v8129_v37 = vpop.eup %8128 }
0x1287   : > { %v5068_v38 = vmul.f32 %v8129_v37, %v8127_v14 }
0x1289   : > { %7603 = vmatmul.mubr.msk.f32.vlgmr.msra.gmra.mrb[48].mxu1 %vm1110_vm0, %v5068_v38 }
0x128a   : > { %7611 = vmatpush3.xpose.msk.msra.mxu1 %vm1110_vm0, %v4535_v40  ;;  %7612 = vmatprep.mubr.msk.f32.mxu1 %vm8267_vm2, %v8266_v20 }
0x128b   : > { %7620 = vmatprep.subr.mxu1 %v8266_v20 }
0x128d   : > { %7613 = vmatmul.mubr.msk.f32.vlgmr.msra.gmra.mrb[50].mxu1 %vm1110_vm0, %v4185_v41 }
0x128e   : > { %v8131_v42 = vpop.eup %8130  ;;  %7621 = vmatpush3.msra.mxu1 %v4621_v49  ;;  %7622 = vmatprep.mubr.msk.f32.mxu1 %vm8267_vm2, %v8266_v20 }
0x128f   : > { %v5225_v51 = vsel %vm1110_vm0, %v8131_v42, 0.0  ;;  %7630 = vmatprep.subr.mxu1 %v8266_v20 }
0x1290   : > { %5226 = vadd.xlane.f32.xlu1 %v5225_v51 }
0x131d   : > { %v5227_v61 = vpop.xlane.xlu1 %5226 }
0x135c   : > { %v9026_v47 = vpop.f32.mrb[48].mxu1 }
0x135d   : > { %v7604_v46 = vpop.f32.mrb[49].mxu1 }
0x1360   : > { %v5302_v22 = vpop.f32.mrb[50].mxu1 }
0x1361   : > { %v5306_v54 = vmul.f32 0.35355338, %v5302_v22  ;;  %v7614_v56 = vpop.f32.mrb[51].mxu1 }
0x1363   : > { %v5307_v30 = vsel %vm1110_vm0, %v5306_v54, -inf }
0x1364   : > { %5308 = vmax.xlane.f32.xlu0 %v5307_v30 }
0x13f1   : > { %v5309_v45 = vpop.xlane.xlu0 %5308 }
0x13f2   : > { %v5310_v33 = vsub.f32 %v5306_v54, %v5309_v45 }
0x13f4   : > { %v5311_v57 = vmul.f32 1.442695, %v5310_v33 }
0x13f6   : > { %8132 = vpow2.f32 %v5311_v57 }
0x1400   : > { %v8133_v58 = vpop.eup %8132 }
0x1401   : > { %v5313_v9 = vsel %vm1110_vm0, %v8133_v58, 0.0 }
0x1402   : > { %5314 = vadd.xlane.f32.xlu0 %v5313_v9 }
0x1406   : > { %4971 = vmax.xlane.f32.xlu0 %v4970_v60 }
0x148f   : > { %v5315_v62 = vpop.xlane.xlu0 %5314 }
0x1490   : > { %8134 = vrcp.f32 %v5315_v62 }
0x1491   : > { %8136 = vrcp.f32 %v5227_v61 }
0x1493   : > { %v4972_v1 = vpop.xlane.xlu0 %4971 }
0x1494   : > { %v4973_v3 = vsub.f32 %v4969_v26, %v4972_v1 }
0x1496   : > { %v4974_v4 = vmul.f32 1.442695, %v4973_v3 }
0x1498   : > { %8138 = vpow2.f32 %v4974_v4 }
0x149a   : > { %v8135_v5 = vpop.eup %8134 }
0x149b   : > { %v5317_v7 = vmul.f32 %v8135_v5, %v8133_v58  ;;  %v8137_v8 = vpop.eup %8136 }
0x149c   : > { %v5229_v12 = vmul.f32 %v8137_v8, %v8131_v42 }
0x149d   : > { %7618 = vmatmul.mubr.msk.f32.vlgmr.msra.gmra.mrb[44].mxu0 %vm1110_vm0, %v5317_v7 }
0x149e   : > { %7626 = vmatpush3.msra.mxu0 %v4797_v10  ;;  %7627 = vmatprep.mubr.msk.f32.mxu0 %vm8267_vm2, %v8266_v20 }
0x149f   : > { %7635 = vmatprep.subr.mxu0 %v8266_v20 }
0x14a1   : > { %7628 = vmatmul.mubr.msk.f32.vlgmr.msra.gmra.mrb[46].mxu0 %vm1110_vm0, %v5229_v12 }
0x14a2   : > { %v8139_v15 = vpop.eup %8138  ;;  %7637 = vmatprep.mubr.msk.f32.mxu0 %vm8267_vm2, %v8266_v20 }
0x14a3   : > { %v4976_v16 = vsel %vm1110_vm0, %v8139_v15, 0.0 }
0x14a4   : > { %4977 = vadd.xlane.f32.xlu0 %v4976_v16 }
0x14a5   : > { %7636 = vmatpush3.xpose.msk.msra.mxu0 %vm1110_vm0, %v8986_v53 }
0x14a6   : > { %7645 = vmatprep.subr.mxu0 %v8266_v20 }
0x14a8   : > { %7638 = vmatmul.mubr.msk.f32.vlgmr.msra.gmra.mrb[48].mxu0 %vm1110_vm0, %v8954_v55 }
0x14a9   : > { %7646 = vmatpush3.xpose.msk.msra.mxu0 %vm1110_vm0, %v8956_v31  ;;  %7647 = vmatprep.mubr.msk.f32.mxu0 %vm8267_vm2, %v8266_v20 }
0x14aa   : > { %7655 = vmatprep.subr.mxu0 %v8266_v20 }
0x14ac   : > { %7648 = vmatmul.mubr.msk.f32.vlgmr.msra.gmra.mrb[50].mxu0 %vm1110_vm0, %v8962_v39 }
0x14ad   : > { %7656 = vmatpush3.msra.mxu0 %v9006_v6  ;;  %7657 = vmatprep.mubr.msk.f32.mxu0 %vm8267_vm2, %v8266_v20 }
0x14ae   : > { %7665 = vmatprep.subr.mxu0 %v8266_v20 }
0x1531   : > { %v4978_v48 = vpop.xlane.xlu0 %4977 }
0x1532   : > { %8140 = vrcp.f32 %v4978_v48 }
0x153c   : > { %v8141_v55 = vpop.eup %8140 }
0x153d   : > { %v4980_v34 = vmul.f32 %v8141_v55, %v8139_v15 }
0x153f   : > { %7623 = vmatmul.mubr.msk.f32.vlgmr.msra.gmra.mrb[52].mxu1 %vm1110_vm0, %v4980_v34 }
0x1540   : > { %7631 = vmatpush3.xpose.msk.msra.mxu1 %vm1110_vm0, %v8945_v44  ;;  %7632 = vmatprep.mubr.msk.f32.mxu1 %vm8267_vm2, %v8266_v20 }
0x1541   : > { %7640 = vmatprep.subr.mxu1 %v8266_v20 }
0x1543   : > { %7633 = vmatmul.mubr.msk.f32.vlgmr.msra.gmra.mrb[54].mxu1 %vm1110_vm0, %v8943_v11 }
0x1544   : > { %7641 = vmatpush3.msra.mxu1 %v9002_v0  ;;  %7642 = vmatprep.mubr.msk.f32.mxu1 %vm8267_vm2, %v8266_v20 }
0x1545   : > { %7650 = vmatprep.subr.mxu1 %v8266_v20 }
0x1570   : > { %v5387_v31 = vpop.f32.mrb[44].mxu0 }
0x1571   : > { %v7619_v39 = vpop.f32.mrb[45].mxu0 }
0x1574   : > { %v5533_v53 = vpop.f32.mrb[46].mxu0 }
0x1575   : > { %v5534_v6 = vadd.f32 %v5533_v53, %v5387_v31  ;;  %v7629_v44 = vpop.f32.mrb[47].mxu0 }
0x157b   : > { %v5698_v32 = vpop.f32.mrb[48].mxu0 }
0x157c   : > { %v5702_v17 = vmul.f32 0.35355338, %v5698_v32  ;;  %v7639_v18 = vpop.f32.mrb[49].mxu0 }
0x157e   : > { %v5703_v36 = vsel %vm1110_vm0, %v5702_v17, -inf }
0x157f   : > { %5704 = vmax.xlane.f32.xlu1 %v5703_v36  ;;  %v5859_v35 = vpop.f32.mrb[50].mxu0 }
0x1580   : > { %v7649_v11 = vpop.f32.mrb[51].mxu0  ;;  %v5863_v30 = vmul.f32 0.35355338, %v5859_v35 }
0x160c   : > { %v5705_v63 = vpop.xlane.xlu1 %5704 }
0x160d   : > { %v5706_v0 = vsub.f32 %v5702_v17, %v5705_v63 }
0x160f   : > { %v5707_v2 = vmul.f32 1.442695, %v5706_v0 }
0x1611   : > { %8142 = vpow2.f32 %v5707_v2  ;;  %v9108_v2 = vld [vmem:[%s9274_s5] ss:$0 sm:$0xff]  ;;  %s9276_s5 = sld [smem:[#allocation27_spill]] }
0x1612   : > { %v5460_v14 = vpop.f32.mrb[52].mxu1 }
0x1613   : > { %v5461_v52 = vadd.f32 %v5460_v14, %v9026_v47  ;;  %v7624_v19 = vpop.f32.mrb[53].mxu1 }
0x1615   : > { %v5537_v24 = vadd.f32 %v5534_v6, %v5461_v52 }
0x1616   : > { %v5610_v27 = vpop.f32.mrb[54].mxu1 }
0x1617   : > { %v7634_v25 = vpop.f32.mrb[55].mxu1  ;;  %v5614_v29 = vmul.f32 0.35355338, %v5610_v27 }
0x1619   : > { %v5615_v38 = vsel %vm1110_vm0, %v5614_v29, -inf }
0x161b   : > { %v8143_v13 = vpop.eup %8142 }
0x161c   : > { %v5709_v37 = vsel %vm1110_vm0, %v8143_v13, 0.0 }
0x161d   : > { %5710 = vadd.xlane.f32.xlu1 %v5709_v37 }
0x1621   : > { %5616 = vmax.xlane.f32.xlu1 %v5615_v38 }
0x16aa   : > { %v5711_v40 = vpop.xlane.xlu1 %5710 }
0x16ab   : > { %8144 = vrcp.f32 %v5711_v40 }
0x16ae   : > { %v5617_v42 = vpop.xlane.xlu1 %5616 }
0x16af   : > { %v5618_v51 = vsub.f32 %v5614_v29, %v5617_v42 }
0x16b1   : > { %v5619_v47 = vmul.f32 1.442695, %v5618_v51 }
0x16b3   : > { %8146 = vpow2.f32 %v5619_v47 }
0x16b5   : > { %v8145_v41 = vpop.eup %8144 }
0x16b6   : > { %v5713_v49 = vmul.f32 %v8145_v41, %v8143_v13 }
0x16b8   : > { %7643 = vmatmul.mubr.msk.f32.vlgmr.msra.gmra.mrb[56].mxu1 %vm1110_vm0, %v5713_v49 }
0x16b9   : > { %7651 = vmatpush3.xpose.msk.msra.mxu1 %vm1110_vm0, %v8995_v59  ;;  %7652 = vmatprep.mubr.msk.f32.mxu1 %vm8267_vm2, %v8266_v20 }
0x16ba   : > { %7660 = vmatprep.subr.mxu1 %v8266_v20 }
0x16bc   : > { %7653 = vmatmul.mubr.msk.f32.vlgmr.msra.gmra.mrb[58].mxu1 %vm1110_vm0, %v8976_v50  ;;  %v9088_v50 = vld [vmem:[%s9272_s3] ss:$0 sm:$0xff]  ;;  %s9273_s3 = sld [smem:[#allocation23_spill]] }
0x16bd   : > { %7661 = vmatpush3.msra.mxu1 %v8965_v43  ;;  %7662 = vmatprep.mubr.msk.f32.mxu1 %vm8267_vm2, %v8266_v20  ;;  %v5864_v43 = vsel %vm1110_vm0, %v5863_v30, -inf  ;;  %v6190_v33 = vadd.f32 %v9088_v50, %v5537_v24  ;;  %v8147_v57 = vpop.eup %8146 }
0x16be   : > { %v5621_v58 = vsel %vm1110_vm0, %v8147_v57, 0.0 }
0x16bf   : > { %v6192_v26 = vadd.f32 %v6190_v33, %v8851_v21 }
0x16c1   : > { %v6196_v9 = vsel %vm1207_vm1, %v6192_v26, 0.0 }
0x16c2   : > { %v9105_v63 = vld [vmem:[%s9273_s3] ss:$0 sm:$0xff]  ;;  %s9277_s3 = sld [smem:[#allocation26_spill]] }
0x178b   : > { %v9084_v46 = vpop.f32.mrb[56].mxu1 }
0x178c   : > { %v7644_v59 = vpop.f32.mrb[57].mxu1 }
0x178d   : > { %v6238_v59 = vld [vmem:[%s9275_s6] sm:$0xff] }
0x178f   : > { %v5947_v22 = vpop.f32.mrb[58].mxu1 }
0x1790   : > { %v5951_v54 = vmul.f32 0.35355338, %v5947_v22  ;;  %v7654_v56 = vpop.f32.mrb[59].mxu1  ;;  %v6239_v22 = vld [vmem:[%s9275_s6 + $0x8] sm:$0xff] }
0x1791   : > { %v6241_v56 = vld [vmem:[%s9275_s6 + $0x18] sm:$0xff] }
0x1792   : > { %v5952_v45 = vsel %vm1110_vm0, %v5951_v54, -inf }
0x1793   : > { %5953 = vmax.xlane.f32.xlu0 %v5952_v45  ;;  %v6332_v45 = vld [vmem:[%s9276_s5] sm:$0xff] }
0x1797   : > { %5865 = vmax.xlane.f32.xlu0 %v5864_v43  ;;  %v6334_v43 = vld [vmem:[%s9276_s5 + $0x10] sm:$0xff] }
0x179b   : > { %5622 = vadd.xlane.f32.xlu0 %v5621_v58 }
0x179f   : > { %6197 = vadd.xlane.f32.xlu0 %v6196_v9  ;;  %v6337_v9 = vld [vmem:[%s9276_s5 + $0x28] sm:$0xff] }
0x1820   : > { %v5954_v60 = vpop.xlane.xlu0 %5953 }
0x1821   : > { %v5955_v61 = vsub.f32 %v5951_v54, %v5954_v60  ;;  %v7959_v54 = vpack.c.bf16 %v6239_v22, %v6238_v59  ;;  %v6477_v59 = vld [vmem:[%s9252_s12 + $0x8] sm:$0xff] }
0x1823   : > { %v5956_v62 = vmul.f32 1.442695, %v5955_v61  ;;  %7960 = vmatprep.subr.bf16.mxu1 %v7959_v54  ;;  %v6338_v61 = vld [vmem:[%s9276_s5 + $0x30] sm:$0xff] }
0x1824   : > { %v5866_v1 = vpop.xlane.xlu0 %5865 }
0x1825   : > { %8148 = vpow2.f32 %v5956_v62  ;;  %v5867_v3 = vsub.f32 %v5863_v30, %v5866_v1  ;;  %v6339_v62 = vld [vmem:[%s9276_s5 + $0x38] sm:$0xff] }
0x1826   : > { %v7979_v1 = vpack.c.bf16 %v6339_v62, %v6338_v61  ;;  %v6920_v62 = vld [vmem:[%s9280_s4] ss:$0 sm:$0xff]  ;;  %s9165_s4 = scalar_lea.hbm %s8459_s27, %s6929_s9 }
0x1827   : > { %v5868_v4 = vmul.f32 1.442695, %v5867_v3  ;;  %v6340_v3 = vld [vmem:[%s9276_s5 + $0x40] sm:$0xff] }
0x1828   : > { %v5623_v5 = vpop.xlane.xlu0 %5622 }
0x1829   : > { %8150 = vpow2.f32 %v5868_v4  ;;  %v6341_v4 = vld [vmem:[%s9276_s5 + $0x48] sm:$0xff] }
0x182a   : > { %8152 = vrcp.f32 %v5623_v5  ;;  %v7983_v5 = vpack.c.bf16 %v6341_v4, %v6340_v3 }
0x182c   : > { %v6198_v7 = vpop.xlane.xlu0 %6197 }
0x182d   : > { %v6202_v8 = vmul.f32 0.03125, %v6198_v7  ;;  %v6342_v7 = vld [vmem:[%s9276_s5 + $0x50] sm:$0xff] }
0x182f   : > { %v8149_v10 = vpop.eup %8148  ;;  %v6204_v12 = vsub.f32 %v6192_v26, %v6202_v8  ;;  %v6336_v26 = vld [vmem:[%s9276_s5 + $0x20] sm:$0xff]  ;;  %v6343_v8 = vld [vmem:[%s9276_s5 + $0x58] sm:$0xff] }
0x1830   : > { %v5958_v21 = vsel %vm1110_vm0, %v8149_v10, 0.0  ;;  %v7975_v60 = vpack.c.bf16 %v6337_v9, %v6336_v26 }
0x1831   : > { %5959 = vadd.xlane.f32.xlu1 %v5958_v21  ;;  %v6206_v15 = vmul.f32 %v6204_v12, %v6204_v12  ;;  %v6345_v21 = vld [vmem:[%s9276_s5 + $0x68] sm:$0xff] }
0x1833   : > { %v8151_v16 = vpop.eup %8150  ;;  %v6208_v48 = vsel %vm1207_vm1, %v6206_v15, 0.0 }
0x1834   : > { %v8153_v55 = vpop.eup %8152  ;;  %6209 = vadd.xlane.f32.xlu0 %v6208_v48  ;;  %v5870_v34 = vsel %vm1110_vm0, %v8151_v16, 0.0 }
0x1835   : > { %v5625_v31 = vmul.f32 %v8153_v55, %v8147_v57  ;;  %5871 = vadd.xlane.f32.xlu1 %v5870_v34  ;;  %v6335_v57 = vld [vmem:[%s9276_s5 + $0x18] sm:$0xff] }
0x1836   : > { %v7971_v58 = vpack.c.bf16 %v6335_v57, %v6334_v43 }
0x1837   : > { %7663 = vmatmul.mubr.msk.f32.vlgmr.msra.gmra.mrb[60].mxu1 %vm1110_vm0, %v5625_v31 }
0x1838   : > { %7962 = vmatpush3.bf16.msra.mxu1 %v7959_v54  ;;  %v6478_v54 = vld [vmem:[%s9252_s12 + $0x10] sm:$0xff] }
0x18be   : > { %v5960_v39 = vpop.xlane.xlu1 %5959 }
0x18bf   : > { %8154 = vrcp.f32 %v5960_v39 }
0x18c1   : > { %v6210_v53 = vpop.xlane.xlu0 %6209 }
0x18c2   : > { %v6214_v6 = vmul.f32 0.03125, %v6210_v53  ;;  %v5872_v44 = vpop.xlane.xlu1 %5871 }
0x18c3   : > { %8156 = vrcp.f32 %v5872_v44  ;;  %v6347_v44 = vld [vmem:[%s9276_s5 + $0x78] sm:$0xff] }
0x18c4   : > { %v6216_v32 = vadd.f32 1e-05, %v6214_v6  ;;  %v6346_v6 = vld [vmem:[%s9276_s5 + $0x70] sm:$0xff] }
0x18c6   : > { %8158 = vrsqrt.f32 %v6216_v32  ;;  %v7995_v32 = vpack.c.bf16 %v6347_v44, %v6346_v6 }
0x18c9   : > { %v8155_v17 = vpop.eup %8154 }
0x18ca   : > { %v5962_v18 = vmul.f32 %v8155_v17, %v8149_v10  ;;  %v7987_v10 = vpack.c.bf16 %v6343_v8, %v6342_v7  ;;  %v6915_v17 = vld [vmem:[%s9277_s3] ss:$0 sm:$0xff]  ;;  %s1090_s3 = sand.u32 1, %s8220_s1  }
0x18cb   : > { %v6921_v7 = vld [vmem:[%s8454_s20] ss:$0 sm:$0xff]  ;;  %s9167_s10 = scalar_lea.sflag [#allocation3], %s1090_s3 }
0x18cc   : > { %7658 = vmatmul.mubr.msk.f32.vlgmr.msra.gmra.mrb[52].mxu0 %vm1110_vm0, %v5962_v18 }
0x18cd   : > { %v8157_v36 = vpop.eup %8156  ;;  %7666 = vmatpush3.msra.mxu0 %v8981_v28  ;;  %7667 = vmatprep.mubr.msk.f32.mxu0 %vm8267_vm2, %v8266_v20 }
0x18ce   : > { %v5874_v35 = vmul.f32 %v8157_v36, %v8151_v16 }
0x18d0   : > { %v8159_v11 = vpop.eup %8158  ;;  %7668 = vmatmul.mubr.msk.f32.vlgmr.msra.gmra.mrb[54].mxu0 %vm1110_vm0, %v5874_v35 }
0x18d1   : > { %v6220_v0 = vmul.f32 %v8159_v11, %v6204_v12  ;;  %v6344_v12 = vld [vmem:[%s9276_s5 + $0x60] sm:$0xff] }
0x18d2   : > { %v7991_v15 = vpack.c.bf16 %v6345_v21, %v6344_v12 }
0x18d3   : > { %v6228_v14 = vmul.f32 %v9105_v63, %v6220_v0 }
0x18d5   : > { %v9112_v52 = vadd.f32 %v9108_v2, %v6228_v14 }
0x18d7   : > { %7678 = vmatprep.mubr.msk.f32.mxu1 %vm1207_vm1, %v9112_v52 }
0x190a   : > { %v6105_v28 = vpop.f32.mrb[60].mxu1 }
0x190b   : > { %v6106_v20 = vadd.f32 %v6105_v28, %v9084_v46  ;;  %v7664_v19 = vpop.f32.mrb[61].mxu1 }
0x199f   : > { %v6032_v24 = vpop.f32.mrb[52].mxu0 }
0x19a0   : > { %v7659_v27 = vpop.f32.mrb[53].mxu0 }
0x19a3   : > { %v6178_v25 = vpop.f32.mrb[54].mxu0 }
0x19a4   : > { %v6179_v13 = vadd.f32 %v6178_v25, %v6032_v24  ;;  %v7669_v29 = vpop.f32.mrb[55].mxu0 }
0x19a6   : > { %v6182_v37 = vadd.f32 %v6179_v13, %v6106_v20 }
0x19a8   : > { %v6191_v38 = vadd.f32 %v9088_v50, %v6182_v37  ;;  %v6333_v50 = vld [vmem:[%s9276_s5 + $0x8] sm:$0xff]  ;;  %s6687_s5 = sshll.u32 %s1090_s3, 4 }
0x19a9   : > { %v7967_v33 = vpack.c.bf16 %v6333_v50, %v6332_v45  ;;  %s1092_s8 = scalar_lea.vmem [#allocation2], %s6687_s5  ;;  %s8170_s5 = sshll.u32 %s8268_s0, 4  ;;  %s8171_s5 = int_to_ptr.vmem [resolvable:$false] %s8170_s5 }
0x19aa   : > { %v6193_v40 = vadd.f32 %v6191_v38, %v8853_v23  ;;  %v6240_v23 = vld [vmem:[%s9275_s6 + $0x10] sm:$0xff]  ;;  %s9278_s6 = sld [smem:[#allocation28_spill]]  ;;  %s8172_s13 = scalar_lea.vmem %s8171_s5, 512 }
0x19ab   : > { %v7963_v30 = vpack.c.bf16 %v6241_v56, %v6240_v23  ;;  %7968 = vmatprep.subr.bf16.mxu0 %v7967_v33  ;;  %v6479_v23 = vld [vmem:[%s9252_s12 + $0x18] sm:$0xff] }
0x19ac   : > { %v6199_v41 = vsel %vm1207_vm1, %v6193_v40, 0.0  ;;  %7970 = vmatpush3.bf16.msra.mxu0 %v7967_v33  ;;  %v8003_v56 = vpack.c.bf16 %v6479_v23, %v6478_v54 }
0x19ad   : > { %6200 = vadd.xlane.f32.xlu1 %v6199_v41  ;;  %7964 = vmatprep.subr.bf16.mxu1 %v7963_v30 }
0x19ae   : > { %7966 = vmatpush3.bf16.msra.mxu1 %v7963_v30  ;;  %7972 = vmatprep.subr.bf16.mxu0 %v7971_v58 }
0x19b0   : > { %7974 = vmatpush3.bf16.msra.mxu0 %v7971_v58 }
0x19b1   : > { %7976 = vmatprep.subr.bf16.mxu0 %v7975_v60 }
0x19b4   : > { %7978 = vmatpush3.bf16.msra.mxu0 %v7975_v60 }
0x19b5   : > { %7980 = vmatprep.subr.bf16.mxu0 %v7979_v1 }
0x19b8   : > { %7982 = vmatpush3.bf16.msra.mxu0 %v7979_v1 }
0x19b9   : > { %7984 = vmatprep.subr.bf16.mxu0 %v7983_v5 }
0x19bc   : > { %7986 = vmatpush3.bf16.msra.mxu0 %v7983_v5 }
0x19bd   : > { %7988 = vmatprep.subr.bf16.mxu0 %v7987_v10 }
0x19c0   : > { %7990 = vmatpush3.bf16.msra.mxu0 %v7987_v10 }
0x19c1   : > { %7992 = vmatprep.subr.bf16.mxu0 %v7991_v15 }
0x19c4   : > { %7994 = vmatpush3.bf16.msra.mxu0 %v7991_v15 }
0x19c5   : > { %7996 = vmatprep.subr.bf16.mxu0 %v7995_v32 }
0x19c8   : > { %7998 = vmatpush3.bf16.msra.mxu0 %v7995_v32 }
0x1a3a   : > { %v6201_v49 = vpop.xlane.xlu1 %6200 }
0x1a3b   : > { %v6203_v42 = vmul.f32 0.03125, %v6201_v49 }
0x1a3d   : > { %v6205_v51 = vsub.f32 %v6193_v40, %v6203_v42 }
0x1a3f   : > { %v6207_v47 = vmul.f32 %v6205_v51, %v6205_v51 }
0x1a41   : > { %v6211_v46 = vsel %vm1207_vm1, %v6207_v47, 0.0 }
0x1a42   : > { %6212 = vadd.xlane.f32.xlu1 %v6211_v46  ;;  %v6476_v46 = vld [vmem:[%s9252_s12] sm:$0xff] }
0x1a43   : > { %v7999_v22 = vpack.c.bf16 %v6477_v59, %v6476_v46 }
0x1a45   : > { %8000 = vmatprep.subr.bf16.mxu1 %v7999_v22 }
0x1acf   : > { %v6213_v16 = vpop.xlane.xlu1 %6212 }
0x1ad0   : > { %v6215_v48 = vmul.f32 0.03125, %v6213_v16 }
0x1ad2   : > { %v6217_v55 = vadd.f32 1e-05, %v6215_v48 }
0x1ad4   : > { %8160 = vrsqrt.f32 %v6217_v55 }
0x1ade   : > { %v8161_v34 = vpop.eup %8160 }
0x1adf   : > { %v6221_v31 = vmul.f32 %v8161_v34, %v6205_v51 }
0x1ae1   : > { %v6229_v39 = vmul.f32 %v9105_v63, %v6221_v31  ;;  %v6918_v63 = vld [vmem:[%s9278_s6] ss:$0 sm:$0xff]  ;;  %s9279_s6 = sld [smem:[#allocation29_spill]] }
0x1ae3   : > { %v6237_v53 = vadd.f32 %v9108_v2, %v6229_v39 }
0x1ae5   : > { %7679 = vmatmul.mubr.msk.f32.vlgmr.msra.gmra.mrb[62].mxu1 %vm1207_vm1, %v6237_v53 }
0x1ae6   : > { %8002 = vmatpush3.bf16.msra.mxu1 %v7999_v22 }
0x1ae7   : > { %8004 = vmatprep.subr.bf16.mxu1 %v8003_v56  ;;  %v6919_v26 = vld [vmem:[%s9279_s6] ss:$0 sm:$0xff]  ;;  %s6585_s6 = sshll.u32 %s1092_s8, 4  ;;  %s9162_s6 = int_to_ptr.vmem [resolvable:$true] %s6585_s6 }
0x1ae8   : > { %s8166_s12 = scalar_lea.vmem %s9162_s6, 256  ;;  %p8173_p0 = scmp.lt.s32.totalorder %s9162_s6, %s8171_s5 }
0x1ae9   : > { %p8167_p11 = scmp.ne.s32.totalorder %s9162_s6, %s8166_s12  ;;  %p8174_p1 = scmp.lt.s32.totalorder %s8172_s13, %s8166_s12 }
0x1aea   : > { %8006 = vmatpush3.bf16.msra.mxu1 %v8003_v56 }
0x1aeb   : > { %p8168_p12 = pnand %p8167_p11, %p8499_p5  ;;  %p8175_p2 = por %p8174_p1, %p8173_p0 }
0x1aed   : > { %p8169_p13 = pneg %p8168_p12 }
0x1aef   : > { %p8176_p3 = pnand %p8175_p2, %p8169_p13 }
0x1bb8   : > { %v7680_v18 = vpop.f32.mrb[62].mxu1 }
0x1bb9   : > { %v6327_v36 = vadd.f32 %v7680_v18, %v6915_v17  ;;  %v6321_v35 = vpop.f32.mrb[63].mxu1 }
0x1bba   : > { %v6322_v11 = vadd.f32 %v6915_v17, %v6321_v35 }
0x1bbb   : > { %v6331_v14 = vmax.f32 %v6327_v36, 0.0 }
0x1bbc   : > { %v6330_v0 = vmax.f32 %v6322_v11, 0.0 }
0x1bbe   : > { %7713 = vmatprep.mubr.f32.mxu0 %v6330_v0 }
0x1bbf   : > { %7714 = vmatmul.mubr.f32.vlgmr.msra.gmra.mrb[56].mxu0 %v6331_v14 }
0x1c92   : > { %v7715_v28 = vpop.f32.mrb[56].mxu0 }
0x1c93   : > { %v6427_v2 = vadd.f32 %v7715_v28, %v6918_v63  ;;  %v6421_v20 = vpop.f32.mrb[57].mxu0 }
0x1c94   : > { %v6422_v19 = vadd.f32 %v6918_v63, %v6421_v20 }
0x1c95   : > { %v6431_v24 = vadd.f32 %v6427_v2, %v6237_v53 }
0x1c96   : > { %v6430_v27 = vadd.f32 %v6422_v19, %v9112_v52 }
0x1c97   : > { %v6437_v25 = vsel %vm1207_vm1, %v6431_v24, 0.0 }
0x1c98   : > { %6438 = vadd.xlane.f32.xlu1 %v6437_v25  ;;  %v6434_v13 = vsel %vm1207_vm1, %v6430_v27, 0.0 }
0x1c99   : > { %6435 = vadd.xlane.f32.xlu0 %v6434_v13 }
0x1d25   : > { %v6439_v29 = vpop.xlane.xlu1 %6438 }
0x1d26   : > { %v6441_v37 = vmul.f32 0.03125, %v6439_v29  ;;  %v6436_v38 = vpop.xlane.xlu0 %6435 }
0x1d27   : > { %v6440_v40 = vmul.f32 0.03125, %v6436_v38 }
0x1d28   : > { %v6443_v41 = vsub.f32 %v6431_v24, %v6441_v37 }
0x1d29   : > { %v6442_v49 = vsub.f32 %v6430_v27, %v6440_v40 }
0x1d2a   : > { %v6445_v42 = vmul.f32 %v6443_v41, %v6443_v41 }
0x1d2b   : > { %v6444_v51 = vmul.f32 %v6442_v49, %v6442_v49 }
0x1d2c   : > { %v6449_v52 = vsel %vm1207_vm1, %v6445_v42, 0.0 }
0x1d2d   : > { %6450 = vadd.xlane.f32.xlu1 %v6449_v52  ;;  %v6446_v47 = vsel %vm1207_vm1, %v6444_v51, 0.0 }
0x1d2e   : > { %6447 = vadd.xlane.f32.xlu0 %v6446_v47 }
0x1dba   : > { %v6451_v30 = vpop.xlane.xlu1 %6450 }
0x1dbb   : > { %v6453_v45 = vmul.f32 0.03125, %v6451_v30  ;;  %v6448_v50 = vpop.xlane.xlu0 %6447 }
0x1dbc   : > { %v6452_v43 = vmul.f32 0.03125, %v6448_v50 }
0x1dbd   : > { %v6455_v33 = vadd.f32 1e-05, %v6453_v45 }
0x1dbe   : > { %v6454_v57 = vadd.f32 1e-05, %v6452_v43 }
0x1dbf   : > { %8162 = vrsqrt.f32 %v6455_v33 }
0x1dc0   : > { %8164 = vrsqrt.f32 %v6454_v57 }
0x1dc9   : > { %v8163_v58 = vpop.eup %8162 }
0x1dca   : > { %v8165_v9 = vpop.eup %8164  ;;  %v6459_v60 = vmul.f32 %v8163_v58, %v6443_v41 }
0x1dcb   : > { %v6458_v61 = vmul.f32 %v8165_v9, %v6442_v49 }
0x1dcc   : > { %v6467_v1 = vmul.f32 %v6919_v26, %v6459_v60 }
0x1dcd   : > { %v6466_v3 = vmul.f32 %v6919_v26, %v6458_v61 }
0x1dce   : > { %v6475_v5 = vadd.f32 %v6920_v62, %v6467_v1 }
0x1dcf   : > { %v6474_v4 = vadd.f32 %v6920_v62, %v6466_v3 }
0x1dd1   : > { %7724 = vmatprep.mubr.msk.f32.mxu1 %vm1207_vm1, %v6474_v4 }
0x1dd2   : > { %7725 = vmatmul.mubr.msk.f32.vlgmr.msra.gmra.mrb[64].mxu1 %vm1207_vm1, %v6475_v5 }
0x1ea5   : > { %v7726_v8 = vpop.f32.mrb[64].mxu1 }
0x1ea6   : > { %v6565_v10 = vadd.f32 %v7726_v8, %v6921_v7  ;;  %v6559_v12 = vpop.f32.mrb[65].mxu1 }
0x1ea7   : > { %v6560_v21 = vadd.f32 %v6921_v7, %v6559_v12 }
0x1ea8   : > { %6570 = vst.msk [vmem:[%s1092_s8 + $0x8] sm:$0xff] %vm6568_vm3, %v6565_v10 }
0x1ea9   : > { %6569 = vst.msk [vmem:[%s1092_s8] sm:$0xff] %vm6568_vm3, %v6560_v21 }
0x1eaa   : > { %8179 = shalt.err (!%p8176_p3)
}
0x1eab   : > { %s8180_s9 = scalar_lea.hbm %s9165_s4, 256  ;;  %s8184_s8 = scalar_lea.hbm %s8459_s27, 512 }
0x1eac   : > { %p8181_p4 = scmp.ne.s32.totalorder %s9165_s4, %s8180_s9  ;;  %p8185_p9 = scmp.lt.u32.totalorder %s9165_s4, %s8459_s27 }
0x1ead   : > { %p8186_p10 = scmp.lt.u32.totalorder %s8184_s8, %s8180_s9  ;;  %p8188_p12 = scmp.lt.u32.totalorder %s8180_s9, %s9165_s4 }
0x1eae   : > { %p8182_p7 = pnand %p8181_p4, %p8499_p5 }
0x1eaf   : > { %p8187_p11 = por %p8186_p10, %p8185_p9 }
0x1eb0   : > { %p8183_p8 = pneg %p8182_p7 }
0x1eb1   : > { %p8189_p0 = por %p8188_p12, %p8187_p11 }
0x1eb3   : > { %p8190_p13 = pnand %p8189_p0, %p8183_p8 }
0x1eb5   : > { %8193 = shalt.err (!%p8190_p13)
}
0x1eb6   : > { %s8269_s13 = smov 128   ;;  %s8270_s12 = smov 8  }
0x1eb7   : > { %8007 = dma.vmem_to_hbm [thread:$0]  (%p8499_p5), %s9162_s6, 256, %s9165_s4, %s9167_s10, %s8269_s13, %s8269_s13, %s8270_s12  }
0x1eb8 PF: > { %p8013_p1 = scmp.ge.s32.totalorder %s8228_s7, 2  ;;  %s6600_s3 = sand.u32 1, %s8216_s28  }
0x1eb9   : > { %s6601_s0 = scalar_lea.sflag [#allocation3], %s6600_s3 }
0x1eba   : > { %p8010_p2 = pnand %p8013_p1, %p8503_p6 }
0x1ebc   : > { %8211 = dma.done.wait (!%p8010_p2), %s6601_s0, 256  }
0x1ebd   : > { %8213 = vsyncadd (!%p8010_p2), %s6601_s0, 4294967040  ;;  %p83_p3 = scmp.ge.s32.totalorder %s8486_s11, 4   ;;  %s9281_s28 = smov %s8220_s1 }
0x1ebe   : > { %s9282_s1 = smov %s8224_s2  ;;  %s9283_s2 = smov %s8497_s18 }
0x1ebf   : > { %s9284_s7 = smov %s8486_s11  ;;  %85 = sbr.rel (!%p83_p3) target bundleno = 80 (0x50), region = 271 }
0x1ec6   :  { %6606 = vsyncpa [#allocation3], 1 }
0x1ec7   :  { %6608 = vsyncpa [#allocation3 + $0x1], 1 }

</bundles_post_ra>
